<compile_context>
chip_gen: v7x
topology: tpu7x:2x2x1
jax: 0.10.0
libtpu: 0.0.40
codegen_flags: <defaults>
</compile_context>

<pallas_src>
import functools

import jax
import jax.numpy as jnp
from jax.experimental import pallas as pl
from jax.experimental.pallas import tpu as pltpu


# -----------------------------------------------------------------------------
# Deterministic synthetic prior boxes (stand-in for create_prior_boxes()).
# 8x8 grid x 4 shapes -> 256 priors, cxcy in [0, 1].
# -----------------------------------------------------------------------------
def create_prior_boxes(fmap_size=8):
    xs = (jnp.arange(fmap_size, dtype=jnp.float32) + 0.5) / fmap_size
    cy, cx = jnp.meshgrid(xs, xs, indexing="ij")
    centers = jnp.stack([cx.ravel(), cy.ravel()], axis=1)             # (64, 2)
    shapes = jnp.array([[0.20, 0.20],
                        [0.30, 0.30],
                        [0.28, 0.14],
                        [0.14, 0.28]], dtype=jnp.float32)             # (4, 2)
    n_cells = centers.shape[0]
    prior_cxcy = jnp.concatenate(
        [jnp.repeat(centers, shapes.shape[0], axis=0),
         jnp.tile(shapes, (n_cells, 1))], axis=1)                     # (256, 4)
    return jnp.clip(prior_cxcy, 0.0, 1.0)


def cxcy_to_xy(cxcy):
    return jnp.concatenate([cxcy[:, :2] - cxcy[:, 2:] / 2.0,
                            cxcy[:, :2] + cxcy[:, 2:] / 2.0], axis=1)


# -----------------------------------------------------------------------------
# Pallas kernel: one grid step handles bt images and writes its own partials.
# -----------------------------------------------------------------------------
def _multibox_loss_kernel(boxes_sref, labels_sref,          # SMEM scalar prefetch
                          prior_ref, pbox_ref, pscore_ref,  # VMEM inputs
                          out_ref,                          # (1, 1, 128) partials
                          colbuf_ref,                       # (P, 1) VMEM scratch
                          *, threshold, n_obj, bt, chunk):
    g = pl.program_id(0)
    P = prior_ref.shape[1]
    C = pscore_ref.shape[1]
    n_chunks = P // chunk

    # --- grid-step invariants (priors on lanes), hoisted out of all loops ----
    px1 = prior_ref[0:1, :]
    py1 = prior_ref[1:2, :]
    px2 = prior_ref[2:3, :]
    py2 = prior_ref[3:4, :]
    pcx = prior_ref[4:5, :]
    pcy = prior_ref[5:6, :]
    pw = prior_ref[6:7, :]
    ph = prior_ref[7:8, :]
    area_p = (px2 - px1) * (py2 - py1)                       # (1, P)
    inv_pw = 1.0 / pw
    inv_ph = 1.0 / ph
    log_pw = jnp.log(pw)
    log_ph = jnp.log(ph)
    iota_p = jax.lax.broadcasted_iota(jnp.int32, (1, P), 1)  # prior index on lanes
    cls_iota = jax.lax.broadcasted_iota(jnp.int32, (C, P), 0)

    def sl1(d):
        a = jnp.abs(d)
        return jnp.where(a < 1.0, 0.5 * a * a, a - 0.5)

    def image_body(t, carry):
        conf_pos_acc, hard_acc, loc_acc, npos_acc = carry
        img = g * bt + t
        bbase = img * (n_obj * 4)
        lbase = img * n_obj

        # --- IoU rows per GT object (scalar GT coords from SMEM, broadcast) --
        bcoords = []
        ov_rows = []
        for o in range(n_obj):
            bx1 = boxes_sref[bbase + 4 * o + 0]
            by1 = boxes_sref[bbase + 4 * o + 1]
            bx2 = boxes_sref[bbase + 4 * o + 2]
            by2 = boxes_sref[bbase + 4 * o + 3]
            bcoords.append((bx1, by1, bx2, by2))
            iw = jnp.maximum(jnp.minimum(px2, bx2) - jnp.maximum(px1, bx1), 0.0)
            ih = jnp.maximum(jnp.minimum(py2, by2) - jnp.maximum(py1, by1), 0.0)
            inter = iw * ih
            area_b = (bx2 - bx1) * (by2 - by1)               # scalar
            # exact divide: approx reciprocal could flip matches at threshold
            ov_rows.append(inter / (area_p + area_b - inter))  # (1, P)

        # --- best object per prior (first-max argmax over objects) -----------
        best_val = ov_rows[0]
        best_obj = jnp.zeros((1, P), jnp.int32)
        for o in range(1, n_obj):
            upd = ov_rows[o] > best_val
            best_val = jnp.where(upd, ov_rows[o], best_val)
            best_obj = jnp.where(upd, o, best_obj)

        # --- force each object's best prior to that object (later obj wins) --
        for o in range(n_obj):
            row = ov_rows[o]
            rmax = jnp.max(row, axis=1, keepdims=True)
            cand = jnp.where(row == rmax, iota_p, P)
            pidx = jnp.min(cand, axis=1, keepdims=True)      # first-max prior
            hit = iota_p == pidx
            best_obj = jnp.where(hit, o, best_obj)
            best_val = jnp.where(hit, 1.0, best_val)

        # --- per-prior labels -------------------------------------------------
        lab = jnp.zeros((1, P), jnp.int32)
        for o in range(n_obj):
            lab = jnp.where(best_obj == o, labels_sref[lbase + o], lab)
        lab = jnp.where(best_val < threshold, 0, lab)
        positive = lab != 0

        # --- gather matched GT boxes (scalar broadcasts) and encode ----------
        gx1 = jnp.zeros((1, P), jnp.float32)
        gy1 = jnp.zeros((1, P), jnp.float32)
        gx2 = jnp.zeros((1, P), jnp.float32)
        gy2 = jnp.zeros((1, P), jnp.float32)
        for o in range(n_obj):
            msk = best_obj == o
            bx1, by1, bx2, by2 = bcoords[o]
            gx1 = jnp.where(msk, bx1, gx1)
            gy1 = jnp.where(msk, by1, gy1)
            gx2 = jnp.where(msk, bx2, gx2)
            gy2 = jnp.where(msk, by2, gy2)
        t0 = ((gx1 + gx2) * 0.5 - pcx) * 10.0 * inv_pw
        t1 = ((gy1 + gy2) * 0.5 - pcy) * 10.0 * inv_ph
        t2 = (jnp.log(gx2 - gx1) - log_pw) * 5.0
        t3 = (jnp.log(gy2 - gy1) - log_ph) * 5.0

        # --- smooth L1 over positive priors (lane-dense (4, P) tile) ---------
        pb = pbox_ref[t]                                     # (4, P)
        loc_elem = (sl1(pb[0:1, :] - t0) + sl1(pb[1:2, :] - t1)
                    + sl1(pb[2:3, :] - t2) + sl1(pb[3:4, :] - t3))
        loc_acc = loc_acc + jnp.sum(jnp.where(positive, loc_elem, 0.0),
                                    axis=1, keepdims=True)

        # --- cross entropy per prior: sublane (class-axis) reductions --------
        sc = pscore_ref[t]                                   # (C, P)
        mx = jnp.max(sc, axis=0, keepdims=True)              # (1, P)
        sexp = jnp.sum(jnp.exp(sc - mx), axis=0, keepdims=True)
        tgt = jnp.sum(jnp.where(cls_iota == lab, sc, 0.0), axis=0, keepdims=True)
        ce = mx + jnp.log(sexp) - tgt                        # (1, P)

        n_pos = jnp.sum(positive.astype(jnp.float32), axis=1, keepdims=True)
        conf_pos_acc = conf_pos_acc + jnp.sum(jnp.where(positive, ce, 0.0),
                                              axis=1, keepdims=True)
        npos_acc = npos_acc + n_pos

        # --- hard-negative mining: chunked index-tie-broken ranks ------------
        # Sum of top-(3*n_pos) is tie-invariant -> identical to sort-descending
        # + take first 3*n_pos.
        conf_neg = jnp.where(positive, 0.0, ce)              # (1, P)
        # single (1,P)->(P,1) relayout per image; chunk loads stay (chunk, 1).
        colbuf_ref[...] = jnp.reshape(conf_neg, (P, 1))
        kneg = 3.0 * n_pos                                   # (1, 1)

        def chunk_body(ci, hsum):
            start = pl.multiple_of(ci * chunk, chunk)
            colc = colbuf_ref[pl.ds(start, chunk), :]        # (chunk, 1)
            ridx = ci * chunk + jax.lax.broadcasted_iota(jnp.int32, (chunk, 1), 0)
            gt = conf_neg > colc                             # (chunk, P)
            tie = (conf_neg == colc) & (iota_p < ridx)
            rank = jnp.sum((gt | tie).astype(jnp.float32), axis=1, keepdims=True)
            sel = rank < kneg                                # (chunk, 1)
            return hsum + jnp.sum(jnp.where(sel, colc, 0.0), axis=0, keepdims=True)

        # TODO(synk): replace with ~20-iteration bisection threshold search for
        # production prior counts (P ~ 8732) where O(P^2) compares dominate.
        hard_acc = hard_acc + jax.lax.fori_loop(
            0, n_chunks, chunk_body, jnp.zeros((1, 1), jnp.float32),
            unroll=True if n_chunks <= 8 else 2)

        return conf_pos_acc, hard_acc, loc_acc, npos_acc

    z = jnp.zeros((1, 1), jnp.float32)
    conf_pos, hard, loc, npos = jax.lax.fori_loop(
        0, bt, image_body, (z, z, z, z), unroll=True)

    # --- lane-dense (1, 1, 128) partial-sum store (lanes 0..3 carry data) -----
    lane = jax.lax.broadcasted_iota(jnp.int32, (1, 1, 128), 2)
    out_ref[...] = (jnp.where(lane == 0, conf_pos.reshape(1, 1, 1), 0.0)
                    + jnp.where(lane == 1, hard.reshape(1, 1, 1), 0.0)
                    + jnp.where(lane == 2, loc.reshape(1, 1, 1), 0.0)
                    + jnp.where(lane == 3, npos.reshape(1, 1, 1), 0.0))


# -----------------------------------------------------------------------------
# Wrapper: layout glue, bt/VMEM sizing, final scalar combination.
# -----------------------------------------------------------------------------
def multibox_loss(pre_box, pre_score, boxes, labels, prior_xy, prior_cxcy,
                  *, threshold=0.5, alpha=1.0):
    B, P, _ = pre_box.shape
    C = pre_score.shape[-1]
    n_obj = boxes.shape[1]

    # Hard-negative rank chunk (sublane aligned).
    chunk = None
    for cand in (32, 16, 8):
        if P % cand == 0:
            chunk = cand
            break
    assert chunk is not None, "number of priors must be a multiple of 8"
    # TODO(synk): pad P for prior counts not divisible by 8 (e.g. SSD300's 8732).

    # Images per grid step: as large as VMEM allows, but keep G = B // bt >= 2
    # so the "parallel" grid axis shards across v7x's two TensorCores and the
    # BlockSpec pipeline still overlaps DMA with compute.
    try:
        vmem_cap = int(pltpu.get_tpu_info().vmem_capacity_bytes)
    except Exception:  # conservative fallback (v7x per-TC VMEM)
        vmem_cap = 64 * 1024 * 1024
    per_image_bytes = 4 * (P * C + P * 4)        # lane-dense f32 (C,P)+(4,P)
    budget = vmem_cap // 2                        # headroom for scratch/regalloc
    bt = 1
    for cand in range(B, 0, -1):
        if B % cand != 0:
            continue
        if B >= 2 and B // cand < 2:
            continue
        if 2 * cand * per_image_bytes <= budget:
            bt = cand
            break
    G = B // bt

    resident = (2 * bt * per_image_bytes          # double-buffered image blocks
                + 2 * 8 * P * 4                   # fused priors
                + 2 * 128 * 4                     # output row
                + P * 4)                          # column scratch
    vmem_limit = int(min(vmem_cap, max(2 * resident + (8 << 20), 32 << 20)))

    # Lane-dense layouts: priors on lanes everywhere.
    priors = jnp.concatenate([prior_xy.T, prior_cxcy.T],
                             axis=0).astype(jnp.float32)          # (8, P)
    pre_box_t = jnp.transpose(pre_box.astype(jnp.float32), (0, 2, 1))     # (B,4,P)
    pre_score_t = jnp.transpose(pre_score.astype(jnp.float32), (0, 2, 1))  # (B,C,P)
    boxes_flat = boxes.astype(jnp.float32).reshape(B * n_obj * 4)
    labels_flat = labels.astype(jnp.int32).reshape(B * n_obj)

    kernel = functools.partial(_multibox_loss_kernel, threshold=float(threshold),
                               n_obj=n_obj, bt=bt, chunk=chunk)

    partials = pl.pallas_call(
        kernel,
        out_shape=jax.ShapeDtypeStruct((G, 1, 128), jnp.float32),
        grid_spec=pltpu.PrefetchScalarGridSpec(
            num_scalar_prefetch=2,                               # boxes, labels -> SMEM
            grid=(G,),
            in_specs=[
                pl.BlockSpec((8, P), lambda g, bs, ls: (0, 0)),          # fused priors
                pl.BlockSpec((bt, 4, P), lambda g, bs, ls: (g, 0, 0)),   # pre_box
                pl.BlockSpec((bt, C, P), lambda g, bs, ls: (g, 0, 0)),   # pre_score
            ],
            out_specs=pl.BlockSpec((1, 1, 128), lambda g, bs, ls: (g, 0, 0)),
            scratch_shapes=[pltpu.VMEM((P, 1), jnp.float32)],
        ),
        compiler_params=pltpu.CompilerParams(
            dimension_semantics=("parallel",),                   # megacore-shardable
            vmem_limit_bytes=vmem_limit),
    )(boxes_flat, labels_flat, priors, pre_box_t, pre_score_t)

    sums = jnp.sum(partials, axis=(0, 1))                        # (128,)
    conf_pos, conf_hard, loc_sum, n_pos = sums[0], sums[1], sums[2], sums[3]
    confident_loss = (conf_pos + conf_hard) / n_pos
    loc_loss = loc_sum / (4.0 * n_pos)   # nn.SmoothL1Loss mean over N_pos * 4 elements
    return confident_loss + alpha * loc_loss


# -----------------------------------------------------------------------------
# Pure-JAX reference mirroring the PyTorch forward (for verification).
# -----------------------------------------------------------------------------
def reference_loss(pre_box, pre_score, boxes, labels, prior_xy, prior_cxcy,
                   threshold=0.5, alpha=1.0):
    B, P, _ = pre_box.shape
    n_obj = boxes.shape[1]
    conf_pos = jnp.float32(0.0)
    conf_hard = jnp.float32(0.0)
    loc_sum = jnp.float32(0.0)
    n_pos_tot = jnp.float32(0.0)
    for i in range(B):
        bx = boxes[i]
        lower = jnp.maximum(bx[:, None, :2], prior_xy[None, :, :2])
        upper = jnp.minimum(bx[:, None, 2:], prior_xy[None, :, 2:])
        inter = jnp.maximum(upper - lower, 0.0)
        inter_a = inter[..., 0] * inter[..., 1]
        area_b = (bx[:, 2] - bx[:, 0]) * (bx[:, 3] - bx[:, 1])
        area_p = (prior_xy[:, 2] - prior_xy[:, 0]) * (prior_xy[:, 3] - prior_xy[:, 1])
        overlap = inter_a / (area_b[:, None] + area_p[None, :] - inter_a)

        overlap_to_obj = overlap.max(axis=0)
        obj_for_priors = jnp.argmax(overlap, axis=0)
        prior_for_obj = jnp.argmax(overlap, axis=1)
        for o in range(n_obj):
            obj_for_priors = obj_for_priors.at[prior_for_obj[o]].set(o)
            overlap_to_obj = overlap_to_obj.at[prior_for_obj[o]].set(1.0)

        lab = labels[i][obj_for_priors]
        lab = jnp.where(overlap_to_obj < threshold, 0, lab)
        pos = lab != 0

        gb = bx[obj_for_priors]
        cxcy = jnp.concatenate([(gb[:, :2] + gb[:, 2:]) / 2.0, gb[:, 2:] - gb[:, :2]], axis=1)
        tl = jnp.concatenate([(cxcy[:, :2] - prior_cxcy[:, :2]) / (prior_cxcy[:, 2:] / 10.0),
                              jnp.log(cxcy[:, 2:] / prior_cxcy[:, 2:]) * 5.0], axis=1)

        d = jnp.abs(pre_box[i] - tl)
        sl1 = jnp.where(d < 1.0, 0.5 * d * d, d - 0.5)
        loc_sum += jnp.sum(jnp.where(pos[:, None], sl1, 0.0))

        s = pre_score[i]
        lse = jax.scipy.special.logsumexp(s, axis=1)
        ce = lse - jnp.take_along_axis(s, lab[:, None], axis=1)[:, 0]
        conf_pos += jnp.sum(jnp.where(pos, ce, 0.0))
        npos_i = jnp.sum(pos)
        n_pos_tot += npos_i.astype(jnp.float32)

        cneg = jnp.where(pos, 0.0, ce)
        sorted_desc = jnp.sort(cneg)[::-1]
        conf_hard += jnp.sum(jnp.where(jnp.arange(P) < 3 * npos_i, sorted_desc, 0.0))

    return (conf_pos + conf_hard) / n_pos_tot + alpha * loc_sum / (4.0 * n_pos_tot)


if __name__ == "__main__":
    key = jax.random.PRNGKey(0)
    B, n_obj, C = 2, 3, 8                       # batch, GT objects per image, num classes

    prior_cxcy = create_prior_boxes()           # (256, 4)
    prior_xy = cxcy_to_xy(prior_cxcy)
    P = prior_cxcy.shape[0]

    k1, k2, k3, k4, k5 = jax.random.split(key, 5)
    pre_box = jax.random.normal(k1, (B, P, 4), dtype=jnp.float32)
    pre_score = jax.random.normal(k2, (B, P, C), dtype=jnp.float32)
    gt_cxy = jax.random.uniform(k3, (B, n_obj, 2), minval=0.25, maxval=0.75)
    gt_wh = jax.random.uniform(k4, (B, n_obj, 2), minval=0.15, maxval=0.40)
    boxes = jnp.concatenate([jnp.clip(gt_cxy - gt_wh / 2.0, 0.0, 1.0),
                             jnp.clip(gt_cxy + gt_wh / 2.0, 0.0, 1.0)], axis=-1)
    labels = jax.random.randint(k5, (B, n_obj), 1, C).astype(jnp.int32)

    loss = multibox_loss(pre_box, pre_score, boxes, labels, prior_xy, prior_cxcy,
                         threshold=0.5, alpha=1.0)
    loss = jax.block_until_ready(loss)

    ref = reference_loss(pre_box, pre_score, boxes, labels, prior_xy, prior_cxcy,
                         threshold=0.5, alpha=1.0)
    assert abs(float(loss) - float(ref)) <= 1e-3 * max(1.0, abs(float(ref))), \
        f"mismatch: kernel={float(loss)} ref={float(ref)}"

    print("KERNEL_OK")
</pallas_src>

<mosaic_0001>
module attributes {stable_mosaic.version = 11 : i64} {
  func.func @_multibox_loss_kernel(%arg0: i32, %arg1: memref<24xf32, #tpu.memory_space<smem>>, %arg2: memref<6xi32, #tpu.memory_space<smem>>, %arg3: memref<8x256xf32, #tpu.memory_space<vmem>>, %arg4: memref<1x4x256xf32, #tpu.memory_space<vmem>>, %arg5: memref<1x8x256xf32, #tpu.memory_space<vmem>>, %arg6: memref<1x1x128xf32, #tpu.memory_space<vmem>>, %arg7: memref<256x1xf32, #tpu.memory_space<vmem>>) attributes {dimension_semantics = [#tpu.dimension_semantics<parallel>], iteration_bounds = array<i64: 2>, scalar_prefetch = 2 : i64, scratch_operands = 1 : i64, tpu.core_type = #tpu.core_type<tc>, window_params = [{pipeline_mode = #tpu.pipeline_mode<synchronous>, transform_indices = @transform_0, window_bounds = array<i64: 8, 256>}, {transform_indices = @transform_1, window_bounds = array<i64: 1, 4, 256>}, {transform_indices = @transform_2, window_bounds = array<i64: 1, 8, 256>}, {transform_indices = @transform_3, window_bounds = array<i64: 1, 1, 128>}]} {
    %c0 = arith.constant 0 : index
    %c0_0 = arith.constant 0 : index
    %0 = vector.load %arg3[%c0, %c0_0] : memref<8x256xf32, #tpu.memory_space<vmem>>, vector<1x256xf32>
    %c1 = arith.constant 1 : index
    %c0_1 = arith.constant 0 : index
    %1 = vector.load %arg3[%c1, %c0_1] : memref<8x256xf32, #tpu.memory_space<vmem>>, vector<1x256xf32>
    %c2 = arith.constant 2 : index
    %c0_2 = arith.constant 0 : index
    %2 = vector.load %arg3[%c2, %c0_2] : memref<8x256xf32, #tpu.memory_space<vmem>>, vector<1x256xf32>
    %c3 = arith.constant 3 : index
    %c0_3 = arith.constant 0 : index
    %3 = vector.load %arg3[%c3, %c0_3] : memref<8x256xf32, #tpu.memory_space<vmem>>, vector<1x256xf32>
    %c4 = arith.constant 4 : index
    %c0_4 = arith.constant 0 : index
    %4 = vector.load %arg3[%c4, %c0_4] : memref<8x256xf32, #tpu.memory_space<vmem>>, vector<1x256xf32>
    %c5 = arith.constant 5 : index
    %c0_5 = arith.constant 0 : index
    %5 = vector.load %arg3[%c5, %c0_5] : memref<8x256xf32, #tpu.memory_space<vmem>>, vector<1x256xf32>
    %c6 = arith.constant 6 : index
    %c0_6 = arith.constant 0 : index
    %6 = vector.load %arg3[%c6, %c0_6] : memref<8x256xf32, #tpu.memory_space<vmem>>, vector<1x256xf32>
    %c7 = arith.constant 7 : index
    %c0_7 = arith.constant 0 : index
    %7 = vector.load %arg3[%c7, %c0_7] : memref<8x256xf32, #tpu.memory_space<vmem>>, vector<1x256xf32>
    %8 = arith.subf %2, %0 : vector<1x256xf32>
    %9 = arith.subf %3, %1 : vector<1x256xf32>
    %10 = arith.mulf %8, %9 : vector<1x256xf32>
    %cst = arith.constant 1.000000e+00 : f32
    %11 = vector.broadcast %cst : f32 to vector<1x256xf32>
    %12 = arith.divf %11, %6 : vector<1x256xf32>
    %cst_8 = arith.constant 1.000000e+00 : f32
    %13 = vector.broadcast %cst_8 : f32 to vector<1x256xf32>
    %14 = arith.divf %13, %7 : vector<1x256xf32>
    %15 = math.log %6 : vector<1x256xf32>
    %16 = math.log %7 : vector<1x256xf32>
    %17 = tpu.iota {dimensions = array<i32: 1>} : vector<1x256xi32>
    %18 = tpu.iota {dimensions = array<i32: 0>} : vector<8x256xi32>
    %cst_9 = arith.constant 0.000000e+00 : f32
    %19 = vector.broadcast %cst_9 : f32 to vector<1x1xf32>
    %c0_i32 = arith.constant 0 : i32
    %c1_i32 = arith.constant 1 : i32
    %20 = arith.muli %arg0, %c1_i32 : i32
    %21 = arith.addi %20, %c0_i32 : i32
    %c12_i32 = arith.constant 12 : i32
    %22 = arith.muli %21, %c12_i32 : i32
    %c3_i32 = arith.constant 3 : i32
    %23 = arith.muli %21, %c3_i32 : i32
    %c0_i32_10 = arith.constant 0 : i32
    %24 = arith.addi %22, %c0_i32_10 : i32
    %c0_i32_11 = arith.constant 0 : i32
    %25 = arith.addi %24, %c0_i32_11 : i32
    %26 = arith.index_cast %25 : i32 to index
    %27 = memref.load %arg1[%26] : memref<24xf32, #tpu.memory_space<smem>>
    %c0_i32_12 = arith.constant 0 : i32
    %28 = arith.addi %22, %c0_i32_12 : i32
    %c1_i32_13 = arith.constant 1 : i32
    %29 = arith.addi %28, %c1_i32_13 : i32
    %30 = arith.index_cast %29 : i32 to index
    %31 = memref.load %arg1[%30] : memref<24xf32, #tpu.memory_space<smem>>
    %c0_i32_14 = arith.constant 0 : i32
    %32 = arith.addi %22, %c0_i32_14 : i32
    %c2_i32 = arith.constant 2 : i32
    %33 = arith.addi %32, %c2_i32 : i32
    %34 = arith.index_cast %33 : i32 to index
    %35 = memref.load %arg1[%34] : memref<24xf32, #tpu.memory_space<smem>>
    %c0_i32_15 = arith.constant 0 : i32
    %36 = arith.addi %22, %c0_i32_15 : i32
    %c3_i32_16 = arith.constant 3 : i32
    %37 = arith.addi %36, %c3_i32_16 : i32
    %38 = arith.index_cast %37 : i32 to index
    %39 = memref.load %arg1[%38] : memref<24xf32, #tpu.memory_space<smem>>
    %40 = vector.broadcast %35 : f32 to vector<1x256xf32>
    %41 = arith.minimumf %2, %40 : vector<1x256xf32>
    %42 = vector.broadcast %27 : f32 to vector<1x256xf32>
    %43 = arith.maximumf %0, %42 : vector<1x256xf32>
    %44 = arith.subf %41, %43 : vector<1x256xf32>
    %cst_17 = arith.constant 0.000000e+00 : f32
    %45 = vector.broadcast %cst_17 : f32 to vector<1x256xf32>
    %46 = arith.maximumf %44, %45 : vector<1x256xf32>
    %47 = vector.broadcast %39 : f32 to vector<1x256xf32>
    %48 = arith.minimumf %3, %47 : vector<1x256xf32>
    %49 = vector.broadcast %31 : f32 to vector<1x256xf32>
    %50 = arith.maximumf %1, %49 : vector<1x256xf32>
    %51 = arith.subf %48, %50 : vector<1x256xf32>
    %cst_18 = arith.constant 0.000000e+00 : f32
    %52 = vector.broadcast %cst_18 : f32 to vector<1x256xf32>
    %53 = arith.maximumf %51, %52 : vector<1x256xf32>
    %54 = arith.mulf %46, %53 : vector<1x256xf32>
    %55 = arith.subf %35, %27 : f32
    %56 = arith.subf %39, %31 : f32
    %57 = arith.mulf %55, %56 : f32
    %58 = vector.broadcast %57 : f32 to vector<1x256xf32>
    %59 = arith.addf %10, %58 : vector<1x256xf32>
    %60 = arith.subf %59, %54 : vector<1x256xf32>
    %61 = arith.divf %54, %60 : vector<1x256xf32>
    %c4_i32 = arith.constant 4 : i32
    %62 = arith.addi %22, %c4_i32 : i32
    %c0_i32_19 = arith.constant 0 : i32
    %63 = arith.addi %62, %c0_i32_19 : i32
    %64 = arith.index_cast %63 : i32 to index
    %65 = memref.load %arg1[%64] : memref<24xf32, #tpu.memory_space<smem>>
    %c4_i32_20 = arith.constant 4 : i32
    %66 = arith.addi %22, %c4_i32_20 : i32
    %c1_i32_21 = arith.constant 1 : i32
    %67 = arith.addi %66, %c1_i32_21 : i32
    %68 = arith.index_cast %67 : i32 to index
    %69 = memref.load %arg1[%68] : memref<24xf32, #tpu.memory_space<smem>>
    %c4_i32_22 = arith.constant 4 : i32
    %70 = arith.addi %22, %c4_i32_22 : i32
    %c2_i32_23 = arith.constant 2 : i32
    %71 = arith.addi %70, %c2_i32_23 : i32
    %72 = arith.index_cast %71 : i32 to index
    %73 = memref.load %arg1[%72] : memref<24xf32, #tpu.memory_space<smem>>
    %c4_i32_24 = arith.constant 4 : i32
    %74 = arith.addi %22, %c4_i32_24 : i32
    %c3_i32_25 = arith.constant 3 : i32
    %75 = arith.addi %74, %c3_i32_25 : i32
    %76 = arith.index_cast %75 : i32 to index
    %77 = memref.load %arg1[%76] : memref<24xf32, #tpu.memory_space<smem>>
    %78 = vector.broadcast %73 : f32 to vector<1x256xf32>
    %79 = arith.minimumf %2, %78 : vector<1x256xf32>
    %80 = vector.broadcast %65 : f32 to vector<1x256xf32>
    %81 = arith.maximumf %0, %80 : vector<1x256xf32>
    %82 = arith.subf %79, %81 : vector<1x256xf32>
    %cst_26 = arith.constant 0.000000e+00 : f32
    %83 = vector.broadcast %cst_26 : f32 to vector<1x256xf32>
    %84 = arith.maximumf %82, %83 : vector<1x256xf32>
    %85 = vector.broadcast %77 : f32 to vector<1x256xf32>
    %86 = arith.minimumf %3, %85 : vector<1x256xf32>
    %87 = vector.broadcast %69 : f32 to vector<1x256xf32>
    %88 = arith.maximumf %1, %87 : vector<1x256xf32>
    %89 = arith.subf %86, %88 : vector<1x256xf32>
    %cst_27 = arith.constant 0.000000e+00 : f32
    %90 = vector.broadcast %cst_27 : f32 to vector<1x256xf32>
    %91 = arith.maximumf %89, %90 : vector<1x256xf32>
    %92 = arith.mulf %84, %91 : vector<1x256xf32>
    %93 = arith.subf %73, %65 : f32
    %94 = arith.subf %77, %69 : f32
    %95 = arith.mulf %93, %94 : f32
    %96 = vector.broadcast %95 : f32 to vector<1x256xf32>
    %97 = arith.addf %10, %96 : vector<1x256xf32>
    %98 = arith.subf %97, %92 : vector<1x256xf32>
    %99 = arith.divf %92, %98 : vector<1x256xf32>
    %c8_i32 = arith.constant 8 : i32
    %100 = arith.addi %22, %c8_i32 : i32
    %c0_i32_28 = arith.constant 0 : i32
    %101 = arith.addi %100, %c0_i32_28 : i32
    %102 = arith.index_cast %101 : i32 to index
    %103 = memref.load %arg1[%102] : memref<24xf32, #tpu.memory_space<smem>>
    %c8_i32_29 = arith.constant 8 : i32
    %104 = arith.addi %22, %c8_i32_29 : i32
    %c1_i32_30 = arith.constant 1 : i32
    %105 = arith.addi %104, %c1_i32_30 : i32
    %106 = arith.index_cast %105 : i32 to index
    %107 = memref.load %arg1[%106] : memref<24xf32, #tpu.memory_space<smem>>
    %c8_i32_31 = arith.constant 8 : i32
    %108 = arith.addi %22, %c8_i32_31 : i32
    %c2_i32_32 = arith.constant 2 : i32
    %109 = arith.addi %108, %c2_i32_32 : i32
    %110 = arith.index_cast %109 : i32 to index
    %111 = memref.load %arg1[%110] : memref<24xf32, #tpu.memory_space<smem>>
    %c8_i32_33 = arith.constant 8 : i32
    %112 = arith.addi %22, %c8_i32_33 : i32
    %c3_i32_34 = arith.constant 3 : i32
    %113 = arith.addi %112, %c3_i32_34 : i32
    %114 = arith.index_cast %113 : i32 to index
    %115 = memref.load %arg1[%114] : memref<24xf32, #tpu.memory_space<smem>>
    %116 = vector.broadcast %111 : f32 to vector<1x256xf32>
    %117 = arith.minimumf %2, %116 : vector<1x256xf32>
    %118 = vector.broadcast %103 : f32 to vector<1x256xf32>
    %119 = arith.maximumf %0, %118 : vector<1x256xf32>
    %120 = arith.subf %117, %119 : vector<1x256xf32>
    %cst_35 = arith.constant 0.000000e+00 : f32
    %121 = vector.broadcast %cst_35 : f32 to vector<1x256xf32>
    %122 = arith.maximumf %120, %121 : vector<1x256xf32>
    %123 = vector.broadcast %115 : f32 to vector<1x256xf32>
    %124 = arith.minimumf %3, %123 : vector<1x256xf32>
    %125 = vector.broadcast %107 : f32 to vector<1x256xf32>
    %126 = arith.maximumf %1, %125 : vector<1x256xf32>
    %127 = arith.subf %124, %126 : vector<1x256xf32>
    %cst_36 = arith.constant 0.000000e+00 : f32
    %128 = vector.broadcast %cst_36 : f32 to vector<1x256xf32>
    %129 = arith.maximumf %127, %128 : vector<1x256xf32>
    %130 = arith.mulf %122, %129 : vector<1x256xf32>
    %131 = arith.subf %111, %103 : f32
    %132 = arith.subf %115, %107 : f32
    %133 = arith.mulf %131, %132 : f32
    %134 = vector.broadcast %133 : f32 to vector<1x256xf32>
    %135 = arith.addf %10, %134 : vector<1x256xf32>
    %136 = arith.subf %135, %130 : vector<1x256xf32>
    %137 = arith.divf %130, %136 : vector<1x256xf32>
    %c0_i32_37 = arith.constant 0 : i32
    %138 = vector.broadcast %c0_i32_37 : i32 to vector<1x256xi32>
    %139 = arith.cmpf ogt, %99, %61 : vector<1x256xf32>
    %140 = arith.select %139, %99, %61 : vector<1x256xi1>, vector<1x256xf32>
    %c1_i32_38 = arith.constant 1 : i32
    %141 = vector.broadcast %c1_i32_38 : i32 to vector<1x256xi32>
    %142 = arith.select %139, %141, %138 : vector<1x256xi1>, vector<1x256xi32>
    %143 = arith.cmpf ogt, %137, %140 : vector<1x256xf32>
    %144 = arith.select %143, %137, %140 : vector<1x256xi1>, vector<1x256xf32>
    %c2_i32_39 = arith.constant 2 : i32
    %145 = vector.broadcast %c2_i32_39 : i32 to vector<1x256xi32>
    %146 = arith.select %143, %145, %142 : vector<1x256xi1>, vector<1x256xi32>
    %cst_40 = arith.constant dense<0xFF800000> : vector<1xf32>
    %147 = vector.multi_reduction <maximumf>, %61, %cst_40 [1] : vector<1x256xf32> to vector<1xf32>
    %148 = vector.shape_cast %147 : vector<1xf32> to vector<1x1xf32>
    %149 = vector.broadcast %148 : vector<1x1xf32> to vector<1x256xf32>
    %150 = arith.cmpf oeq, %61, %149 : vector<1x256xf32>
    %c256_i32 = arith.constant 256 : i32
    %151 = vector.broadcast %c256_i32 : i32 to vector<1x256xi32>
    %152 = arith.select %150, %17, %151 : vector<1x256xi1>, vector<1x256xi32>
    %cst_41 = arith.constant dense<2147483647> : vector<1xi32>
    %153 = vector.multi_reduction <minsi>, %152, %cst_41 [1] : vector<1x256xi32> to vector<1xi32>
    %154 = vector.shape_cast %153 : vector<1xi32> to vector<1x1xi32>
    %155 = vector.broadcast %154 : vector<1x1xi32> to vector<1x256xi32>
    %156 = arith.cmpi eq, %17, %155 : vector<1x256xi32>
    %c0_i32_42 = arith.constant 0 : i32
    %157 = vector.broadcast %c0_i32_42 : i32 to vector<1x256xi32>
    %158 = arith.select %156, %157, %146 : vector<1x256xi1>, vector<1x256xi32>
    %cst_43 = arith.constant 1.000000e+00 : f32
    %159 = vector.broadcast %cst_43 : f32 to vector<1x256xf32>
    %160 = arith.select %156, %159, %144 : vector<1x256xi1>, vector<1x256xf32>
    %cst_44 = arith.constant dense<0xFF800000> : vector<1xf32>
    %161 = vector.multi_reduction <maximumf>, %99, %cst_44 [1] : vector<1x256xf32> to vector<1xf32>
    %162 = vector.shape_cast %161 : vector<1xf32> to vector<1x1xf32>
    %163 = vector.broadcast %162 : vector<1x1xf32> to vector<1x256xf32>
    %164 = arith.cmpf oeq, %99, %163 : vector<1x256xf32>
    %c256_i32_45 = arith.constant 256 : i32
    %165 = vector.broadcast %c256_i32_45 : i32 to vector<1x256xi32>
    %166 = arith.select %164, %17, %165 : vector<1x256xi1>, vector<1x256xi32>
    %cst_46 = arith.constant dense<2147483647> : vector<1xi32>
    %167 = vector.multi_reduction <minsi>, %166, %cst_46 [1] : vector<1x256xi32> to vector<1xi32>
    %168 = vector.shape_cast %167 : vector<1xi32> to vector<1x1xi32>
    %169 = vector.broadcast %168 : vector<1x1xi32> to vector<1x256xi32>
    %170 = arith.cmpi eq, %17, %169 : vector<1x256xi32>
    %c1_i32_47 = arith.constant 1 : i32
    %171 = vector.broadcast %c1_i32_47 : i32 to vector<1x256xi32>
    %172 = arith.select %170, %171, %158 : vector<1x256xi1>, vector<1x256xi32>
    %cst_48 = arith.constant 1.000000e+00 : f32
    %173 = vector.broadcast %cst_48 : f32 to vector<1x256xf32>
    %174 = arith.select %170, %173, %160 : vector<1x256xi1>, vector<1x256xf32>
    %cst_49 = arith.constant dense<0xFF800000> : vector<1xf32>
    %175 = vector.multi_reduction <maximumf>, %137, %cst_49 [1] : vector<1x256xf32> to vector<1xf32>
    %176 = vector.shape_cast %175 : vector<1xf32> to vector<1x1xf32>
    %177 = vector.broadcast %176 : vector<1x1xf32> to vector<1x256xf32>
    %178 = arith.cmpf oeq, %137, %177 : vector<1x256xf32>
    %c256_i32_50 = arith.constant 256 : i32
    %179 = vector.broadcast %c256_i32_50 : i32 to vector<1x256xi32>
    %180 = arith.select %178, %17, %179 : vector<1x256xi1>, vector<1x256xi32>
    %cst_51 = arith.constant dense<2147483647> : vector<1xi32>
    %181 = vector.multi_reduction <minsi>, %180, %cst_51 [1] : vector<1x256xi32> to vector<1xi32>
    %182 = vector.shape_cast %181 : vector<1xi32> to vector<1x1xi32>
    %183 = vector.broadcast %182 : vector<1x1xi32> to vector<1x256xi32>
    %184 = arith.cmpi eq, %17, %183 : vector<1x256xi32>
    %c2_i32_52 = arith.constant 2 : i32
    %185 = vector.broadcast %c2_i32_52 : i32 to vector<1x256xi32>
    %186 = arith.select %184, %185, %172 : vector<1x256xi1>, vector<1x256xi32>
    %cst_53 = arith.constant 1.000000e+00 : f32
    %187 = vector.broadcast %cst_53 : f32 to vector<1x256xf32>
    %188 = arith.select %184, %187, %174 : vector<1x256xi1>, vector<1x256xf32>
    %c0_i32_54 = arith.constant 0 : i32
    %189 = vector.broadcast %c0_i32_54 : i32 to vector<1x256xi32>
    %c0_i32_55 = arith.constant 0 : i32
    %190 = vector.broadcast %c0_i32_55 : i32 to vector<1x256xi32>
    %191 = arith.cmpi eq, %186, %190 : vector<1x256xi32>
    %c0_i32_56 = arith.constant 0 : i32
    %192 = arith.addi %23, %c0_i32_56 : i32
    %193 = arith.index_cast %192 : i32 to index
    %194 = memref.load %arg2[%193] : memref<6xi32, #tpu.memory_space<smem>>
    %195 = vector.broadcast %194 : i32 to vector<1x256xi32>
    %196 = arith.select %191, %195, %189 : vector<1x256xi1>, vector<1x256xi32>
    %c1_i32_57 = arith.constant 1 : i32
    %197 = vector.broadcast %c1_i32_57 : i32 to vector<1x256xi32>
    %198 = arith.cmpi eq, %186, %197 : vector<1x256xi32>
    %c1_i32_58 = arith.constant 1 : i32
    %199 = arith.addi %23, %c1_i32_58 : i32
    %200 = arith.index_cast %199 : i32 to index
    %201 = memref.load %arg2[%200] : memref<6xi32, #tpu.memory_space<smem>>
    %202 = vector.broadcast %201 : i32 to vector<1x256xi32>
    %203 = arith.select %198, %202, %196 : vector<1x256xi1>, vector<1x256xi32>
    %c2_i32_59 = arith.constant 2 : i32
    %204 = vector.broadcast %c2_i32_59 : i32 to vector<1x256xi32>
    %205 = arith.cmpi eq, %186, %204 : vector<1x256xi32>
    %c2_i32_60 = arith.constant 2 : i32
    %206 = arith.addi %23, %c2_i32_60 : i32
    %207 = arith.index_cast %206 : i32 to index
    %208 = memref.load %arg2[%207] : memref<6xi32, #tpu.memory_space<smem>>
    %209 = vector.broadcast %208 : i32 to vector<1x256xi32>
    %210 = arith.select %205, %209, %203 : vector<1x256xi1>, vector<1x256xi32>
    %cst_61 = arith.constant 5.000000e-01 : f32
    %211 = vector.broadcast %cst_61 : f32 to vector<1x256xf32>
    %212 = arith.cmpf olt, %188, %211 : vector<1x256xf32>
    %c0_i32_62 = arith.constant 0 : i32
    %213 = vector.broadcast %c0_i32_62 : i32 to vector<1x256xi32>
    %214 = arith.select %212, %213, %210 : vector<1x256xi1>, vector<1x256xi32>
    %c0_i32_63 = arith.constant 0 : i32
    %215 = vector.broadcast %c0_i32_63 : i32 to vector<1x256xi32>
    %216 = arith.cmpi ne, %214, %215 : vector<1x256xi32>
    %cst_64 = arith.constant 0.000000e+00 : f32
    %217 = vector.broadcast %cst_64 : f32 to vector<1x256xf32>
    %cst_65 = arith.constant 0.000000e+00 : f32
    %218 = vector.broadcast %cst_65 : f32 to vector<1x256xf32>
    %cst_66 = arith.constant 0.000000e+00 : f32
    %219 = vector.broadcast %cst_66 : f32 to vector<1x256xf32>
    %cst_67 = arith.constant 0.000000e+00 : f32
    %220 = vector.broadcast %cst_67 : f32 to vector<1x256xf32>
    %c0_i32_68 = arith.constant 0 : i32
    %221 = vector.broadcast %c0_i32_68 : i32 to vector<1x256xi32>
    %222 = arith.cmpi eq, %186, %221 : vector<1x256xi32>
    %223 = vector.broadcast %27 : f32 to vector<1x256xf32>
    %224 = arith.select %222, %223, %217 : vector<1x256xi1>, vector<1x256xf32>
    %225 = vector.broadcast %31 : f32 to vector<1x256xf32>
    %226 = arith.select %222, %225, %218 : vector<1x256xi1>, vector<1x256xf32>
    %227 = vector.broadcast %35 : f32 to vector<1x256xf32>
    %228 = arith.select %222, %227, %219 : vector<1x256xi1>, vector<1x256xf32>
    %229 = vector.broadcast %39 : f32 to vector<1x256xf32>
    %230 = arith.select %222, %229, %220 : vector<1x256xi1>, vector<1x256xf32>
    %c1_i32_69 = arith.constant 1 : i32
    %231 = vector.broadcast %c1_i32_69 : i32 to vector<1x256xi32>
    %232 = arith.cmpi eq, %186, %231 : vector<1x256xi32>
    %233 = vector.broadcast %65 : f32 to vector<1x256xf32>
    %234 = arith.select %232, %233, %224 : vector<1x256xi1>, vector<1x256xf32>
    %235 = vector.broadcast %69 : f32 to vector<1x256xf32>
    %236 = arith.select %232, %235, %226 : vector<1x256xi1>, vector<1x256xf32>
    %237 = vector.broadcast %73 : f32 to vector<1x256xf32>
    %238 = arith.select %232, %237, %228 : vector<1x256xi1>, vector<1x256xf32>
    %239 = vector.broadcast %77 : f32 to vector<1x256xf32>
    %240 = arith.select %232, %239, %230 : vector<1x256xi1>, vector<1x256xf32>
    %c2_i32_70 = arith.constant 2 : i32
    %241 = vector.broadcast %c2_i32_70 : i32 to vector<1x256xi32>
    %242 = arith.cmpi eq, %186, %241 : vector<1x256xi32>
    %243 = vector.broadcast %103 : f32 to vector<1x256xf32>
    %244 = arith.select %242, %243, %234 : vector<1x256xi1>, vector<1x256xf32>
    %245 = vector.broadcast %107 : f32 to vector<1x256xf32>
    %246 = arith.select %242, %245, %236 : vector<1x256xi1>, vector<1x256xf32>
    %247 = vector.broadcast %111 : f32 to vector<1x256xf32>
    %248 = arith.select %242, %247, %238 : vector<1x256xi1>, vector<1x256xf32>
    %249 = vector.broadcast %115 : f32 to vector<1x256xf32>
    %250 = arith.select %242, %249, %240 : vector<1x256xi1>, vector<1x256xf32>
    %251 = arith.addf %244, %248 : vector<1x256xf32>
    %cst_71 = arith.constant 5.000000e-01 : f32
    %252 = vector.broadcast %cst_71 : f32 to vector<1x256xf32>
    %253 = arith.mulf %251, %252 : vector<1x256xf32>
    %254 = arith.subf %253, %4 : vector<1x256xf32>
    %cst_72 = arith.constant 1.000000e+01 : f32
    %255 = vector.broadcast %cst_72 : f32 to vector<1x256xf32>
    %256 = arith.mulf %254, %255 : vector<1x256xf32>
    %257 = arith.mulf %256, %12 : vector<1x256xf32>
    %258 = arith.addf %246, %250 : vector<1x256xf32>
    %cst_73 = arith.constant 5.000000e-01 : f32
    %259 = vector.broadcast %cst_73 : f32 to vector<1x256xf32>
    %260 = arith.mulf %258, %259 : vector<1x256xf32>
    %261 = arith.subf %260, %5 : vector<1x256xf32>
    %cst_74 = arith.constant 1.000000e+01 : f32
    %262 = vector.broadcast %cst_74 : f32 to vector<1x256xf32>
    %263 = arith.mulf %261, %262 : vector<1x256xf32>
    %264 = arith.mulf %263, %14 : vector<1x256xf32>
    %265 = arith.subf %248, %244 : vector<1x256xf32>
    %266 = math.log %265 : vector<1x256xf32>
    %267 = arith.subf %266, %15 : vector<1x256xf32>
    %cst_75 = arith.constant 5.000000e+00 : f32
    %268 = vector.broadcast %cst_75 : f32 to vector<1x256xf32>
    %269 = arith.mulf %267, %268 : vector<1x256xf32>
    %270 = arith.subf %250, %246 : vector<1x256xf32>
    %271 = math.log %270 : vector<1x256xf32>
    %272 = arith.subf %271, %16 : vector<1x256xf32>
    %cst_76 = arith.constant 5.000000e+00 : f32
    %273 = vector.broadcast %cst_76 : f32 to vector<1x256xf32>
    %274 = arith.mulf %272, %273 : vector<1x256xf32>
    %275 = arith.index_cast %c0_i32 : i32 to index
    %c0_77 = arith.constant 0 : index
    %c0_78 = arith.constant 0 : index
    %276 = vector.load %arg4[%275, %c0_77, %c0_78] : memref<1x4x256xf32, #tpu.memory_space<vmem>>, vector<1x4x256xf32>
    %277 = vector.shape_cast %276 : vector<1x4x256xf32> to vector<4x256xf32>
    %278 = vector.extract_strided_slice %277 {offsets = [0, 0], sizes = [1, 256], strides = [1, 1]} : vector<4x256xf32> to vector<1x256xf32>
    %279 = arith.subf %278, %257 : vector<1x256xf32>
    %280 = math.absf %279 : vector<1x256xf32>
    %cst_79 = arith.constant 1.000000e+00 : f32
    %281 = vector.broadcast %cst_79 : f32 to vector<1x256xf32>
    %282 = arith.cmpf olt, %280, %281 : vector<1x256xf32>
    %cst_80 = arith.constant 5.000000e-01 : f32
    %283 = vector.broadcast %cst_80 : f32 to vector<1x256xf32>
    %284 = arith.mulf %283, %280 : vector<1x256xf32>
    %285 = arith.mulf %284, %280 : vector<1x256xf32>
    %cst_81 = arith.constant 5.000000e-01 : f32
    %286 = vector.broadcast %cst_81 : f32 to vector<1x256xf32>
    %287 = arith.subf %280, %286 : vector<1x256xf32>
    %288 = arith.select %282, %285, %287 : vector<1x256xi1>, vector<1x256xf32>
    %289 = vector.extract_strided_slice %277 {offsets = [1, 0], sizes = [1, 256], strides = [1, 1]} : vector<4x256xf32> to vector<1x256xf32>
    %290 = arith.subf %289, %264 : vector<1x256xf32>
    %291 = math.absf %290 : vector<1x256xf32>
    %cst_82 = arith.constant 1.000000e+00 : f32
    %292 = vector.broadcast %cst_82 : f32 to vector<1x256xf32>
    %293 = arith.cmpf olt, %291, %292 : vector<1x256xf32>
    %cst_83 = arith.constant 5.000000e-01 : f32
    %294 = vector.broadcast %cst_83 : f32 to vector<1x256xf32>
    %295 = arith.mulf %294, %291 : vector<1x256xf32>
    %296 = arith.mulf %295, %291 : vector<1x256xf32>
    %cst_84 = arith.constant 5.000000e-01 : f32
    %297 = vector.broadcast %cst_84 : f32 to vector<1x256xf32>
    %298 = arith.subf %291, %297 : vector<1x256xf32>
    %299 = arith.select %293, %296, %298 : vector<1x256xi1>, vector<1x256xf32>
    %300 = arith.addf %288, %299 : vector<1x256xf32>
    %301 = vector.extract_strided_slice %277 {offsets = [2, 0], sizes = [1, 256], strides = [1, 1]} : vector<4x256xf32> to vector<1x256xf32>
    %302 = arith.subf %301, %269 : vector<1x256xf32>
    %303 = math.absf %302 : vector<1x256xf32>
    %cst_85 = arith.constant 1.000000e+00 : f32
    %304 = vector.broadcast %cst_85 : f32 to vector<1x256xf32>
    %305 = arith.cmpf olt, %303, %304 : vector<1x256xf32>
    %cst_86 = arith.constant 5.000000e-01 : f32
    %306 = vector.broadcast %cst_86 : f32 to vector<1x256xf32>
    %307 = arith.mulf %306, %303 : vector<1x256xf32>
    %308 = arith.mulf %307, %303 : vector<1x256xf32>
    %cst_87 = arith.constant 5.000000e-01 : f32
    %309 = vector.broadcast %cst_87 : f32 to vector<1x256xf32>
    %310 = arith.subf %303, %309 : vector<1x256xf32>
    %311 = arith.select %305, %308, %310 : vector<1x256xi1>, vector<1x256xf32>
    %312 = arith.addf %300, %311 : vector<1x256xf32>
    %313 = vector.extract_strided_slice %277 {offsets = [3, 0], sizes = [1, 256], strides = [1, 1]} : vector<4x256xf32> to vector<1x256xf32>
    %314 = arith.subf %313, %274 : vector<1x256xf32>
    %315 = math.absf %314 : vector<1x256xf32>
    %cst_88 = arith.constant 1.000000e+00 : f32
    %316 = vector.broadcast %cst_88 : f32 to vector<1x256xf32>
    %317 = arith.cmpf olt, %315, %316 : vector<1x256xf32>
    %cst_89 = arith.constant 5.000000e-01 : f32
    %318 = vector.broadcast %cst_89 : f32 to vector<1x256xf32>
    %319 = arith.mulf %318, %315 : vector<1x256xf32>
    %320 = arith.mulf %319, %315 : vector<1x256xf32>
    %cst_90 = arith.constant 5.000000e-01 : f32
    %321 = vector.broadcast %cst_90 : f32 to vector<1x256xf32>
    %322 = arith.subf %315, %321 : vector<1x256xf32>
    %323 = arith.select %317, %320, %322 : vector<1x256xi1>, vector<1x256xf32>
    %324 = arith.addf %312, %323 : vector<1x256xf32>
    %cst_91 = arith.constant 0.000000e+00 : f32
    %325 = vector.broadcast %cst_91 : f32 to vector<1x256xf32>
    %326 = arith.select %216, %324, %325 : vector<1x256xi1>, vector<1x256xf32>
    %cst_92 = arith.constant dense<0.000000e+00> : vector<1xf32>
    %327 = vector.multi_reduction <add>, %326, %cst_92 [1] : vector<1x256xf32> to vector<1xf32>
    %328 = vector.shape_cast %327 : vector<1xf32> to vector<1x1xf32>
    %329 = arith.addf %19, %328 : vector<1x1xf32>
    %330 = arith.index_cast %c0_i32 : i32 to index
    %c0_93 = arith.constant 0 : index
    %c0_94 = arith.constant 0 : index
    %331 = vector.load %arg5[%330, %c0_93, %c0_94] : memref<1x8x256xf32, #tpu.memory_space<vmem>>, vector<1x8x256xf32>
    %332 = vector.shape_cast %331 : vector<1x8x256xf32> to vector<8x256xf32>
    %cst_95 = arith.constant dense<0xFF800000> : vector<256xf32>
    %333 = vector.multi_reduction <maximumf>, %332, %cst_95 [0] : vector<8x256xf32> to vector<256xf32>
    %334 = vector.shape_cast %333 : vector<256xf32> to vector<1x256xf32>
    %335 = vector.broadcast %334 : vector<1x256xf32> to vector<8x256xf32>
    %336 = arith.subf %332, %335 : vector<8x256xf32>
    %337 = math.exp %336 : vector<8x256xf32>
    %cst_96 = arith.constant dense<0.000000e+00> : vector<256xf32>
    %338 = vector.multi_reduction <add>, %337, %cst_96 [0] : vector<8x256xf32> to vector<256xf32>
    %339 = vector.shape_cast %338 : vector<256xf32> to vector<1x256xf32>
    %340 = vector.broadcast %214 : vector<1x256xi32> to vector<8x256xi32>
    %341 = arith.cmpi eq, %18, %340 : vector<8x256xi32>
    %cst_97 = arith.constant 0.000000e+00 : f32
    %342 = vector.broadcast %cst_97 : f32 to vector<8x256xf32>
    %343 = arith.select %341, %332, %342 : vector<8x256xi1>, vector<8x256xf32>
    %cst_98 = arith.constant dense<0.000000e+00> : vector<256xf32>
    %344 = vector.multi_reduction <add>, %343, %cst_98 [0] : vector<8x256xf32> to vector<256xf32>
    %345 = vector.shape_cast %344 : vector<256xf32> to vector<1x256xf32>
    %346 = math.log %339 : vector<1x256xf32>
    %347 = arith.addf %334, %346 : vector<1x256xf32>
    %348 = arith.subf %347, %345 : vector<1x256xf32>
    %349 = arith.extui %216 : vector<1x256xi1> to vector<1x256xi32>
    %350 = arith.sitofp %349 : vector<1x256xi32> to vector<1x256xf32>
    %cst_99 = arith.constant dense<0.000000e+00> : vector<1xf32>
    %351 = vector.multi_reduction <add>, %350, %cst_99 [1] : vector<1x256xf32> to vector<1xf32>
    %352 = vector.shape_cast %351 : vector<1xf32> to vector<1x1xf32>
    %cst_100 = arith.constant 0.000000e+00 : f32
    %353 = vector.broadcast %cst_100 : f32 to vector<1x256xf32>
    %354 = arith.select %216, %348, %353 : vector<1x256xi1>, vector<1x256xf32>
    %cst_101 = arith.constant dense<0.000000e+00> : vector<1xf32>
    %355 = vector.multi_reduction <add>, %354, %cst_101 [1] : vector<1x256xf32> to vector<1xf32>
    %356 = vector.shape_cast %355 : vector<1xf32> to vector<1x1xf32>
    %357 = arith.addf %19, %356 : vector<1x1xf32>
    %358 = arith.addf %19, %352 : vector<1x1xf32>
    %cst_102 = arith.constant 0.000000e+00 : f32
    %359 = vector.broadcast %cst_102 : f32 to vector<1x256xf32>
    %360 = arith.select %216, %359, %348 : vector<1x256xi1>, vector<1x256xf32>
    %361 = vector.shape_cast %360 : vector<1x256xf32> to vector<256x1xf32>
    %c0_103 = arith.constant 0 : index
    %c0_104 = arith.constant 0 : index
    %362 = vector.load %arg7[%c0_103, %c0_104] : memref<256x1xf32, #tpu.memory_space<vmem>>, vector<256x1xf32>
    tpu.vector_store %arg7[%c0_103, %c0_104], %361 {strides = array<i32>} : memref<256x1xf32, #tpu.memory_space<vmem>>, vector<256x1xf32>,
    %cst_105 = arith.constant 3.000000e+00 : f32
    %363 = vector.broadcast %cst_105 : f32 to vector<1x1xf32>
    %364 = arith.mulf %363, %352 : vector<1x1xf32>
    %cst_106 = arith.constant 0.000000e+00 : f32
    %365 = vector.broadcast %cst_106 : f32 to vector<1x1xf32>
    %c0_i32_107 = arith.constant 0 : i32
    %c32_i32 = arith.constant 32 : i32
    %366 = arith.muli %c0_i32_107, %c32_i32 : i32
    %367 = tpu.assume_multiple %366, 32 : i32
    %368 = arith.index_cast %367 : i32 to index
    %c0_108 = arith.constant 0 : index
    %369 = vector.load %arg7[%368, %c0_108] : memref<256x1xf32, #tpu.memory_space<vmem>>, vector<32x1xf32>
    %c32_i32_109 = arith.constant 32 : i32
    %370 = arith.muli %c0_i32_107, %c32_i32_109 : i32
    %371 = tpu.iota {dimensions = array<i32: 0>} : vector<32x1xi32>
    %372 = vector.broadcast %370 : i32 to vector<32x1xi32>
    %373 = arith.addi %372, %371 : vector<32x1xi32>
    %374 = vector.broadcast %360 : vector<1x256xf32> to vector<32x256xf32>
    %375 = vector.broadcast %369 : vector<32x1xf32> to vector<32x256xf32>
    %376 = arith.cmpf ogt, %374, %375 : vector<32x256xf32>
    %377 = vector.broadcast %360 : vector<1x256xf32> to vector<32x256xf32>
    %378 = vector.broadcast %369 : vector<32x1xf32> to vector<32x256xf32>
    %379 = arith.cmpf oeq, %377, %378 : vector<32x256xf32>
    %380 = vector.broadcast %17 : vector<1x256xi32> to vector<32x256xi32>
    %381 = vector.broadcast %373 : vector<32x1xi32> to vector<32x256xi32>
    %382 = arith.cmpi slt, %380, %381 : vector<32x256xi32>
    %383 = arith.andi %379, %382 : vector<32x256xi1>
    %384 = arith.ori %376, %383 : vector<32x256xi1>
    %385 = arith.extui %384 : vector<32x256xi1> to vector<32x256xi32>
    %386 = arith.sitofp %385 : vector<32x256xi32> to vector<32x256xf32>
    %cst_110 = arith.constant dense<0.000000e+00> : vector<32xf32>
    %387 = vector.multi_reduction <add>, %386, %cst_110 [1] : vector<32x256xf32> to vector<32xf32>
    %388 = vector.shape_cast %387 : vector<32xf32> to vector<32x1xf32>
    %389 = vector.broadcast %364 : vector<1x1xf32> to vector<32x1xf32>
    %390 = arith.cmpf olt, %388, %389 : vector<32x1xf32>
    %cst_111 = arith.constant 0.000000e+00 : f32
    %391 = vector.broadcast %cst_111 : f32 to vector<32x1xf32>
    %392 = arith.select %390, %369, %391 : vector<32x1xi1>, vector<32x1xf32>
    %cst_112 = arith.constant dense<0.000000e+00> : vector<1xf32>
    %393 = vector.multi_reduction <add>, %392, %cst_112 [0] : vector<32x1xf32> to vector<1xf32>
    %394 = vector.shape_cast %393 : vector<1xf32> to vector<1x1xf32>
    %395 = arith.addf %365, %394 : vector<1x1xf32>
    %c1_i32_113 = arith.constant 1 : i32
    %c32_i32_114 = arith.constant 32 : i32
    %396 = arith.muli %c1_i32_113, %c32_i32_114 : i32
    %397 = tpu.assume_multiple %396, 32 : i32
    %398 = arith.index_cast %397 : i32 to index
    %c0_115 = arith.constant 0 : index
    %399 = vector.load %arg7[%398, %c0_115] : memref<256x1xf32, #tpu.memory_space<vmem>>, vector<32x1xf32>
    %c32_i32_116 = arith.constant 32 : i32
    %400 = arith.muli %c1_i32_113, %c32_i32_116 : i32
    %401 = tpu.iota {dimensions = array<i32: 0>} : vector<32x1xi32>
    %402 = vector.broadcast %400 : i32 to vector<32x1xi32>
    %403 = arith.addi %402, %401 : vector<32x1xi32>
    %404 = vector.broadcast %360 : vector<1x256xf32> to vector<32x256xf32>
    %405 = vector.broadcast %399 : vector<32x1xf32> to vector<32x256xf32>
    %406 = arith.cmpf ogt, %404, %405 : vector<32x256xf32>
    %407 = vector.broadcast %360 : vector<1x256xf32> to vector<32x256xf32>
    %408 = vector.broadcast %399 : vector<32x1xf32> to vector<32x256xf32>
    %409 = arith.cmpf oeq, %407, %408 : vector<32x256xf32>
    %410 = vector.broadcast %17 : vector<1x256xi32> to vector<32x256xi32>
    %411 = vector.broadcast %403 : vector<32x1xi32> to vector<32x256xi32>
    %412 = arith.cmpi slt, %410, %411 : vector<32x256xi32>
    %413 = arith.andi %409, %412 : vector<32x256xi1>
    %414 = arith.ori %406, %413 : vector<32x256xi1>
    %415 = arith.extui %414 : vector<32x256xi1> to vector<32x256xi32>
    %416 = arith.sitofp %415 : vector<32x256xi32> to vector<32x256xf32>
    %cst_117 = arith.constant dense<0.000000e+00> : vector<32xf32>
    %417 = vector.multi_reduction <add>, %416, %cst_117 [1] : vector<32x256xf32> to vector<32xf32>
    %418 = vector.shape_cast %417 : vector<32xf32> to vector<32x1xf32>
    %419 = vector.broadcast %364 : vector<1x1xf32> to vector<32x1xf32>
    %420 = arith.cmpf olt, %418, %419 : vector<32x1xf32>
    %cst_118 = arith.constant 0.000000e+00 : f32
    %421 = vector.broadcast %cst_118 : f32 to vector<32x1xf32>
    %422 = arith.select %420, %399, %421 : vector<32x1xi1>, vector<32x1xf32>
    %cst_119 = arith.constant dense<0.000000e+00> : vector<1xf32>
    %423 = vector.multi_reduction <add>, %422, %cst_119 [0] : vector<32x1xf32> to vector<1xf32>
    %424 = vector.shape_cast %423 : vector<1xf32> to vector<1x1xf32>
    %425 = arith.addf %395, %424 : vector<1x1xf32>
    %c2_i32_120 = arith.constant 2 : i32
    %c32_i32_121 = arith.constant 32 : i32
    %426 = arith.muli %c2_i32_120, %c32_i32_121 : i32
    %427 = tpu.assume_multiple %426, 32 : i32
    %428 = arith.index_cast %427 : i32 to index
    %c0_122 = arith.constant 0 : index
    %429 = vector.load %arg7[%428, %c0_122] : memref<256x1xf32, #tpu.memory_space<vmem>>, vector<32x1xf32>
    %c32_i32_123 = arith.constant 32 : i32
    %430 = arith.muli %c2_i32_120, %c32_i32_123 : i32
    %431 = tpu.iota {dimensions = array<i32: 0>} : vector<32x1xi32>
    %432 = vector.broadcast %430 : i32 to vector<32x1xi32>
    %433 = arith.addi %432, %431 : vector<32x1xi32>
    %434 = vector.broadcast %360 : vector<1x256xf32> to vector<32x256xf32>
    %435 = vector.broadcast %429 : vector<32x1xf32> to vector<32x256xf32>
    %436 = arith.cmpf ogt, %434, %435 : vector<32x256xf32>
    %437 = vector.broadcast %360 : vector<1x256xf32> to vector<32x256xf32>
    %438 = vector.broadcast %429 : vector<32x1xf32> to vector<32x256xf32>
    %439 = arith.cmpf oeq, %437, %438 : vector<32x256xf32>
    %440 = vector.broadcast %17 : vector<1x256xi32> to vector<32x256xi32>
    %441 = vector.broadcast %433 : vector<32x1xi32> to vector<32x256xi32>
    %442 = arith.cmpi slt, %440, %441 : vector<32x256xi32>
    %443 = arith.andi %439, %442 : vector<32x256xi1>
    %444 = arith.ori %436, %443 : vector<32x256xi1>
    %445 = arith.extui %444 : vector<32x256xi1> to vector<32x256xi32>
    %446 = arith.sitofp %445 : vector<32x256xi32> to vector<32x256xf32>
    %cst_124 = arith.constant dense<0.000000e+00> : vector<32xf32>
    %447 = vector.multi_reduction <add>, %446, %cst_124 [1] : vector<32x256xf32> to vector<32xf32>
    %448 = vector.shape_cast %447 : vector<32xf32> to vector<32x1xf32>
    %449 = vector.broadcast %364 : vector<1x1xf32> to vector<32x1xf32>
    %450 = arith.cmpf olt, %448, %449 : vector<32x1xf32>
    %cst_125 = arith.constant 0.000000e+00 : f32
    %451 = vector.broadcast %cst_125 : f32 to vector<32x1xf32>
    %452 = arith.select %450, %429, %451 : vector<32x1xi1>, vector<32x1xf32>
    %cst_126 = arith.constant dense<0.000000e+00> : vector<1xf32>
    %453 = vector.multi_reduction <add>, %452, %cst_126 [0] : vector<32x1xf32> to vector<1xf32>
    %454 = vector.shape_cast %453 : vector<1xf32> to vector<1x1xf32>
    %455 = arith.addf %425, %454 : vector<1x1xf32>
    %c3_i32_127 = arith.constant 3 : i32
    %c32_i32_128 = arith.constant 32 : i32
    %456 = arith.muli %c3_i32_127, %c32_i32_128 : i32
    %457 = tpu.assume_multiple %456, 32 : i32
    %458 = arith.index_cast %457 : i32 to index
    %c0_129 = arith.constant 0 : index
    %459 = vector.load %arg7[%458, %c0_129] : memref<256x1xf32, #tpu.memory_space<vmem>>, vector<32x1xf32>
    %c32_i32_130 = arith.constant 32 : i32
    %460 = arith.muli %c3_i32_127, %c32_i32_130 : i32
    %461 = tpu.iota {dimensions = array<i32: 0>} : vector<32x1xi32>
    %462 = vector.broadcast %460 : i32 to vector<32x1xi32>
    %463 = arith.addi %462, %461 : vector<32x1xi32>
    %464 = vector.broadcast %360 : vector<1x256xf32> to vector<32x256xf32>
    %465 = vector.broadcast %459 : vector<32x1xf32> to vector<32x256xf32>
    %466 = arith.cmpf ogt, %464, %465 : vector<32x256xf32>
    %467 = vector.broadcast %360 : vector<1x256xf32> to vector<32x256xf32>
    %468 = vector.broadcast %459 : vector<32x1xf32> to vector<32x256xf32>
    %469 = arith.cmpf oeq, %467, %468 : vector<32x256xf32>
    %470 = vector.broadcast %17 : vector<1x256xi32> to vector<32x256xi32>
    %471 = vector.broadcast %463 : vector<32x1xi32> to vector<32x256xi32>
    %472 = arith.cmpi slt, %470, %471 : vector<32x256xi32>
    %473 = arith.andi %469, %472 : vector<32x256xi1>
    %474 = arith.ori %466, %473 : vector<32x256xi1>
    %475 = arith.extui %474 : vector<32x256xi1> to vector<32x256xi32>
    %476 = arith.sitofp %475 : vector<32x256xi32> to vector<32x256xf32>
    %cst_131 = arith.constant dense<0.000000e+00> : vector<32xf32>
    %477 = vector.multi_reduction <add>, %476, %cst_131 [1] : vector<32x256xf32> to vector<32xf32>
    %478 = vector.shape_cast %477 : vector<32xf32> to vector<32x1xf32>
    %479 = vector.broadcast %364 : vector<1x1xf32> to vector<32x1xf32>
    %480 = arith.cmpf olt, %478, %479 : vector<32x1xf32>
    %cst_132 = arith.constant 0.000000e+00 : f32
    %481 = vector.broadcast %cst_132 : f32 to vector<32x1xf32>
    %482 = arith.select %480, %459, %481 : vector<32x1xi1>, vector<32x1xf32>
    %cst_133 = arith.constant dense<0.000000e+00> : vector<1xf32>
    %483 = vector.multi_reduction <add>, %482, %cst_133 [0] : vector<32x1xf32> to vector<1xf32>
    %484 = vector.shape_cast %483 : vector<1xf32> to vector<1x1xf32>
    %485 = arith.addf %455, %484 : vector<1x1xf32>
    %c4_i32_134 = arith.constant 4 : i32
    %c32_i32_135 = arith.constant 32 : i32
    %486 = arith.muli %c4_i32_134, %c32_i32_135 : i32
    %487 = tpu.assume_multiple %486, 32 : i32
    %488 = arith.index_cast %487 : i32 to index
    %c0_136 = arith.constant 0 : index
    %489 = vector.load %arg7[%488, %c0_136] : memref<256x1xf32, #tpu.memory_space<vmem>>, vector<32x1xf32>
    %c32_i32_137 = arith.constant 32 : i32
    %490 = arith.muli %c4_i32_134, %c32_i32_137 : i32
    %491 = tpu.iota {dimensions = array<i32: 0>} : vector<32x1xi32>
    %492 = vector.broadcast %490 : i32 to vector<32x1xi32>
    %493 = arith.addi %492, %491 : vector<32x1xi32>
    %494 = vector.broadcast %360 : vector<1x256xf32> to vector<32x256xf32>
    %495 = vector.broadcast %489 : vector<32x1xf32> to vector<32x256xf32>
    %496 = arith.cmpf ogt, %494, %495 : vector<32x256xf32>
    %497 = vector.broadcast %360 : vector<1x256xf32> to vector<32x256xf32>
    %498 = vector.broadcast %489 : vector<32x1xf32> to vector<32x256xf32>
    %499 = arith.cmpf oeq, %497, %498 : vector<32x256xf32>
    %500 = vector.broadcast %17 : vector<1x256xi32> to vector<32x256xi32>
    %501 = vector.broadcast %493 : vector<32x1xi32> to vector<32x256xi32>
    %502 = arith.cmpi slt, %500, %501 : vector<32x256xi32>
    %503 = arith.andi %499, %502 : vector<32x256xi1>
    %504 = arith.ori %496, %503 : vector<32x256xi1>
    %505 = arith.extui %504 : vector<32x256xi1> to vector<32x256xi32>
    %506 = arith.sitofp %505 : vector<32x256xi32> to vector<32x256xf32>
    %cst_138 = arith.constant dense<0.000000e+00> : vector<32xf32>
    %507 = vector.multi_reduction <add>, %506, %cst_138 [1] : vector<32x256xf32> to vector<32xf32>
    %508 = vector.shape_cast %507 : vector<32xf32> to vector<32x1xf32>
    %509 = vector.broadcast %364 : vector<1x1xf32> to vector<32x1xf32>
    %510 = arith.cmpf olt, %508, %509 : vector<32x1xf32>
    %cst_139 = arith.constant 0.000000e+00 : f32
    %511 = vector.broadcast %cst_139 : f32 to vector<32x1xf32>
    %512 = arith.select %510, %489, %511 : vector<32x1xi1>, vector<32x1xf32>
    %cst_140 = arith.constant dense<0.000000e+00> : vector<1xf32>
    %513 = vector.multi_reduction <add>, %512, %cst_140 [0] : vector<32x1xf32> to vector<1xf32>
    %514 = vector.shape_cast %513 : vector<1xf32> to vector<1x1xf32>
    %515 = arith.addf %485, %514 : vector<1x1xf32>
    %c5_i32 = arith.constant 5 : i32
    %c32_i32_141 = arith.constant 32 : i32
    %516 = arith.muli %c5_i32, %c32_i32_141 : i32
    %517 = tpu.assume_multiple %516, 32 : i32
    %518 = arith.index_cast %517 : i32 to index
    %c0_142 = arith.constant 0 : index
    %519 = vector.load %arg7[%518, %c0_142] : memref<256x1xf32, #tpu.memory_space<vmem>>, vector<32x1xf32>
    %c32_i32_143 = arith.constant 32 : i32
    %520 = arith.muli %c5_i32, %c32_i32_143 : i32
    %521 = tpu.iota {dimensions = array<i32: 0>} : vector<32x1xi32>
    %522 = vector.broadcast %520 : i32 to vector<32x1xi32>
    %523 = arith.addi %522, %521 : vector<32x1xi32>
    %524 = vector.broadcast %360 : vector<1x256xf32> to vector<32x256xf32>
    %525 = vector.broadcast %519 : vector<32x1xf32> to vector<32x256xf32>
    %526 = arith.cmpf ogt, %524, %525 : vector<32x256xf32>
    %527 = vector.broadcast %360 : vector<1x256xf32> to vector<32x256xf32>
    %528 = vector.broadcast %519 : vector<32x1xf32> to vector<32x256xf32>
    %529 = arith.cmpf oeq, %527, %528 : vector<32x256xf32>
    %530 = vector.broadcast %17 : vector<1x256xi32> to vector<32x256xi32>
    %531 = vector.broadcast %523 : vector<32x1xi32> to vector<32x256xi32>
    %532 = arith.cmpi slt, %530, %531 : vector<32x256xi32>
    %533 = arith.andi %529, %532 : vector<32x256xi1>
    %534 = arith.ori %526, %533 : vector<32x256xi1>
    %535 = arith.extui %534 : vector<32x256xi1> to vector<32x256xi32>
    %536 = arith.sitofp %535 : vector<32x256xi32> to vector<32x256xf32>
    %cst_144 = arith.constant dense<0.000000e+00> : vector<32xf32>
    %537 = vector.multi_reduction <add>, %536, %cst_144 [1] : vector<32x256xf32> to vector<32xf32>
    %538 = vector.shape_cast %537 : vector<32xf32> to vector<32x1xf32>
    %539 = vector.broadcast %364 : vector<1x1xf32> to vector<32x1xf32>
    %540 = arith.cmpf olt, %538, %539 : vector<32x1xf32>
    %cst_145 = arith.constant 0.000000e+00 : f32
    %541 = vector.broadcast %cst_145 : f32 to vector<32x1xf32>
    %542 = arith.select %540, %519, %541 : vector<32x1xi1>, vector<32x1xf32>
    %cst_146 = arith.constant dense<0.000000e+00> : vector<1xf32>
    %543 = vector.multi_reduction <add>, %542, %cst_146 [0] : vector<32x1xf32> to vector<1xf32>
    %544 = vector.shape_cast %543 : vector<1xf32> to vector<1x1xf32>
    %545 = arith.addf %515, %544 : vector<1x1xf32>
    %c6_i32 = arith.constant 6 : i32
    %c32_i32_147 = arith.constant 32 : i32
    %546 = arith.muli %c6_i32, %c32_i32_147 : i32
    %547 = tpu.assume_multiple %546, 32 : i32
    %548 = arith.index_cast %547 : i32 to index
    %c0_148 = arith.constant 0 : index
    %549 = vector.load %arg7[%548, %c0_148] : memref<256x1xf32, #tpu.memory_space<vmem>>, vector<32x1xf32>
    %c32_i32_149 = arith.constant 32 : i32
    %550 = arith.muli %c6_i32, %c32_i32_149 : i32
    %551 = tpu.iota {dimensions = array<i32: 0>} : vector<32x1xi32>
    %552 = vector.broadcast %550 : i32 to vector<32x1xi32>
    %553 = arith.addi %552, %551 : vector<32x1xi32>
    %554 = vector.broadcast %360 : vector<1x256xf32> to vector<32x256xf32>
    %555 = vector.broadcast %549 : vector<32x1xf32> to vector<32x256xf32>
    %556 = arith.cmpf ogt, %554, %555 : vector<32x256xf32>
    %557 = vector.broadcast %360 : vector<1x256xf32> to vector<32x256xf32>
    %558 = vector.broadcast %549 : vector<32x1xf32> to vector<32x256xf32>
    %559 = arith.cmpf oeq, %557, %558 : vector<32x256xf32>
    %560 = vector.broadcast %17 : vector<1x256xi32> to vector<32x256xi32>
    %561 = vector.broadcast %553 : vector<32x1xi32> to vector<32x256xi32>
    %562 = arith.cmpi slt, %560, %561 : vector<32x256xi32>
    %563 = arith.andi %559, %562 : vector<32x256xi1>
    %564 = arith.ori %556, %563 : vector<32x256xi1>
    %565 = arith.extui %564 : vector<32x256xi1> to vector<32x256xi32>
    %566 = arith.sitofp %565 : vector<32x256xi32> to vector<32x256xf32>
    %cst_150 = arith.constant dense<0.000000e+00> : vector<32xf32>
    %567 = vector.multi_reduction <add>, %566, %cst_150 [1] : vector<32x256xf32> to vector<32xf32>
    %568 = vector.shape_cast %567 : vector<32xf32> to vector<32x1xf32>
    %569 = vector.broadcast %364 : vector<1x1xf32> to vector<32x1xf32>
    %570 = arith.cmpf olt, %568, %569 : vector<32x1xf32>
    %cst_151 = arith.constant 0.000000e+00 : f32
    %571 = vector.broadcast %cst_151 : f32 to vector<32x1xf32>
    %572 = arith.select %570, %549, %571 : vector<32x1xi1>, vector<32x1xf32>
    %cst_152 = arith.constant dense<0.000000e+00> : vector<1xf32>
    %573 = vector.multi_reduction <add>, %572, %cst_152 [0] : vector<32x1xf32> to vector<1xf32>
    %574 = vector.shape_cast %573 : vector<1xf32> to vector<1x1xf32>
    %575 = arith.addf %545, %574 : vector<1x1xf32>
    %c7_i32 = arith.constant 7 : i32
    %c32_i32_153 = arith.constant 32 : i32
    %576 = arith.muli %c7_i32, %c32_i32_153 : i32
    %577 = tpu.assume_multiple %576, 32 : i32
    %578 = arith.index_cast %577 : i32 to index
    %c0_154 = arith.constant 0 : index
    %579 = vector.load %arg7[%578, %c0_154] : memref<256x1xf32, #tpu.memory_space<vmem>>, vector<32x1xf32>
    %c32_i32_155 = arith.constant 32 : i32
    %580 = arith.muli %c7_i32, %c32_i32_155 : i32
    %581 = tpu.iota {dimensions = array<i32: 0>} : vector<32x1xi32>
    %582 = vector.broadcast %580 : i32 to vector<32x1xi32>
    %583 = arith.addi %582, %581 : vector<32x1xi32>
    %584 = vector.broadcast %360 : vector<1x256xf32> to vector<32x256xf32>
    %585 = vector.broadcast %579 : vector<32x1xf32> to vector<32x256xf32>
    %586 = arith.cmpf ogt, %584, %585 : vector<32x256xf32>
    %587 = vector.broadcast %360 : vector<1x256xf32> to vector<32x256xf32>
    %588 = vector.broadcast %579 : vector<32x1xf32> to vector<32x256xf32>
    %589 = arith.cmpf oeq, %587, %588 : vector<32x256xf32>
    %590 = vector.broadcast %17 : vector<1x256xi32> to vector<32x256xi32>
    %591 = vector.broadcast %583 : vector<32x1xi32> to vector<32x256xi32>
    %592 = arith.cmpi slt, %590, %591 : vector<32x256xi32>
    %593 = arith.andi %589, %592 : vector<32x256xi1>
    %594 = arith.ori %586, %593 : vector<32x256xi1>
    %595 = arith.extui %594 : vector<32x256xi1> to vector<32x256xi32>
    %596 = arith.sitofp %595 : vector<32x256xi32> to vector<32x256xf32>
    %cst_156 = arith.constant dense<0.000000e+00> : vector<32xf32>
    %597 = vector.multi_reduction <add>, %596, %cst_156 [1] : vector<32x256xf32> to vector<32xf32>
    %598 = vector.shape_cast %597 : vector<32xf32> to vector<32x1xf32>
    %599 = vector.broadcast %364 : vector<1x1xf32> to vector<32x1xf32>
    %600 = arith.cmpf olt, %598, %599 : vector<32x1xf32>
    %cst_157 = arith.constant 0.000000e+00 : f32
    %601 = vector.broadcast %cst_157 : f32 to vector<32x1xf32>
    %602 = arith.select %600, %579, %601 : vector<32x1xi1>, vector<32x1xf32>
    %cst_158 = arith.constant dense<0.000000e+00> : vector<1xf32>
    %603 = vector.multi_reduction <add>, %602, %cst_158 [0] : vector<32x1xf32> to vector<1xf32>
    %604 = vector.shape_cast %603 : vector<1xf32> to vector<1x1xf32>
    %605 = arith.addf %575, %604 : vector<1x1xf32>
    %c8_i32_159 = arith.constant 8 : i32
    %606 = arith.addf %19, %605 : vector<1x1xf32>
    %c1_i32_160 = arith.constant 1 : i32
    %607 = tpu.iota {dimensions = array<i32: 2>} : vector<1x1x128xi32>
    %c0_i32_161 = arith.constant 0 : i32
    %608 = vector.broadcast %c0_i32_161 : i32 to vector<1x1x128xi32>
    %609 = arith.cmpi eq, %607, %608 : vector<1x1x128xi32>
    %610 = vector.shape_cast %357 : vector<1x1xf32> to vector<1x1x1xf32>
    %cst_162 = arith.constant 0.000000e+00 : f32
    %611 = vector.shape_cast %610 : vector<1x1x1xf32> to vector<1x1x1xf32>
    %612 = vector.broadcast %611 : vector<1x1x1xf32> to vector<1x1x128xf32>
    %613 = vector.broadcast %cst_162 : f32 to vector<1x1x128xf32>
    %614 = arith.select %609, %612, %613 : vector<1x1x128xi1>, vector<1x1x128xf32>
    %c1_i32_163 = arith.constant 1 : i32
    %615 = vector.broadcast %c1_i32_163 : i32 to vector<1x1x128xi32>
    %616 = arith.cmpi eq, %607, %615 : vector<1x1x128xi32>
    %617 = vector.shape_cast %606 : vector<1x1xf32> to vector<1x1x1xf32>
    %cst_164 = arith.constant 0.000000e+00 : f32
    %618 = vector.shape_cast %617 : vector<1x1x1xf32> to vector<1x1x1xf32>
    %619 = vector.broadcast %618 : vector<1x1x1xf32> to vector<1x1x128xf32>
    %620 = vector.broadcast %cst_164 : f32 to vector<1x1x128xf32>
    %621 = arith.select %616, %619, %620 : vector<1x1x128xi1>, vector<1x1x128xf32>
    %622 = arith.addf %614, %621 : vector<1x1x128xf32>
    %c2_i32_165 = arith.constant 2 : i32
    %623 = vector.broadcast %c2_i32_165 : i32 to vector<1x1x128xi32>
    %624 = arith.cmpi eq, %607, %623 : vector<1x1x128xi32>
    %625 = vector.shape_cast %329 : vector<1x1xf32> to vector<1x1x1xf32>
    %cst_166 = arith.constant 0.000000e+00 : f32
    %626 = vector.shape_cast %625 : vector<1x1x1xf32> to vector<1x1x1xf32>
    %627 = vector.broadcast %626 : vector<1x1x1xf32> to vector<1x1x128xf32>
    %628 = vector.broadcast %cst_166 : f32 to vector<1x1x128xf32>
    %629 = arith.select %624, %627, %628 : vector<1x1x128xi1>, vector<1x1x128xf32>
    %630 = arith.addf %622, %629 : vector<1x1x128xf32>
    %c3_i32_167 = arith.constant 3 : i32
    %631 = vector.broadcast %c3_i32_167 : i32 to vector<1x1x128xi32>
    %632 = arith.cmpi eq, %607, %631 : vector<1x1x128xi32>
    %633 = vector.shape_cast %358 : vector<1x1xf32> to vector<1x1x1xf32>
    %cst_168 = arith.constant 0.000000e+00 : f32
    %634 = vector.shape_cast %633 : vector<1x1x1xf32> to vector<1x1x1xf32>
    %635 = vector.broadcast %634 : vector<1x1x1xf32> to vector<1x1x128xf32>
    %636 = vector.broadcast %cst_168 : f32 to vector<1x1x128xf32>
    %637 = arith.select %632, %635, %636 : vector<1x1x128xi1>, vector<1x1x128xf32>
    %638 = arith.addf %630, %637 : vector<1x1x128xf32>
    %c0_169 = arith.constant 0 : index
    %c0_170 = arith.constant 0 : index
    %c0_171 = arith.constant 0 : index
    %639 = vector.load %arg6[%c0_169, %c0_170, %c0_171] : memref<1x1x128xf32, #tpu.memory_space<vmem>>, vector<1x1x128xf32>
    tpu.vector_store %arg6[%c0_169, %c0_170, %c0_171], %638 {strides = array<i32>} : memref<1x1x128xf32, #tpu.memory_space<vmem>>, vector<1x1x128xf32>,
    return
  }
  func.func @transform_0(%arg0: i32, %arg1: memref<24xf32, #tpu.memory_space<smem>>, %arg2: memref<6xi32, #tpu.memory_space<smem>>) -> (i32, i32) {
    %c0_i32 = arith.constant 0 : i32
    %c0_i32_0 = arith.constant 0 : i32
    %c0_i32_1 = arith.constant 0 : i32
    return %c0_i32, %c0_i32_0 : i32, i32
  }
  func.func @transform_1(%arg0: i32, %arg1: memref<24xf32, #tpu.memory_space<smem>>, %arg2: memref<6xi32, #tpu.memory_space<smem>>) -> (i32, i32, i32) {
    %c0_i32 = arith.constant 0 : i32
    %c0_i32_0 = arith.constant 0 : i32
    %c0_i32_1 = arith.constant 0 : i32
    return %arg0, %c0_i32, %c0_i32_0 : i32, i32, i32
  }
  func.func @transform_2(%arg0: i32, %arg1: memref<24xf32, #tpu.memory_space<smem>>, %arg2: memref<6xi32, #tpu.memory_space<smem>>) -> (i32, i32, i32) {
    %c0_i32 = arith.constant 0 : i32
    %c0_i32_0 = arith.constant 0 : i32
    %c0_i32_1 = arith.constant 0 : i32
    return %arg0, %c0_i32, %c0_i32_0 : i32, i32, i32
  }
  func.func @transform_3(%arg0: i32, %arg1: memref<24xf32, #tpu.memory_space<smem>>, %arg2: memref<6xi32, #tpu.memory_space<smem>>) -> (i32, i32, i32) {
    %c0_i32 = arith.constant 0 : i32
    %c0_i32_0 = arith.constant 0 : i32
    %c0_i32_1 = arith.constant 0 : i32
    return %arg0, %c0_i32, %c0_i32_0 : i32, i32, i32
  }
}

</mosaic_0001>

<bundles_post_ra>
// kernel: tpu_custom_call.1
= control target key start
LH: loop header
LB: loop body
LE: loop exit
PB: predicated region body
PF: predicated region fallthrough
CT: control target
= control target key end

     0   :  { %s3922_s0 = inlined_call_operand.hbm [shape: f32[24], index: 0, kind: input, shape index: {}]   ;;  %s3923_s2 = inlined_call_operand.hbm [shape: f32[8,256], index: 2, kind: input, shape index: {}]   ;;  %s3924_s3 = inlined_call_operand.hbm [shape: f32[2,4,256], index: 3, kind: input, shape index: {}]   ;;  %s3925_s4 = inlined_call_operand.hbm [shape: f32[2,8,256], index: 4, kind: input, shape index: {}]   ;;  %s3926_s5 = inlined_call_operand.hbm [shape: f32[2,1,128], index: 5, kind: output, shape index: {}]   ;;  %s3927_s1 = inlined_call_operand.vmem [shape: s32[6], index: 1, kind: input, shape index: {}]  }
   0x1   :  { %s2368_s20 = scalar_lea.hbm %s3922_s0, 16 }
   0x2   :  { %p2369_p0 = scmp.ne.s32.totalorder %s3922_s0, %s2368_s20  ;;  %p2372_p1 = scmp.lt.u32.totalorder %s2368_s20, %s3922_s0 }
   0x4   :  { %p2374_p2 = pnand %p2372_p1, %p2369_p0 }
   0x6   :  { %2377 = shalt.err (!%p2374_p2)  }
   0x7   :  { %s2552_s25 = smov [#allocation4]   ;;  %s12_s30 = sshll.u32 %s3927_s1, 4  ;;  %s13_s30 = int_to_ptr.vmem [resolvable:$true] %s12_s30 }
   0x8   :  { %11 = dma.hbm_to_smem %s3922_s0, 16, %s2552_s25, [#allocation3] }
   0x9   :  { %s2378_s6 = scalar_lea.vmem %s13_s30, 16  ;;  %p2383_p4 = scmp.lt.s32.totalorder %s13_s30, %s13_s30 }
   0xa   :  { %p2379_p3 = scmp.ne.s32.totalorder %s13_s30, %s2378_s6  ;;  %p2384_p5 = scmp.lt.s32.totalorder %s2378_s6, %s2378_s6 }
   0xc   :  { %p2385_p6 = por %p2384_p5, %p2383_p4 }
   0xe   :  { %p2386_p7 = pnand %p2385_p6, %p2379_p3 }
  0x10   :  { %2389 = shalt.err (!%p2386_p7)  }
  0x11   :  { %s2553_s7 = smov [#allocation5]  }
  0x12   :  { %15 = dma.vmem_to_smem %s13_s30, 16, %s2553_s7, [#allocation3] }
  0x13   :  { %2522 = dma.done.wait [#allocation3], 32 }
  0x14   :  { %2523 = vsyncadd [#allocation3], 4294967264 }
  0x15   :  { %17 = sfence }
  0x16   :  { %18 = vsyncpa [#allocation7], 0 }
  0x17   :  { %19 = vsyncpa [#allocation10], 0 }
  0x18   :  { %21 = vsyncpa [#allocation10 + $0x1], 0 }
  0x19   :  { %22 = vsyncpa [#allocation8], 0 }
  0x1a   :  { %24 = vsyncpa [#allocation8 + $0x1], 0  ;;  %s2606_s0 = smov 0   ;;  %s2608_s1 = smov 0  }
  0x1b   :  { %s2610_s8 = smov 0   ;;  %s2612_s9 = smov 0  }
  0x1c LB: > { %s2627_s10 = sadd.s32 1, %s2550_s9   ;;  %s58_s11 = sadd.s32 1, %s2546_s8  ;;  %s2550_s9 = sphi %s2612_s9, %s4020_s9   ;;  %s2546_s8 = sphi %s2610_s8, %s4019_s8   ;;  %s2542_s1 = sphi %s2608_s1, %s4018_s1   ;;  %s2538_s0 = sphi %s2606_s0, %s4017_s0  }
  0x1d   : > { %s55_s12 = ssub.s32 %s2550_s9, %s2627_s10  ;;  %p65_p8 = scmp.ne.s32.totalorder %s2546_s8, %s2542_s1 }
  0x1e   : > { %p56_p9 = scmp.eq.s32.totalorder %s55_s12, 0  ;;  %p66_p10 = scmp.eq.s32.totalorder %s2550_s9, 0 }
  0x1f   : > { %p2263_p12 = scmp.lt.s32.totalorder %s2550_s9, 2  ;;  %s158_s14 = sand.u32 1, %s2550_s9  }
  0x20   : > { %s2638_s13 = scalar_select %p56_p9, %s2546_s8, %s58_s11  }
  0x21   : > { %p67_p13 = por %p66_p10, %p65_p8  ;;  %s160_s15 = sand.u32 1, %s2546_s8  }
  0x22   : > { %s2149_s16 = sshll.u32 %s160_s15, 3  ;;  %s2235_s17 = sshll.u32 %s2550_s9, 7 }
  0x23   : > { %s2649_s20 = scalar_lea.hbm %s3924_s3, %s2235_s17  ;;  %s162_s21 = scalar_lea.vmem [#allocation9], %s2149_s16 }
  0x24   : > { %s170_s22 = sshll.u32 %s162_s21, 4  ;;  %p2651_p0 = pnand %p2263_p12, %p67_p13  ;;  %s2655_s22 = int_to_ptr.vmem [resolvable:$true] %s170_s22 }
  0x25   : > { %s2657_s24 = sshll.u32 %s160_s15, 4  ;;  %s2659_s25 = scalar_lea.sflag [#allocation10], %s158_s14 }
  0x26   : > { %s2390_s26 = scalar_lea.hbm %s2649_s20, 128  ;;  %p2392_p2 = pneg %p2651_p0 }
  0x27   : > { %p2391_p1 = scmp.ne.s32.totalorder %s2649_s20, %s2390_s26  ;;  %s2395_s29 = scalar_lea.hbm %s3924_s3, 256 }
  0x28   : > { %p2396_p5 = scmp.lt.u32.totalorder %s2649_s20, %s3924_s3  ;;  %p2397_p6 = scmp.lt.u32.totalorder %s2395_s29, %s2390_s26 }
  0x29   : > { %p2393_p3 = pnand %p2392_p2, %p2391_p1  ;;  %p2399_p9 = scmp.lt.u32.totalorder %s2390_s26, %s2649_s20 }
  0x2a   : > { %p2398_p7 = por %p2397_p6, %p2396_p5 }
  0x2b   : > { %p2394_p4 = pneg %p2393_p3 }
  0x2c   : > { %p2400_p10 = por %p2399_p9, %p2398_p7 }
  0x2e   : > { %p2401_p12 = pnand %p2400_p10, %p2394_p4 }
  0x30   : > { %2404 = shalt.err (!%p2401_p12)
}
  0x31   : > { %s2405_s7 = scalar_lea.vmem %s2655_s22, 128  ;;  %s2554_s11 = smov [#allocation9]  }
  0x32   : > { %p2406_p13 = scmp.ne.s32.totalorder %s2655_s22, %s2405_s7  ;;  %s2410_s12 = sshll.u32 %s2554_s11, 4  ;;  %s2411_s12 = int_to_ptr.vmem [resolvable:$false] %s2410_s12 }
  0x33   : > { %s2412_s14 = scalar_lea.vmem %s2411_s12, 256  ;;  %p2413_p11 = scmp.lt.s32.totalorder %s2655_s22, %s2411_s12 }
  0x34   : > { %p2408_p1 = pnand %p2406_p13, %p2392_p2  ;;  %p2414_p5 = scmp.lt.s32.totalorder %s2412_s14, %s2405_s7 }
  0x36   : > { %p2409_p3 = pneg %p2408_p1  ;;  %p2415_p6 = por %p2414_p5, %p2413_p11 }
  0x38   : > { %p2416_p7 = pnand %p2415_p6, %p2409_p3 }
  0x3a   : > { %2419 = shalt.err (!%p2416_p7)
}
  0x3b   : > { %2254 = dma.hbm_to_vmem [thread:$0]  (!%p2651_p0), %s2649_s20, 128, %s2655_s22, %s2659_s25  }
  0x3c   : > { %s2688_s15 = sadd.s32 4294967295, %s2550_s9   ;;  %s2145_s16 = sadd.s32 4294967294, %s2550_s9  }
  0x3d   : > { %p71_p11 = scmp.ne.s32.totalorder %s2542_s1, %s2538_s0  ;;  %p3928_p4 = scmp.eq.s32.totalorder %s2688_s15, 0 }
  0x3e   : > { %p121_p9 = scmp.eq.s32.totalorder %s2688_s15, 1  ;;  %p127_p10 = scmp.eq.s32.totalorder %s2145_s16, 1 }
  0x3f   : > { %p2146_p12 = scmp.ge.s32.totalorder %s2550_s9, 1  ;;  %p2698_p13 = por %p3928_p4, %p71_p11 }
  0x40   : > { %p2705_p1 = por %p121_p9, %p65_p8  ;;  %p2709_p3 = por %p127_p10, %p71_p11 }
  0x41   : > { %s3935_s17 = scalar_select %p2698_p13, 1, 0 }
  0x42   : > { %s3936_s18 = scalar_select %p2705_p1, 1, 0 }
  0x43   : > { %s3937_s19 = scalar_select %p2709_p3, 1, 0 }
  0x44   : > { %p134_p5 = scmp.lt.s32.totalorder %s2550_s9, 3  ;;  %s2555_s21 = smov [#allocation6]  }
  0x45   : > { %s147_s22 = sshll.u32 %s2555_s21, 4  ;;  %s2236_s26 = sshll.u32 %s2550_s9, 8  ;;  %s2718_s22 = int_to_ptr.vmem [resolvable:$true] %s147_s22 }
  0x46   : > { %p2714_p6 = pnand %p2146_p12, %p134_p5  ;;  %s2726_s29 = scalar_lea.hbm %s3925_s4, %s2236_s26 }
  0x47   : > { %s181_s30 = scalar_lea.vmem [#allocation11], %s2657_s24  ;;  %s2420_s11 = scalar_lea.hbm %s2726_s29, 256 }
  0x48   : > { %s3938_s20 = scalar_select %p2714_p6, 1, 0 }
  0x49   : > { %p2247_p8 = pneg %p2714_p6  ;;  %s189_s6 = sshll.u32 %s181_s30, 4  ;;  %s190_s6 = int_to_ptr.vmem [resolvable:$true] %s189_s6 }
  0x4a   : > { %p2421_p11 = scmp.ne.s32.totalorder %s2726_s29, %s2420_s11  ;;  %s2425_s16 = scalar_lea.hbm %s3925_s4, 512 }
  0x4b   : > { %p2731_p7 = pnand %p2247_p8, %p3928_p4  ;;  %p2426_p12 = scmp.lt.u32.totalorder %s2726_s29, %s3925_s4 }
  0x4c   : > { %p2423_p9 = pnand %p2421_p11, %p2392_p2  ;;  %p2427_p5 = scmp.lt.u32.totalorder %s2425_s16, %s2420_s11 }
  0x4d   : > { %s3939_s7 = scalar_select %p2731_p7, 1, 0 }
  0x4e   : > { %p2424_p10 = pneg %p2423_p9  ;;  %p2428_p8 = por %p2427_p5, %p2426_p12 }
  0x4f   : > { %p2429_p4 = scmp.lt.u32.totalorder %s2420_s11, %s2726_s29 }
  0x51   : > { %p2430_p3 = por %p2429_p4, %p2428_p8 }
  0x53   : > { %p2431_p1 = pnand %p2430_p3, %p2424_p10 }
  0x55   : > { %2434 = shalt.err (!%p2431_p1)
}
  0x56   : > { %s2435_s24 = scalar_lea.vmem %s190_s6, 256  ;;  %s2556_s27 = smov [#allocation11]  }
  0x57   : > { %p2436_p13 = scmp.ne.s32.totalorder %s190_s6, %s2435_s24  ;;  %s2440_s28 = sshll.u32 %s2556_s27, 4  ;;  %s2441_s28 = int_to_ptr.vmem [resolvable:$false] %s2440_s28 }
  0x58   : > { %s2442_s30 = scalar_lea.vmem %s2441_s28, 512  ;;  %p2443_p6 = scmp.lt.s32.totalorder %s190_s6, %s2441_s28 }
  0x59   : > { %p2438_p11 = pnand %p2436_p13, %p2392_p2  ;;  %p2444_p7 = scmp.lt.s32.totalorder %s2442_s30, %s2435_s24 }
  0x5b   : > { %p2439_p9 = pneg %p2438_p11  ;;  %p2445_p5 = por %p2444_p7, %p2443_p6 }
  0x5d   : > { %p2446_p12 = pnand %p2445_p5, %p2439_p9 }
  0x5f   : > { %2449 = shalt.err (!%p2446_p12)
}
  0x60   : > { %2257 = dma.hbm_to_vmem [thread:$0]  (!%p2651_p0), %s2726_s29, 256, %s190_s6, %s2659_s25  }
  0x61   : > { %s2450_s14 = scalar_lea.hbm %s3923_s2, 256  ;;  %p3940_p4 = scmp.ne.s32.totalorder %s3939_s7, 0 }
  0x62   : > { %p2451_p2 = scmp.ne.s32.totalorder %s3923_s2, %s2450_s14  ;;  %p2457_p6 = scmp.lt.u32.totalorder %s2450_s14, %s3923_s2 }
  0x63   : > { %p2452_p13 = pneg %p3940_p4 }
  0x65   : > { %p2453_p1 = pnand %p2452_p13, %p2451_p2 }
  0x67   : > { %p2454_p3 = pneg %p2453_p1 }
  0x69   : > { %p2459_p7 = pnand %p2457_p6, %p2454_p3 }
  0x6b   : > { %2462 = shalt.err (!%p2459_p7)
}
  0x6c   : > { %s2463_s23 = scalar_lea.vmem %s2718_s22, 256  ;;  %p2471_p11 = scmp.lt.s32.totalorder %s2718_s22, %s2718_s22 }
  0x6d   : > { %p2464_p0 = scmp.ne.s32.totalorder %s2718_s22, %s2463_s23  ;;  %p2472_p9 = scmp.lt.s32.totalorder %s2463_s23, %s2463_s23 }
  0x6f   : > { %p2466_p10 = pnand %p2464_p0, %p2452_p13  ;;  %p2473_p5 = por %p2472_p9, %p2471_p11 }
  0x71   : > { %p2467_p8 = pneg %p2466_p10 }
  0x73   : > { %p2474_p12 = pnand %p2473_p5, %p2467_p8 }
  0x75   : > { %2477 = shalt.err (!%p2474_p12)
}
  0x76   : > { %2250 = dma.hbm_to_vmem [thread:$0]  (!%p3940_p4), %s3923_s2, 256, %s2718_s22, [#allocation7]  }
  0x77   : > { %p3941_p2 = scmp.ne.s32.totalorder %s3938_s20, 0 }
  0x78   : > { %p3942_p1 = scmp.eq.s32.totalorder (!%p3941_p2), %s2688_s15, 0 }
  0x79   : > { %198 = sbr.rel (%p3941_p2) target bundleno = 1337 (0x539), region = 32 }
  0x80   : > { %2525 = dma.done.wait (%p3942_p1), [#allocation7], 256   ;;  %p3943_p13 = pmov %p3942_p1 }
  0x81   : > { %s204_s6 = sand.u32 1, %s2688_s15   ;;  %s2784_s27 = sand.u32 1, %s2542_s1  }
  0x82   : > { %2527 = vsyncadd (%p3943_p13), [#allocation7], 4294967040  ;;  %s2157_s7 = sshll.u32 %s2784_s27, 3  ;;  %s205_s28 = scalar_lea.sflag [#allocation10], %s204_s6 }
  0x83   : > { %s2787_s30 = scalar_lea.vmem [#allocation9], %s2157_s7  ;;  %p3944_p4 = scmp.ne.s32.totalorder %s3935_s17, 0 }
  0x85   : > { %2529 = dma.done.wait (%p3944_p4), %s205_s28, 384  }
  0x86   : > { %2531 = vsyncadd (%p3944_p4), %s205_s28, 4294966912  ;;  %s2794_s20 = smul.u32 12, %s2688_s15  ;;  %v2812_v0 = vld [vmem:[#allocation6] ss:$8 sm:$0x3]  ;;  %v270_v41 = vlaneseq  ;;  %vm380_vm0 = vcmask 1040384  }
  0x87   : > { %v2814_v1 = vld [vmem:[#allocation6 + $0x1] ss:$8 sm:$0x3]  ;;  %v2816_v2 = vld [vmem:[#allocation6 + $0x2] ss:$8 sm:$0x3] }
  0x88   : > { %s2797_s22 = sld [smem:[#allocation4 + %s2794_s20]]  ;;  %s278_s11 = sadd.s32 1, %s2794_s20  ;;  %v2818_v3 = vld [vmem:[#allocation6 + $0x3] ss:$8 sm:$0x3]  ;;  %v259_v5 = vsub.f32 %v2816_v2, %v2812_v0  ;;  %v2912_v50 = vshrl.u32 %v270_v41, 7 }
  0x89   : > { %s2800_s12 = sld [smem:[#allocation4 + %s278_s11]]  ;;  %s280_s14 = sadd.s32 2, %s2794_s20  ;;  %v260_v6 = vsub.f32 %v2818_v3, %v2814_v1 }
  0x8a   : > { %s2803_s16 = sld [smem:[#allocation4 + %s280_s14]]  ;;  %s282_s17 = sadd.s32 3, %s2794_s20  ;;  %v2915_v56 = vsub.s32 0, %v2912_v50  ;;  %v2918_v57 = vsub.s32 1, %v2912_v50 }
  0x8b   : > { %s2806_s21 = sld [smem:[#allocation4 + %s282_s17]]  ;;  %s305_s26 = sadd.s32 4, %s2794_s20  ;;  %v261_v13 = vmul.f32 %v260_v6, %v259_v5 }
  0x8c   : > { %s2809_s24 = sld [smem:[#allocation4 + %s305_s26]]  ;;  %s307_s23 = sadd.s32 5, %s2794_s20 }
  0x8d   : > { %s2832_s25 = sld [smem:[#allocation4 + %s307_s23]]  ;;  %s309_s29 = sadd.s32 6, %s2794_s20 }
  0x8e   : > { %v2821_v4 = vstv %s2797_s22  ;;  %s2842_s7 = sld [smem:[#allocation4 + %s309_s29]]  ;;  %s311_s11 = sadd.s32 7, %s2794_s20 }
  0x8f   : > { %v287_v7 = vmax.f32 %v2812_v0, %v2821_v4  ;;  %v2830_v8 = vstv %s2800_s12  ;;  %s2854_s14 = sld [smem:[#allocation4 + %s311_s11]]  ;;  %p4014_p6 = scmp.ne.s32.totalorder %s3936_s18, 0 }
  0x90   : > { %v2836_v9 = vstv %s2803_s16  ;;  %v293_v10 = vmax.f32 %v2814_v1, %v2830_v8  ;;  %s297_s6 = ssub.f32 %s2803_s16, %s2797_s22  ;;  %s334_s22 = sadd.s32 8, %s2794_s20 }
  0x91   : > { %v285_v11 = vmin.f32 %v2816_v2, %v2836_v9  ;;  %v2847_v12 = vstv %s2806_s21  ;;  %s298_s28 = ssub.f32 %s2806_s21, %s2800_s12  ;;  %s2860_s17 = sld [smem:[#allocation4 + %s334_s22]] }
  0x92   : > { %v291_v14 = vmin.f32 %v2818_v3, %v2847_v12  ;;  %v2857_v15 = vstv %s2809_s24  ;;  %s336_s12 = sadd.s32 9, %s2794_s20  ;;  %s338_s21 = sadd.s32 10, %s2794_s20 }
  0x93   : > { %v288_v16 = vsub.f32 %v285_v11, %v287_v7  ;;  %s299_s16 = smul.f32 %s298_s28, %s297_s6  ;;  %v316_v20 = vmax.f32 %v2812_v0, %v2857_v15  ;;  %v2867_v21 = vstv %s2832_s25  ;;  %s2869_s26 = sld [smem:[#allocation4 + %s336_s12]] }
  0x94   : > { %v294_v17 = vsub.f32 %v291_v14, %v293_v10  ;;  %s2871_s23 = sld [smem:[#allocation4 + %s338_s21]]  ;;  %v2874_v24 = vstv %s2842_s7  ;;  %s326_s29 = ssub.f32 %s2842_s7, %s2809_s24  ;;  %v322_v26 = vmax.f32 %v2814_v1, %v2867_v21 }
  0x95   : > { %v289_v18 = vmax.f32 %v288_v16, 0.0  ;;  %v300_v19 = vstv %s299_s16  ;;  %s340_s6 = sadd.s32 11, %s2794_s20  ;;  %v314_v25 = vmin.f32 %v2816_v2, %v2874_v24  ;;  %v2884_v28 = vstv %s2854_s14  ;;  %s327_s11 = ssub.f32 %s2854_s14, %s2832_s25 }
  0x96   : > { %v295_v22 = vmax.f32 %v294_v17, 0.0  ;;  %v301_v23 = vadd.f32 %v300_v19, %v261_v13  ;;  %s341_s28 = sld [smem:[#allocation4 + %s340_s6]]  ;;  %v320_v30 = vmin.f32 %v2818_v3, %v2884_v28  ;;  %s2158_s14 = sshll.u32 %s2784_s27, 4 }
  0x97   : > { %v317_v29 = vsub.f32 %v314_v25, %v316_v20  ;;  %v2891_v31 = vstv %s2860_s17  ;;  %s328_s20 = smul.f32 %s327_s11, %s326_s29  ;;  %s217_s22 = scalar_lea.vmem [#allocation11], %s2158_s14 }
  0x98   : > { %v296_v27 = vmul.f32 %v295_v22, %v289_v18  ;;  %v345_v33 = vmax.f32 %v2812_v0, %v2891_v31  ;;  %v323_v35 = vsub.f32 %v320_v30, %v322_v26  ;;  %v2944_v22 = vand.u32 127, %v270_v41  ;;  %s276_s16 = smul.u32 3, %s2688_s15  ;;  %s243_s29 = scalar_lea.vmem [#allocation12], %s2784_s27 }
  0x99   : > { %v318_v34 = vmax.f32 %v317_v29, 0.0  ;;  %v2899_v37 = vstv %s2869_s26  ;;  %v329_v38 = vstv %s328_s20  ;;  %s2047_s6 = sshll.u32 %s243_s29, 4  ;;  %s3880_s6 = int_to_ptr.vmem [resolvable:$true] %s2047_s6 }
  0x9a   : > { %v302_v32 = vsub.f32 %v301_v23, %v296_v27  ;;  %v2896_v36 = vstv %s2871_s23  ;;  %s355_s24 = ssub.f32 %s2871_s23, %s2860_s17  ;;  %v351_v40 = vmax.f32 %v2814_v1, %v2899_v37  ;;  %v324_v42 = vmax.f32 %v323_v35, 0.0  ;;  %s580_s17 = sadd.s32 1, %s276_s16 }
  0x9b   : > { %v343_v39 = vmin.f32 %v2816_v2, %v2896_v36  ;;  %v330_v43 = vadd.f32 %v329_v38, %v261_v13  ;;  %v2557_v23 = vmov 1966171168   ;;  %v2947_v26 = vadd.s32 128, %v2944_v22  ;;  %s587_s12 = sadd.s32 2, %s276_s16  ;;  %s3006_s21 = sld [smem:[#allocation5 + %s276_s16]] }
  0x9c   : > { %2306 = vrcp.f32 %v302_v32  ;;  %v2907_v44 = vstv %s341_s28  ;;  %s356_s25 = ssub.f32 %s341_s28, %s2869_s26  ;;  %v325_v47 = vmul.f32 %v324_v42, %v318_v34  ;;  %v395_v25 = vunpack.c.l.s4 %v2557_v23  ;;  %s3010_s26 = sld [smem:[#allocation5 + %s580_s17]] }
  0x9d   : > { %v346_v45 = vsub.f32 %v343_v39, %v345_v33  ;;  %v349_v46 = vmin.f32 %v2818_v3, %v2907_v44  ;;  %v393_v29 = vcombine.low %v2944_v22, %v2947_v26  ;;  %s3012_s23 = sld [smem:[#allocation5 + %s587_s12]] }
  0x9e   : > { %s357_s7 = smul.f32 %s356_s25, %s355_s24  ;;  %v331_v51 = vsub.f32 %v330_v43, %v325_v47  ;;  %s2035_s24 = scalar_lea.sflag [#allocation8], %s2784_s27 }
  0x9f   : > { %v347_v48 = vmax.f32 %v346_v45, 0.0  ;;  %v352_v49 = vsub.f32 %v349_v46, %v351_v40  ;;  %s2478_s25 = scalar_lea.vmem %s3880_s6, 16 }
  0xa0   : > { %v358_v52 = vstv %s357_s7  ;;  %2308 = vrcp.f32 %v331_v51  ;;  %p2479_p3 = scmp.ne.s32.totalorder %s3880_s6, %s2478_s25 }
  0xa1   : > { %v353_v53 = vmax.f32 %v352_v49, 0.0  ;;  %v359_v54 = vadd.f32 %v358_v52, %v261_v13 }
  0xa2   : > { %p2480_p7 = pnand %p2479_p3, %p4014_p6 }
  0xa3   : > { %v354_v55 = vmul.f32 %v353_v53, %v347_v48 }
  0xa4   : > { %p2481_p0 = pneg %p2480_p7 }
  0xa5   : > { %v360_v59 = vsub.f32 %v359_v54, %v354_v55 }
  0xa6   : > { %v2307_v58 = vpop.eup %2306 }
  0xa7   : > { %v2920_v60 = vmul.f32 %v2307_v58, %v296_v27  ;;  %2310 = vrcp.f32 %v360_v59  ;;  %v396_v27 = vunpack.c.0.s8 %v395_v25 }
  0xa9   : > { %v373_v61 = vrot.slane %v2920_v60, %v2915_v56  ;;  %v377_v62 = vrot.slane %v2920_v60, %v2918_v57  ;;  %v399_v30 = vsub.s32 %v396_v27, %v2912_v50 }
  0xaa   : > { %v2309_v2 = vpop.eup %2308 }
  0xab   : > { %v381_v63 = vsel %vm380_vm0, %v373_v61, -inf  ;;  %v382_v0 = vsel %vm380_vm0, %v377_v62, -inf  ;;  %v2928_v3 = vmul.f32 %v2309_v2, %v325_v47  ;;  %v400_v32 = vrot.slane %v393_v29, %v399_v30 }
  0xac   : > { %v383_v1 = vmax.f32 %v381_v63, %v382_v0 }
  0xad   : > { %v464_v5 = vrot.slane %v2928_v3, %v2915_v56  ;;  %v468_v6 = vrot.slane %v2928_v3, %v2918_v57  ;;  %v407_v33 = vrot.slane %v400_v32, %v399_v30  ;;  %vm363_vm10 = vcmp.gt.f32.partialorder %v2928_v3, %v2920_v60 }
  0xae   : > { %384 = vmax.xlane.f32.xlu0 %v383_v1 }
  0xaf   : > { %v471_v10 = vsel %vm380_vm0, %v464_v5, -inf  ;;  %v472_v11 = vsel %vm380_vm0, %v468_v6, -inf }
  0xb0   : > { %v473_v13 = vmax.f32 %v471_v10, %v472_v11  ;;  %v2558_v11 = vmov 0  }
  0xb1   : > { %v2311_v7 = vpop.eup %2310  ;;  %2305 = vset.pattern.permute.xlu1 %v2558_v11  ;;  %2304 = vset.pattern.permute.xlu0 %v2558_v11 }
  0xb2   : > { %v2936_v14 = vmul.f32 %v2311_v7, %v354_v55  ;;  %474 = vmax.xlane.f32.xlu0 %v473_v13 }
  0xb4   : > { %v520_v16 = vrot.slane %v2936_v14, %v2915_v56  ;;  %v524_v17 = vrot.slane %v2936_v14, %v2918_v57 }
  0xb6   : > { %v527_v18 = vsel %vm380_vm0, %v520_v16, -inf  ;;  %v528_v19 = vsel %vm380_vm0, %v524_v17, -inf }
  0xb7   : > { %v529_v20 = vmax.f32 %v527_v18, %v528_v19 }
  0xb9   : > { %530 = vmax.xlane.f32.xlu1 %v529_v20 }
 0x13b   : > { %v385_v34 = vpop.xlane.xlu0 %384 }
 0x13c   : > { %v390_v35 = vrot.slane %v385_v34, %v2915_v56  ;;  %v2984_v34 = vld [vmem:[%s217_s22 + $0x8] sm:$0xff] }
 0x13e   : > { %vm392_vm1 = vcmp.eq.f32.partialorder %v2920_v60, %v390_v35 }
 0x13f   : > { %v408_v38 = vsel %vm392_vm1, %v407_v33, 256  ;;  %v475_v41 = vpop.xlane.xlu0 %474 }
 0x140   : > { %v412_v39 = vrot.slane %v408_v38, %v2915_v56  ;;  %v416_v40 = vrot.slane %v408_v38, %v2918_v57  ;;  %v480_v45 = vrot.slane %v475_v41, %v2915_v56  ;;  %v818_v38 = vrot.slane %v2984_v34, 4 }
 0x142   : > { %v417_v42 = vsel %vm380_vm0, %v412_v39, 2147483647  ;;  %v418_v43 = vsel %vm380_vm0, %v416_v40, 2147483647  ;;  %vm482_vm3 = vcmp.eq.f32.partialorder %v2928_v3, %v480_v45  ;;  %v819_v40 = vmax.f32 %v2984_v34, %v818_v38 }
 0x143   : > { %vm419_vm2 = vcmp.lt.s32.totalorder %v417_v42, %v418_v43  ;;  %v483_v48 = vsel %vm482_vm3, %v407_v33, 256 }
 0x144   : > { %v420_v46 = vsel %vm419_vm2, %v417_v42, %v418_v43  ;;  %v487_v49 = vrot.slane %v483_v48, %v2915_v56  ;;  %v491_v51 = vrot.slane %v483_v48, %v2918_v57  ;;  %v820_v42 = vrot.slane %v819_v40, 2 }
 0x145   : > { %v422_v47 = vshra.s32 %v420_v46, 16  ;;  %v421_v13 = vand.u32 65535, %v420_v46 }
 0x146   : > { %v531_v52 = vpop.xlane.xlu1 %530  ;;  %v492_v55 = vsel %vm380_vm0, %v487_v49, 2147483647  ;;  %v493_v58 = vsel %vm380_vm0, %v491_v51, 2147483647  ;;  %v821_v45 = vmax.f32 %v819_v40, %v820_v42 }
 0x147   : > { %v424_v53 = vcvt.s32.f32 %v422_v47  ;;  %v536_v54 = vrot.slane %v531_v52, %v2915_v56  ;;  %vm494_vm5 = vcmp.lt.s32.totalorder %v492_v55, %v493_v58  ;;  %v423_v17 = vcvt.s32.f32 %v421_v13 }
 0x148   : > { %v495_v61 = vsel %vm494_vm5, %v492_v55, %v493_v58  ;;  %v822_v47 = vrot.slane %v821_v45, 1  ;;  %v365_v13 = vsel %vm363_vm10, 1, %v2558_v11 }
 0x149   : > { %425 = vmin.xlane.f32.xlu1 %v424_v53  ;;  %vm538_vm4 = vcmp.eq.f32.partialorder %v2936_v14, %v536_v54  ;;  %v497_v0 = vshra.s32 %v495_v61, 16  ;;  %v496_v19 = vand.u32 65535, %v495_v61 }
 0x14a   : > { %v539_v59 = vsel %vm538_vm4, %v407_v33, 256  ;;  %v2982_v33 = vld [vmem:[%s217_s22] sm:$0xff]  ;;  %v2992_v49 = vmax.f32 %v821_v45, %v822_v47 }
 0x14b   : > { %v543_v62 = vrot.slane %v539_v59, %v2915_v56  ;;  %v547_v63 = vrot.slane %v539_v59, %v2918_v57  ;;  %v499_v1 = vcvt.s32.f32 %v497_v0  ;;  %v498_v23 = vcvt.s32.f32 %v496_v19  ;;  %v256_v0 = vld [vmem:[#allocation6 + $0x6] ss:$8 sm:$0x3] }
 0x14c   : > { %v812_v35 = vrot.slane %v2982_v33, 4  ;;  %v825_v52 = vsub.f32 %v2984_v34, %v2992_v49 }
 0x14d   : > { %v548_v2 = vsel %vm380_vm0, %v543_v62, 2147483647  ;;  %v549_v5 = vsel %vm380_vm0, %v547_v63, 2147483647  ;;  %500 = vmin.xlane.f32.xlu1 %v499_v1 }
 0x14e   : > { %vm550_vm6 = vcmp.lt.s32.totalorder %v548_v2, %v549_v5  ;;  %v813_v39 = vmax.f32 %v2982_v33, %v812_v35  ;;  %v828_v54 = vmul.f32 1.442695, %v825_v52 }
 0x14f   : > { %v551_v6 = vsel %vm550_vm6, %v548_v2, %v549_v5  ;;  %v364_v5 = vsel %vm363_vm10, %v2928_v3, %v2920_v60 }
 0x150   : > { %v553_v7 = vshra.s32 %v551_v6, 16  ;;  %v552_v25 = vand.u32 65535, %v551_v6  ;;  %v814_v41 = vrot.slane %v813_v39, 2  ;;  %vm366_vm11 = vcmp.gt.f32.partialorder %v2936_v14, %v364_v5 }
 0x152   : > { %v555_v10 = vcvt.s32.f32 %v553_v7  ;;  %v554_v30 = vcvt.s32.f32 %v552_v25  ;;  %v815_v43 = vmax.f32 %v813_v39, %v814_v41 }
 0x154   : > { %556 = vmin.xlane.f32.xlu1 %v555_v10  ;;  %v816_v46 = vrot.slane %v815_v43, 1 }
 0x156   : > { %v2990_v48 = vmax.f32 %v815_v43, %v816_v46 }
 0x158   : > { %v824_v51 = vsub.f32 %v2982_v33, %v2990_v48 }
 0x1d6   : > { %v2972_v16 = vpop.xlane.xlu1 %425 }
 0x1d7   : > { %vm427_vm7 = vcmp.eq.f32.partialorder %v424_v53, %v2972_v16  ;;  %v826_v53 = vmul.f32 1.442695, %v824_v51 }
 0x1d8   : > { %v428_v18 = vsel %vm427_vm7, %v423_v17, inf }
 0x1d9   : > { %429 = vmin.xlane.f32.xlu0 %v428_v18  ;;  %2312 = vpow2.f32 %v826_v53 }
 0x1da   : > { %v2975_v20 = vpop.xlane.xlu1 %500  ;;  %2314 = vpow2.f32 %v828_v54 }
 0x1db   : > { %vm502_vm8 = vcmp.eq.f32.partialorder %v499_v1, %v2975_v20  ;;  %v258_v1 = vld [vmem:[#allocation6 + $0x7] ss:$8 sm:$0x3]  ;;  %2316 = vrcp.f32 %v256_v0  ;;  %v507_v18 = vcvt.f32.s32 %v2975_v20  ;;  %v3017_v20 = vld [vmem:[#allocation6 + $0x5] ss:$8 sm:$0x3] }
 0x1dc   : > { %v503_v27 = vsel %vm502_vm8, %v498_v23, inf  ;;  %2318 = vrcp.f32 %v258_v1  ;;  %v367_v23 = vsel %vm366_vm11, %v2936_v14, %v364_v5  ;;  %v662_v52 = vrot.slane %v3017_v20, %v2915_v56 }
 0x1dd   : > { %504 = vmin.xlane.f32.xlu0 %v503_v27  ;;  %2320 = vlog2.f32 %v256_v0  ;;  %v3015_v27 = vld [vmem:[#allocation6 + $0x4] ss:$8 sm:$0x3]  ;;  %v451_v41 = vrot.slane %v367_v23, %v2915_v56  ;;  %v455_v43 = vrot.slane %v367_v23, %v2918_v57  ;;  %v666_v53 = vrot.slane %v3017_v20, %v2918_v57 }
 0x1de   : > { %v630_v46 = vrot.slane %v3015_v27, %v2915_v56  ;;  %v634_v47 = vrot.slane %v3015_v27, %v2918_v57  ;;  %2322 = vlog2.f32 %v258_v1 }
 0x1e1   : > { %v2978_v29 = vpop.xlane.xlu1 %556 }
 0x1e2   : > { %vm558_vm9 = vcmp.eq.f32.partialorder %v555_v10, %v2978_v29  ;;  %v432_v10 = vcvt.f32.s32 %v2972_v16  ;;  %v563_v60 = vcvt.f32.s32 %v2978_v29  ;;  %v368_v16 = vsel %vm366_vm11, 2, %v365_v13 }
 0x1e3   : > { %v559_v32 = vsel %vm558_vm9, %v554_v30, inf  ;;  %v2313_v55 = vpop.eup %2312  ;;  %v440_v40 = vrot.slane %v368_v16, %v2915_v56  ;;  %v444_v14 = vrot.slane %v368_v16, %v2918_v57 }
 0x1e4   : > { %560 = vmin.xlane.f32.xlu0 %v559_v32  ;;  %v2315_v58 = vpop.eup %2314  ;;  %v830_v59 = vrot.slane %v2313_v55, 4  ;;  %v433_v25 = vshll.u32 %v432_v10, 16  ;;  %v508_v32 = vshll.u32 %v507_v18, 16  ;;  %v564_v35 = vshll.u32 %v563_v60, 16 }
 0x1e5   : > { %v836_v61 = vrot.slane %v2315_v58, 4  ;;  %v3022_v42 = vpop.eup %2316 }
 0x1e6   : > { %v831_v62 = vadd.f32 %v2313_v55, %v830_v59  ;;  %v3029_v51 = vpop.eup %2318  ;;  %v582_v59 = vstv %s3010_s26  ;;  %v645_v0 = vrot.slane %v3022_v42, %v2915_v56  ;;  %v649_v1 = vrot.slane %v3022_v42, %v2918_v57 }
 0x1e7   : > { %v837_v63 = vadd.f32 %v2315_v58, %v836_v61  ;;  %v2321_v55 = vpop.eup %2320  ;;  %v575_v58 = vstv %s3006_s21  ;;  %v589_v61 = vstv %s3012_s23 }
 0x1e8   : > { %v832_v2 = vrot.slane %v831_v62, 2 }
 0x1e9   : > { %v838_v6 = vrot.slane %v837_v63, 2 }
 0x1ea   : > { %v833_v17 = vadd.f32 %v832_v2, %v831_v62  ;;  %v677_v2 = vrot.slane %v3029_v51, %v2915_v56 }
 0x1eb   : > { %v839_v3 = vadd.f32 %v838_v6, %v837_v63  ;;  %v3048_v6 = vmul.f32 0.6931472, %v2321_v55 }
 0x1ec   : > { %v834_v30 = vrot.slane %v833_v17, 1 }
 0x1ed   : > { %v840_v29 = vrot.slane %v839_v3, 1 }
 0x1ee   : > { %v835_v54 = vadd.f32 %v834_v30, %v833_v17 }
 0x1ef   : > { %v841_v63 = vadd.f32 %v840_v29, %v839_v3 }
 0x1f0   : > { %2324 = vlog2.f32 %v835_v54 }
 0x1f1   : > { %2326 = vlog2.f32 %v841_v63 }
 0x266   : > { %v430_v7 = vpop.xlane.xlu0 %429 }
 0x267   : > { %v431_v19 = vcvt.f32.s32 %v430_v7  ;;  %v681_v7 = vrot.slane %v3029_v51, %v2918_v57 }
 0x269   : > { %v434_v39 = vadd.s32 %v433_v25, %v431_v19 }
 0x26a   : > { %v505_v11 = vpop.xlane.xlu0 %504 }
 0x26b   : > { %v506_v38 = vcvt.f32.s32 %v505_v11  ;;  %vm435_vm12 = vcmp.eq.s32.totalorder %v2944_v22, %v434_v39  ;;  %vm436_vm13 = vcmp.eq.s32.totalorder %v2947_v26, %v434_v39 }
 0x26c   : > { %v445_v10 = vsel %vm435_vm12, 0, %v440_v40  ;;  %v446_v13 = vsel %vm436_vm13, 0, %v444_v14  ;;  %v458_v18 = vsel %vm435_vm12, 1.0, %v451_v41  ;;  %v459_v60 = vsel %vm436_vm13, 1.0, %v455_v43 }
 0x26d   : > { %v509_v45 = vadd.s32 %v508_v32, %v506_v38 }
 0x26f   : > { %vm510_vm14 = vcmp.eq.s32.totalorder %v2944_v22, %v509_v45  ;;  %vm511_vm15 = vcmp.eq.s32.totalorder %v2947_v26, %v509_v45 }
 0x270   : > { %v512_v3 = vsel %vm510_vm14, 1, %v445_v10  ;;  %v513_v19 = vsel %vm511_vm15, 1, %v446_v13  ;;  %v514_v23 = vsel %vm510_vm14, 1.0, %v458_v18  ;;  %v515_v16 = vsel %vm511_vm15, 1.0, %v459_v60 }
 0x271   : > { %v561_v62 = vpop.xlane.xlu0 %560 }
 0x272   : > { %v562_v5 = vcvt.f32.s32 %v561_v62 }
 0x274   : > { %v565_v17 = vadd.s32 %v564_v35, %v562_v5  ;;  %v3054_v35 = vpop.eup %2322 }
 0x275   : > { %v3074_v62 = vpop.eup %2324 }
 0x276   : > { %vm566_vm1 = vcmp.eq.s32.totalorder %v2944_v22, %v565_v17  ;;  %vm567_vm2 = vcmp.eq.s32.totalorder %v2947_v26, %v565_v17  ;;  %v3084_v10 = vpop.eup %2326 }
 0x277   : > { %v568_v25 = vsel %vm566_vm1, 2, %v512_v3  ;;  %v569_v11 = vsel %vm567_vm2, 2, %v513_v19  ;;  %v570_v30 = vsel %vm566_vm1, 1.0, %v514_v23  ;;  %v571_v32 = vsel %vm567_vm2, 1.0, %v515_v16 }
 0x278   : > { %vm572_vm3 = vcmp.eq.s32.totalorder %v568_v25, 0  ;;  %vm573_vm4 = vcmp.eq.s32.totalorder %v569_v11, 0  ;;  %vm578_vm5 = vcmp.eq.s32.totalorder %v568_v25, 1  ;;  %vm579_vm6 = vcmp.eq.s32.totalorder %v569_v11, 1 }
 0x279   : > { %v576_v38 = vsel %vm572_vm3, %v575_v58, 0  ;;  %v577_v29 = vsel %vm573_vm4, %v575_v58, 0  ;;  %vm585_vm7 = vcmp.eq.s32.totalorder %v568_v25, 2  ;;  %vm586_vm8 = vcmp.eq.s32.totalorder %v569_v11, 2 }
 0x27a   : > { %v583_v39 = vsel %vm578_vm5, %v582_v59, %v576_v38  ;;  %v584_v40 = vsel %vm579_vm6, %v582_v59, %v577_v29  ;;  %vm592_vm9 = vcmp.lt.f32.partialorder %v570_v30, 0.5  ;;  %vm593_vm10 = vcmp.lt.f32.partialorder %v571_v32, 0.5 }
 0x27b   : > { %v590_v14 = vsel %vm585_vm7, %v589_v61, %v583_v39  ;;  %v591_v41 = vsel %vm586_vm8, %v589_v61, %v584_v40  ;;  %v598_v43 = vsel %vm572_vm3, %v2821_v4, 0.0  ;;  %v599_v45 = vsel %vm573_vm4, %v2821_v4, 0.0 }
 0x27c   : > { %v3066_v54 = vsel %vm592_vm9, 0, %v590_v14  ;;  %v3068_v55 = vsel %vm593_vm10, 0, %v591_v41  ;;  %v600_v58 = vsel %vm572_vm3, %v2830_v8, 0.0  ;;  %v601_v59 = vsel %vm573_vm4, %v2830_v8, 0.0 }
 0x27d   : > { %v602_v61 = vsel %vm572_vm3, %v2836_v9, 0.0  ;;  %v603_v63 = vsel %vm573_vm4, %v2836_v9, 0.0  ;;  %v604_v4 = vsel %vm572_vm3, %v2847_v12, 0.0  ;;  %v605_v5 = vsel %vm573_vm4, %v2847_v12, 0.0 }
 0x27e   : > { %v606_v13 = vsel %vm578_vm5, %v2857_v15, %v598_v43  ;;  %v607_v8 = vsel %vm579_vm6, %v2857_v15, %v599_v45  ;;  %v608_v17 = vsel %vm578_vm5, %v2867_v21, %v600_v58  ;;  %v609_v9 = vsel %vm579_vm6, %v2867_v21, %v601_v59 }
 0x27f   : > { %v610_v18 = vsel %vm578_vm5, %v2874_v24, %v602_v61  ;;  %v611_v12 = vsel %vm579_vm6, %v2874_v24, %v603_v63  ;;  %v612_v60 = vsel %vm578_vm5, %v2884_v28, %v604_v4  ;;  %v613_v3 = vsel %vm579_vm6, %v2884_v28, %v605_v5 }
 0x280   : > { %v614_v15 = vsel %vm585_vm7, %v2891_v31, %v606_v13  ;;  %v615_v19 = vsel %vm586_vm8, %v2891_v31, %v607_v8  ;;  %v616_v21 = vsel %vm585_vm7, %v2899_v37, %v608_v17  ;;  %v617_v23 = vsel %vm586_vm8, %v2899_v37, %v609_v9 }
 0x281   : > { %v618_v24 = vsel %vm585_vm7, %v2896_v36, %v610_v18  ;;  %v619_v16 = vsel %vm586_vm8, %v2896_v36, %v611_v12  ;;  %v620_v28 = vsel %vm585_vm7, %v2907_v44, %v612_v60  ;;  %v621_v30 = vsel %vm586_vm8, %v2907_v44, %v613_v3 }
 0x282   : > { %v622_v32 = vadd.f32 %v618_v24, %v614_v15  ;;  %v623_v31 = vadd.f32 %v619_v16, %v615_v19  ;;  %v654_v38 = vadd.f32 %v620_v28, %v616_v21  ;;  %v655_v29 = vadd.f32 %v621_v30, %v617_v23 }
 0x283   : > { %v686_v39 = vsub.f32 %v618_v24, %v614_v15  ;;  %v687_v40 = vsub.f32 %v619_v16, %v615_v19  ;;  %v707_v14 = vsub.f32 %v620_v28, %v616_v21  ;;  %v708_v37 = vsub.f32 %v621_v30, %v617_v23 }
 0x284   : > { %v624_v41 = vmul.f32 0.5, %v622_v32  ;;  %v625_v43 = vmul.f32 0.5, %v623_v31  ;;  %v656_v45 = vmul.f32 0.5, %v654_v38  ;;  %v657_v58 = vmul.f32 0.5, %v655_v29 }
 0x285   : > { %2328 = vlog2.f32 %v686_v39  ;;  %v845_v36 = vrot.slane %v3066_v54, %v2915_v56  ;;  %v849_v25 = vrot.slane %v3068_v55, %v2915_v56  ;;  %vm596_vm11 = vcmp.ne.s32.totalorder %v3066_v54, 0 }
 0x286   : > { %v637_v44 = vsub.f32 %v624_v41, %v630_v46  ;;  %v638_v11 = vsub.f32 %v625_v43, %v634_v47  ;;  %v669_v59 = vsub.f32 %v656_v45, %v662_v52  ;;  %v670_v61 = vsub.f32 %v657_v58, %v666_v53 }
 0x287   : > { %2330 = vlog2.f32 %v687_v40  ;;  %vm850_vm12 = vcmp.eq.s32.totalorder %v2912_v50, %v845_v36  ;;  %vm851_vm13 = vcmp.eq.s32.totalorder %v2912_v50, %v849_v25  ;;  %vm597_vm14 = vcmp.ne.s32.totalorder %v3068_v55, 0 }
 0x288   : > { %v639_v46 = vmul.f32 10.0, %v637_v44  ;;  %v640_v63 = vmul.f32 10.0, %v638_v11  ;;  %v671_v27 = vmul.f32 10.0, %v669_v59  ;;  %v672_v47 = vmul.f32 10.0, %v670_v61 }
 0x289   : > { %2332 = vlog2.f32 %v707_v14  ;;  %v852_v4 = vsel %vm850_vm12, %v2982_v33, 0.0  ;;  %v853_v52 = vsel %vm851_vm13, %v2984_v34, 0.0  ;;  %v2559_v5 = vmov 0.0  }
 0x28a   : > { %v2166_v20 = vsel %vm596_vm11, 1.0, %v2559_v5  ;;  %v652_v53 = vmul.f32 %v645_v0, %v639_v46  ;;  %v653_v13 = vmul.f32 %v649_v1, %v640_v63  ;;  %v684_v8 = vmul.f32 %v677_v2, %v671_v27  ;;  %v3159_v0 = vld [vmem:[%s2787_s30] sm:$0xff]  ;;  %s2232_s30 = sshll.u32 %s2688_s15, 4  ;;  %s2560_s15 = smov [#allocation12]  }
 0x28b   : > { %v685_v33 = vmul.f32 %v681_v7, %v672_v47  ;;  %2334 = vlog2.f32 %v708_v37  ;;  %v854_v34 = vrot.slane %v852_v4, 4  ;;  %v860_v17 = vrot.slane %v853_v52, 4  ;;  %s3878_s20 = scalar_lea.hbm %s3926_s5, %s2232_s30  ;;  %s2482_s7 = sshll.u32 %s2560_s15, 4  ;;  %s2483_s7 = int_to_ptr.vmem [resolvable:$false] %s2482_s7 }
 0x28c   : > { %v2167_v9 = vsel %vm597_vm14, 1.0, %v2559_v5  ;;  %v731_v18 = vcombine.low %v652_v53, %v653_v13  ;;  %v878_v1 = vsel %vm380_vm0, %v2166_v20, 0.0  ;;  %v269_v2 = vmul.f32 0.6931472, %v3054_v35  ;;  %s2484_s14 = scalar_lea.vmem %s2483_s7, 32  ;;  %p2485_p10 = scmp.lt.s32.totalorder %s3880_s6, %s2483_s7 }
 0x28d   : > { %v742_v42 = vcombine.low %v684_v8, %v685_v33  ;;  %v879_v12 = vsel %vm380_vm0, %v2167_v9, 0.0  ;;  %v855_v60 = vadd.f32 %v854_v34, %v852_v4  ;;  %v861_v51 = vadd.f32 %v860_v17, %v853_v52  ;;  %p2486_p8 = scmp.lt.s32.totalorder %s2484_s14, %s2478_s25 }
 0x28e   : > { %v880_v7 = vadd.f32 %v879_v12, %v878_v1  ;;  %v696_v3 = vrot.slane %v3048_v6, %v2915_v56  ;;  %v867_v19 = vmul.f32 0.6931472, %v3074_v62  ;;  %v733_v21 = vsub.f32 %v3159_v0, %v731_v18 }
 0x28f   : > { %v743_v15 = vrot.slane %v742_v42, 7  ;;  %v2329_v23 = vpop.eup %2328  ;;  %v856_v24 = vrot.slane %v855_v60, 2  ;;  %v862_v16 = vrot.slane %v861_v51, 2  ;;  %v869_v28 = vmul.f32 0.6931472, %v3084_v10  ;;  %p2487_p11 = por %p2486_p8, %p2485_p10 }
 0x290   : > { %881 = vadd.xlane.f32.xlu0 %v880_v7  ;;  %v700_v35 = vrot.slane %v3048_v6, %v2918_v57  ;;  %v689_v30 = vmul.f32 0.6931472, %v2329_v23  ;;  %v734_v32 = vand.u32 2147483647, %v733_v21  ;;  %v717_v29 = vrot.slane %v269_v2, %v2915_v56 }
 0x291   : > { %v745_v31 = vsub.f32 %v3159_v0, %v743_v15  ;;  %v2331_v38 = vpop.eup %2330  ;;  %v857_v39 = vadd.f32 %v856_v24, %v855_v60  ;;  %v863_v62 = vadd.f32 %v862_v16, %v861_v51  ;;  %v721_v40 = vrot.slane %v269_v2, %v2918_v57  ;;  %p2488_p9 = pnand %p2487_p11, %p2481_p0 }
 0x292   : > { %v691_v14 = vmul.f32 0.6931472, %v2331_v38  ;;  %v703_v37 = vsub.f32 %v689_v30, %v696_v3  ;;  %v870_v41 = vadd.f32 %v867_v19, %v2990_v48  ;;  %v871_v6 = vadd.f32 %v869_v28, %v2992_v49 }
 0x293   : > { %v2333_v10 = vpop.eup %2332  ;;  %v858_v43 = vrot.slane %v857_v39, 1  ;;  %v864_v45 = vrot.slane %v863_v62, 1  ;;  %v746_v58 = vand.u32 2147483647, %v745_v31  ;;  %v736_v11 = vmul.f32 0.5, %v734_v32 }
 0x294   : > { %v704_v36 = vsub.f32 %v691_v14, %v700_v35  ;;  %v705_v25 = vmul.f32 5.0, %v703_v37  ;;  %v710_v44 = vmul.f32 0.6931472, %v2333_v10  ;;  %v2159_v12 = vadd.f32 -0.5, %v734_v32 }
 0x295   : > { %v2335_v59 = vpop.eup %2334  ;;  %v859_v61 = vadd.f32 %v858_v43, %v857_v39  ;;  %v865_v46 = vadd.f32 %v864_v45, %v863_v62  ;;  %v748_v63 = vmul.f32 0.5, %v746_v58  ;;  %v737_v49 = vmul.f32 %v736_v11, %v734_v32 }
 0x296   : > { %v706_v27 = vmul.f32 5.0, %v704_v36  ;;  %v712_v57 = vmul.f32 0.6931472, %v2335_v59  ;;  %v724_v47 = vsub.f32 %v710_v44, %v717_v29  ;;  %v2160_v17 = vadd.f32 -0.5, %v746_v58 }
 0x297   : > { %v872_v4 = vsub.f32 %v870_v41, %v859_v61  ;;  %v3176_v52 = vsub.f32 %v871_v6, %v865_v46  ;;  %v749_v48 = vmul.f32 %v748_v63, %v746_v58  ;;  %vm747_vm15 = vcmp.lt.f32.partialorder %v746_v58, 1.0 }
 0x298   : > { %v725_v20 = vsub.f32 %v712_v57, %v721_v40  ;;  %v726_v53 = vmul.f32 5.0, %v724_v47  ;;  %v759_v13 = vcombine.low %v705_v25, %v706_v27  ;;  %vm735_vm1 = vcmp.lt.f32.partialorder %v734_v32, 1.0 }
 0x299   : > { %v892_v8 = vsel %vm596_vm11, 0.0, %v872_v4  ;;  %v883_v33 = vsel %vm596_vm11, %v872_v4, 0.0  ;;  %v884_v34 = vsel %vm597_vm14, %v3176_v52, 0.0  ;;  %v751_v2 = vsel %vm747_vm15, %v749_v48, %v2160_v17 }
 0x29a   : > { %v727_v9 = vmul.f32 5.0, %v725_v20  ;;  %v3186_v18 = vrot.slane %v892_v8, %v2915_v56  ;;  %v885_v42 = vsel %vm380_vm0, %v883_v33, 0.0  ;;  %v886_v1 = vsel %vm380_vm0, %v884_v34, 0.0 }
 0x29b   : > { %v760_v60 = vrot.slane %v759_v13, 6  ;;  %v3191_v51 = vadd.f32 %v886_v1, %v885_v42  ;;  %v2161_v7 = vrot.slane %v751_v2, 9  ;;  %v739_v15 = vsel %vm735_vm1, %v737_v49, %v2159_v12 }
 0x29c   : > { %903 = vbcast.lane.b32.xlu1 %v3186_v18, 264  ;;  %v776_v3 = vcombine.low %v726_v53, %v727_v9  ;;  %v798_v37 = vsub.s32 4, %v2912_v50  ;;  %v893_v54 = vsel %vm597_vm14, 0.0, %v3176_v52  ;;  %vm1105_vm1 = vcmp.lt.s32.totalorder %v2944_v22, %v2912_v50 }
 0x29d   : > { %v762_v19 = vsub.f32 %v3159_v0, %v760_v60  ;;  %v756_v21 = vadd.f32 %v2161_v7, %v739_v15  ;;  %v3222_v44 = vrot.slane %v893_v54, %v2915_v56 }
 0x29e   : > { %v777_v23 = vrot.slane %v776_v3, 5 }
 0x29f   : > { %v763_v24 = vand.u32 2147483647, %v762_v19 }
 0x2a0   : > { %907 = vbcast.lane.b32.xlu1 %v3186_v18, 272  ;;  %v779_v16 = vsub.f32 %v3159_v0, %v777_v23 }
 0x2a1   : > { %v765_v28 = vmul.f32 0.5, %v763_v24  ;;  %v2162_v31 = vadd.f32 -0.5, %v763_v24  ;;  %vm764_vm2 = vcmp.lt.f32.partialorder %v763_v24, 1.0 }
 0x2a2   : > { %v780_v35 = vand.u32 2147483647, %v779_v16 }
 0x2a3   : > { %v766_v30 = vmul.f32 %v765_v28, %v763_v24 }
 0x2a4   : > { %911 = vbcast.lane.b32.xlu1 %v3186_v18, 280  ;;  %v782_v32 = vmul.f32 0.5, %v780_v35  ;;  %v2164_v62 = vadd.f32 -0.5, %v780_v35  ;;  %vm781_vm3 = vcmp.lt.f32.partialorder %v780_v35, 1.0 }
 0x2a5   : > { %v768_v38 = vsel %vm764_vm2, %v766_v30, %v2162_v31 }
 0x2a6   : > { %899 = vbcast.lane.b32.xlu0 %v3186_v18, 256  ;;  %v2163_v29 = vrot.slane %v768_v38, 10  ;;  %v783_v39 = vmul.f32 %v782_v32, %v780_v35 }
 0x2a8   : > { %919 = vbcast.lane.b32.xlu1 %v3186_v18, 296  ;;  %v773_v40 = vadd.f32 %v2163_v29, %v756_v21  ;;  %v785_v14 = vsel %vm781_vm3, %v783_v39, %v2164_v62 }
 0x2a9   : > { %v2165_v0 = vrot.slane %v785_v14, 11 }
 0x2aa   : > { %915 = vbcast.lane.b32.xlu0 %v3186_v18, 288 }
 0x2ab   : > { %v790_v41 = vadd.f32 %v2165_v0, %v773_v40 }
 0x2ac   : > { %927 = vbcast.lane.b32.xlu1 %v3186_v18, 312 }
 0x2ad   : > { %v795_v10 = vrot.slane %v790_v41, %v2915_v56  ;;  %v799_v43 = vrot.slane %v790_v41, %v798_v37 }
 0x2ae   : > { %923 = vbcast.lane.b32.xlu0 %v3186_v18, 304 }
 0x2af   : > { %v802_v45 = vsel %vm596_vm11, %v795_v10, 0.0  ;;  %v803_v6 = vsel %vm597_vm14, %v799_v43, 0.0 }
 0x2b0   : > { %935 = vbcast.lane.b32.xlu1 %v3186_v18, 328  ;;  %v804_v58 = vsel %vm380_vm0, %v802_v45, 0.0  ;;  %v805_v36 = vsel %vm380_vm0, %v803_v6, 0.0  ;;  %vm3933_vm0 = vcmask 7168  }
 0x2b1   : > { %v806_v25 = vadd.f32 %v805_v36, %v804_v58 }
 0x2b2   : > { %931 = vbcast.lane.b32.xlu0 %v3186_v18, 320 }
 0x2b4   : > { %943 = vbcast.lane.b32.xlu1 %v3186_v18, 344 }
 0x2b6   : > { %939 = vbcast.lane.b32.xlu0 %v3186_v18, 336 }
 0x2b8   : > { %951 = vbcast.lane.b32.xlu1 %v3186_v18, 360 }
 0x2ba   : > { %947 = vbcast.lane.b32.xlu0 %v3186_v18, 352 }
 0x2bc   : > { %959 = vbcast.lane.b32.xlu1 %v3186_v18, 376 }
 0x2be   : > { %955 = vbcast.lane.b32.xlu0 %v3186_v18, 368 }
 0x2c0   : > { %970 = vbcast.lane.b32.xlu1 %v3222_v44, 264 }
 0x2c2   : > { %966 = vbcast.lane.b32.xlu0 %v3222_v44, 256 }
 0x2c4   : > { %978 = vbcast.lane.b32.xlu1 %v3222_v44, 280 }
 0x2c6   : > { %974 = vbcast.lane.b32.xlu0 %v3222_v44, 272 }
 0x2c8   : > { %986 = vbcast.lane.b32.xlu1 %v3222_v44, 296 }
 0x2ca   : > { %982 = vbcast.lane.b32.xlu0 %v3222_v44, 288 }
 0x2cc   : > { %994 = vbcast.lane.b32.xlu1 %v3222_v44, 312 }
 0x2ce   : > { %990 = vbcast.lane.b32.xlu0 %v3222_v44, 304 }
 0x2d0   : > { %1002 = vbcast.lane.b32.xlu1 %v3222_v44, 328 }
 0x2d2   : > { %998 = vbcast.lane.b32.xlu0 %v3222_v44, 320 }
 0x2d4   : > { %1010 = vbcast.lane.b32.xlu1 %v3222_v44, 344 }
 0x2d6   : > { %1006 = vbcast.lane.b32.xlu0 %v3222_v44, 336 }
 0x2d8   : > { %1018 = vbcast.lane.b32.xlu1 %v3222_v44, 360 }
 0x2da   : > { %1014 = vbcast.lane.b32.xlu0 %v3222_v44, 352 }
 0x2dc   : > { %1026 = vbcast.lane.b32.xlu1 %v3222_v44, 376 }
 0x2de   : > { %1022 = vbcast.lane.b32.xlu0 %v3222_v44, 368 }
 0x300   : > { %888 = vadd.xlane.f32.xlu1 %v3191_v51 }
 0x304   : > { %807 = vadd.xlane.f32.xlu1 %v806_v25 }
 0x30e   : > { %v904_v55 = vpop.permute.xlu1 %903 }
 0x30f   : > { %1030 = vst.msk [vmem:[#allocation2 + $0x8] sm:$0xff] %vm3933_vm0, %v904_v55 }
 0x312   : > { %v908_v11 = vpop.permute.xlu1 %907 }
 0x313   : > { %1031 = vst.msk [vmem:[#allocation2 + $0x10] sm:$0xff] %vm3933_vm0, %v908_v11 }
 0x316   : > { %v912_v59 = vpop.permute.xlu1 %911  ;;  %v1063_v61 = vld [vmem:[#allocation2 + $0x8] sm:$0xff] }
 0x317   : > { %1032 = vst.msk [vmem:[#allocation2 + $0x18] sm:$0xff] %vm3933_vm0, %v912_v59  ;;  %1076 = vperm.xlu1 %2305, %v1063_v61  }
 0x31a   : > { %v920_v46 = vpop.permute.xlu1 %919  ;;  %v1064_v63 = vld [vmem:[#allocation2 + $0x10] sm:$0xff] }
 0x31b   : > { %1034 = vst.msk [vmem:[#allocation2 + $0x28] sm:$0xff] %vm3933_vm0, %v920_v46  ;;  %1081 = vperm.xlu1 %2305, %v1064_v63  }
 0x31d   : > { %v3245_v27 = vpop.xlane.xlu0 %881 }
 0x31e   : > { %v928_v57 = vpop.permute.xlu1 %927  ;;  %v1065_v8 = vld [vmem:[#allocation2 + $0x18] sm:$0xff] }
 0x31f   : > { %1036 = vst.msk [vmem:[#allocation2 + $0x38] sm:$0xff] %vm3933_vm0, %v928_v57 }
 0x321   : > { %v900_v47 = vpop.permute.xlu0 %899 }
 0x322   : > { %1029 = vst.msk [vmem:[#allocation2] sm:$0xff] %vm3933_vm0, %v900_v47  ;;  %v936_v4 = vpop.permute.xlu1 %935  ;;  %v1185_v9 = vld [vmem:[#allocation2 + $0x28] sm:$0xff] }
 0x323   : > { %1038 = vst.msk [vmem:[#allocation2 + $0x48] sm:$0xff] %vm3933_vm0, %v936_v4 }
 0x325   : > { %v916_v52 = vpop.permute.xlu0 %915 }
 0x326   : > { %1033 = vst.msk [vmem:[#allocation2 + $0x20] sm:$0xff] %vm3933_vm0, %v916_v52  ;;  %v944_v48 = vpop.permute.xlu1 %943  ;;  %v1187_v60 = vld [vmem:[#allocation2 + $0x38] sm:$0xff] }
 0x327   : > { %1040 = vst.msk [vmem:[#allocation2 + $0x58] sm:$0xff] %vm3933_vm0, %v944_v48  ;;  %v3280_v48 = vadd.s32 8, %v2912_v50 }
 0x329   : > { %v924_v20 = vpop.permute.xlu0 %923  ;;  %v1062_v53 = vld [vmem:[#allocation2] sm:$0xff]  ;;  %vm1107_vm4 = vcmp.lt.s32.totalorder %v2944_v22, %v3280_v48 }
 0x32a   : > { %1035 = vst.msk [vmem:[#allocation2 + $0x30] sm:$0xff] %vm3933_vm0, %v924_v20  ;;  %1071 = vperm.xlu0 %2304, %v1062_v53   ;;  %v952_v13 = vpop.permute.xlu1 %951  ;;  %v1304_v2 = vld [vmem:[#allocation2 + $0x48] sm:$0xff]  ;;  %v3285_v20 = vadd.s32 16, %v2912_v50 }
 0x32b   : > { %1042 = vst.msk [vmem:[#allocation2 + $0x68] sm:$0xff] %vm3933_vm0, %v952_v13 }
 0x32c   : > { %vm1109_vm10 = vcmp.lt.s32.totalorder %v2944_v22, %v3285_v20 }
 0x32d   : > { %v932_v49 = vpop.permute.xlu0 %931  ;;  %v1184_v33 = vld [vmem:[#allocation2 + $0x20] sm:$0xff] }
 0x32e   : > { %1037 = vst.msk [vmem:[#allocation2 + $0x40] sm:$0xff] %vm3933_vm0, %v932_v49  ;;  %1086 = vperm.xlu0 %2304, %v1065_v8   ;;  %1194 = vperm.xlu1 %2305, %v1184_v33   ;;  %v960_v34 = vpop.permute.xlu1 %959  ;;  %v1306_v30 = vld [vmem:[#allocation2 + $0x58] sm:$0xff] }
 0x32f   : > { %1044 = vst.msk [vmem:[#allocation2 + $0x78] sm:$0xff] %vm3933_vm0, %v960_v34 }
 0x331   : > { %v940_v17 = vpop.permute.xlu0 %939  ;;  %v1186_v42 = vld [vmem:[#allocation2 + $0x30] sm:$0xff] }
 0x332   : > { %1039 = vst.msk [vmem:[#allocation2 + $0x50] sm:$0xff] %vm3933_vm0, %v940_v17  ;;  %1199 = vperm.xlu0 %2304, %v1185_v9   ;;  %1204 = vperm.xlu1 %2305, %v1186_v42   ;;  %v971_v1 = vpop.permute.xlu1 %970  ;;  %v1423_v3 = vld [vmem:[#allocation2 + $0x68] sm:$0xff]  ;;  %v3302_v42 = vadd.s32 24, %v2912_v50 }
 0x333   : > { %1046 = vst.msk [vmem:[#allocation2 + $0x88] sm:$0xff] %vm3933_vm0, %v971_v1 }
 0x335   : > { %v948_v12 = vpop.permute.xlu0 %947  ;;  %v1303_v15 = vld [vmem:[#allocation2 + $0x40] sm:$0xff] }
 0x336   : > { %1041 = vst.msk [vmem:[#allocation2 + $0x60] sm:$0xff] %vm3933_vm0, %v948_v12  ;;  %1318 = vperm.xlu0 %2304, %v1304_v2   ;;  %1209 = vperm.xlu1 %2305, %v1187_v60   ;;  %v979_v51 = vpop.permute.xlu1 %978  ;;  %v1425_v0 = vld [vmem:[#allocation2 + $0x78] sm:$0xff]  ;;  %v1188_v12 = vadd.s32 32, %v2912_v50  ;;  %v1189_v2 = vadd.s32 32, %v3280_v48 }
 0x337   : > { %1048 = vst.msk [vmem:[#allocation2 + $0x98] sm:$0xff] %vm3933_vm0, %v979_v51 }
 0x339   : > { %v956_v7 = vpop.permute.xlu0 %955  ;;  %v1305_v24 = vld [vmem:[#allocation2 + $0x50] sm:$0xff] }
 0x33a   : > { %1043 = vst.msk [vmem:[#allocation2 + $0x70] sm:$0xff] %vm3933_vm0, %v956_v7  ;;  %1437 = vperm.xlu0 %2304, %v1423_v3   ;;  %1313 = vperm.xlu1 %2305, %v1303_v15   ;;  %v987_v19 = vpop.permute.xlu1 %986  ;;  %v1542_v21 = vld [vmem:[#allocation2 + $0x88] sm:$0xff]  ;;  %v1190_v3 = vadd.s32 32, %v3285_v20 }
 0x33b   : > { %1050 = vst.msk [vmem:[#allocation2 + $0xa8] sm:$0xff] %vm3933_vm0, %v987_v19 }
 0x33d   : > { %v967_v23 = vpop.permute.xlu0 %966  ;;  %v1422_v38 = vld [vmem:[#allocation2 + $0x60] sm:$0xff] }
 0x33e   : > { %1045 = vst.msk [vmem:[#allocation2 + $0x80] sm:$0xff] %vm3933_vm0, %v967_v23  ;;  %1323 = vperm.xlu1 %2305, %v1305_v24   ;;  %1556 = vperm.xlu0 %2304, %v1542_v21   ;;  %v995_v16 = vpop.permute.xlu1 %994  ;;  %v1544_v28 = vld [vmem:[#allocation2 + $0x98] sm:$0xff]  ;;  %v1191_v21 = vadd.s32 32, %v3302_v42 }
 0x33f   : > { %1052 = vst.msk [vmem:[#allocation2 + $0xb8] sm:$0xff] %vm3933_vm0, %v995_v16 }
 0x341   : > { %v975_v35 = vpop.permute.xlu0 %974  ;;  %v1424_v62 = vld [vmem:[#allocation2 + $0x70] sm:$0xff] }
 0x342   : > { %1047 = vst.msk [vmem:[#allocation2 + $0x90] sm:$0xff] %vm3933_vm0, %v975_v35  ;;  %1328 = vperm.xlu1 %2305, %v1306_v30   ;;  %1566 = vperm.xlu0 %2304, %v1544_v28   ;;  %v1003_v31 = vpop.permute.xlu1 %1002  ;;  %v1661_v55 = vld [vmem:[#allocation2 + $0xa8] sm:$0xff]  ;;  %v1308_v35 = vadd.s32 64, %v3280_v48 }
 0x343   : > { %1054 = vst.msk [vmem:[#allocation2 + $0xc8] sm:$0xff] %vm3933_vm0, %v1003_v31 }
 0x345   : > { %v983_v32 = vpop.permute.xlu0 %982  ;;  %v1541_v10 = vld [vmem:[#allocation2 + $0x80] sm:$0xff] }
 0x346   : > { %1049 = vst.msk [vmem:[#allocation2 + $0xa0] sm:$0xff] %vm3933_vm0, %v983_v32  ;;  %1432 = vperm.xlu1 %2305, %v1422_v38   ;;  %v1011_v29 = vpop.permute.xlu1 %1010  ;;  %v1663_v36 = vld [vmem:[#allocation2 + $0xb8] sm:$0xff] }
 0x347   : > { %1056 = vst.msk [vmem:[#allocation2 + $0xd8] sm:$0xff] %vm3933_vm0, %v1011_v29  ;;  %v1307_v29 = vadd.s32 64, %v2912_v50 }
 0x349   : > { %v991_v39 = vpop.permute.xlu0 %990  ;;  %v1543_v6 = vld [vmem:[#allocation2 + $0x90] sm:$0xff] }
 0x34a   : > { %1051 = vst.msk [vmem:[#allocation2 + $0xb0] sm:$0xff] %vm3933_vm0, %v991_v39  ;;  %1442 = vperm.xlu1 %2305, %v1424_v62   ;;  %v1019_v40 = vpop.permute.xlu1 %1018  ;;  %v1780_v46 = vld [vmem:[#allocation2 + $0xc8] sm:$0xff] }
 0x34b   : > { %1058 = vst.msk [vmem:[#allocation2 + $0xe8] sm:$0xff] %vm3933_vm0, %v1019_v40 }
 0x34d   : > { %v999_v14 = vpop.permute.xlu0 %998  ;;  %v1660_v25 = vld [vmem:[#allocation2 + $0xa0] sm:$0xff] }
 0x34e   : > { %1053 = vst.msk [vmem:[#allocation2 + $0xc0] sm:$0xff] %vm3933_vm0, %v999_v14  ;;  %1447 = vperm.xlu1 %2305, %v1425_v0   ;;  %v1027_v37 = vpop.permute.xlu1 %1026  ;;  %v1782_v11 = vld [vmem:[#allocation2 + $0xd8] sm:$0xff] }
 0x34f   : > { %1060 = vst.msk [vmem:[#allocation2 + $0xf8] sm:$0xff] %vm3933_vm0, %v1027_v37 }
 0x351   : > { %v1007_v41 = vpop.permute.xlu0 %1006  ;;  %v1662_v59 = vld [vmem:[#allocation2 + $0xb0] sm:$0xff] }
 0x352   : > { %1055 = vst.msk [vmem:[#allocation2 + $0xd0] sm:$0xff] %vm3933_vm0, %v1007_v41  ;;  %1551 = vperm.xlu1 %2305, %v1541_v10   ;;  %v1899_v57 = vld [vmem:[#allocation2 + $0xe8] sm:$0xff]  ;;  %v1309_v41 = vadd.s32 64, %v3285_v20 }
 0x355   : > { %v1015_v43 = vpop.permute.xlu0 %1014  ;;  %v1779_v45 = vld [vmem:[#allocation2 + $0xc0] sm:$0xff] }
 0x356   : > { %1057 = vst.msk [vmem:[#allocation2 + $0xe0] sm:$0xff] %vm3933_vm0, %v1015_v43  ;;  %1789 = vperm.xlu0 %2304, %v1779_v45   ;;  %1561 = vperm.xlu1 %2305, %v1543_v6   ;;  %v1901_v61 = vld [vmem:[#allocation2 + $0xf8] sm:$0xff] }
 0x359   : > { %v1023_v58 = vpop.permute.xlu0 %1022  ;;  %v1781_v63 = vld [vmem:[#allocation2 + $0xd0] sm:$0xff] }
 0x35a   : > { %1059 = vst.msk [vmem:[#allocation2 + $0xf0] sm:$0xff] %vm3933_vm0, %v1023_v58  ;;  %1685 = vperm.xlu0 %2304, %v1663_v36   ;;  %1670 = vperm.xlu1 %2305, %v1660_v25   ;;  %v1310_v58 = vadd.s32 64, %v3302_v42 }
 0x35d   : > { %v1898_v54 = vld [vmem:[#allocation2 + $0xe0] sm:$0xff] }
 0x35e   : > { %1908 = vperm.xlu0 %2304, %v1898_v54   ;;  %1675 = vperm.xlu1 %2305, %v1661_v55  }
 0x361   : > { %v1900_v47 = vld [vmem:[#allocation2 + $0xf0] sm:$0xff] }
 0x362   : > { %1804 = vperm.xlu0 %2304, %v1782_v11   ;;  %1680 = vperm.xlu1 %2305, %v1662_v59  }
 0x366   : > { %1923 = vperm.xlu0 %2304, %v1901_v61   ;;  %1794 = vperm.xlu1 %2305, %v1780_v46   ;;  %v1427_v61 = vadd.s32 96, %v3280_v48 }
 0x36a   : > { %1799 = vperm.xlu1 %2305, %v1781_v63  }
 0x36e   : > { %1913 = vperm.xlu1 %2305, %v1899_v57   ;;  %v1426_v57 = vadd.s32 96, %v2912_v50 }
 0x372   : > { %1918 = vperm.xlu1 %2305, %v1900_v47  }
 0x38d   : > { %v3275_v4 = vpop.xlane.xlu1 %888 }
 0x391   : > { %v3277_v52 = vpop.xlane.xlu1 %807 }
 0x396   : > { %v1077_v53 = vpop.permute.xlu1 %1076 }
 0x397   : > { %vm1091_vm5 = vcmp.gt.f32.partialorder %v3186_v18, %v1077_v53  ;;  %vm1099_vm6 = vcmp.eq.f32.partialorder %v3186_v18, %v1077_v53  ;;  %vm1092_vm7 = vcmp.gt.f32.partialorder %v3222_v44, %v1077_v53 }
 0x398   : > { %vm1115_vm8 = vmand %vm1099_vm6, %vm1107_vm4  ;;  %v2171_v8 = vsel %vm1092_vm7, 1.0, %v2559_v5  ;;  %vm1111_vm7 = vcmp.lt.s32.totalorder %v2944_v22, %v3302_v42 }
 0x399   : > { %vm1123_vm9 = vmor %vm1091_vm5, %vm1115_vm8  ;;  %vm1228_vm8 = vcmp.lt.s32.totalorder %v2944_v22, %v1188_v12 }
 0x39a   : > { %v1082_v13 = vpop.permute.xlu1 %1081  ;;  %v2170_v49 = vsel %vm1123_vm9, 1.0, %v2559_v5 }
 0x39b   : > { %vm1093_vm11 = vcmp.gt.f32.partialorder %v3186_v18, %v1082_v13  ;;  %vm1101_vm12 = vcmp.eq.f32.partialorder %v3186_v18, %v1082_v13  ;;  %v1148_v33 = vadd.f32 %v2171_v8, %v2170_v49  ;;  %vm1094_vm13 = vcmp.gt.f32.partialorder %v3222_v44, %v1082_v13 }
 0x39c   : > { %vm1117_vm14 = vmand %vm1101_vm12, %vm1109_vm10  ;;  %v2173_v17 = vsel %vm1094_vm13, 1.0, %v2559_v5  ;;  %v1428_v8 = vadd.s32 96, %v3285_v20 }
 0x39d   : > { %1149 = vadd.xlane.f32.xlu0 %v1148_v33  ;;  %vm1125_vm15 = vmor %vm1093_vm11, %vm1117_vm14 }
 0x39e   : > { %v2172_v34 = vsel %vm1125_vm15, 1.0, %v2559_v5 }
 0x39f   : > { %v1151_v9 = vadd.f32 %v2173_v17, %v2172_v34 }
 0x3a1   : > { %1152 = vadd.xlane.f32.xlu0 %v1151_v9 }
 0x3a9   : > { %v1072_v1 = vpop.permute.xlu0 %1071 }
 0x3aa   : > { %vm1089_vm2 = vcmp.gt.f32.partialorder %v3186_v18, %v1072_v1  ;;  %vm1097_vm3 = vcmp.eq.f32.partialorder %v3186_v18, %v1072_v1  ;;  %vm1090_vm4 = vcmp.gt.f32.partialorder %v3222_v44, %v1072_v1  ;;  %v1546_v1 = vadd.s32 128, %v3280_v48 }
 0x3ab   : > { %vm1113_vm5 = vmand %vm1097_vm3, %vm1105_vm1  ;;  %v2169_v15 = vsel %vm1090_vm4, 1.0, %v2559_v5  ;;  %vm1232_vm4 = vcmp.lt.s32.totalorder %v2944_v22, %v1190_v3 }
 0x3ac   : > { %vm1121_vm6 = vmor %vm1089_vm2, %vm1113_vm5  ;;  %vm1230_vm2 = vcmp.lt.s32.totalorder %v2944_v22, %v1189_v2 }
 0x3ad   : > { %v1087_v60 = vpop.permute.xlu0 %1086  ;;  %v1195_v51 = vpop.permute.xlu1 %1194  ;;  %v2168_v7 = vsel %vm1121_vm6, 1.0, %v2559_v5 }
 0x3ae   : > { %vm1095_vm9 = vcmp.gt.f32.partialorder %v3186_v18, %v1087_v60  ;;  %vm1103_vm10 = vcmp.eq.f32.partialorder %v3186_v18, %v1087_v60  ;;  %vm1220_vm11 = vcmp.eq.f32.partialorder %v3186_v18, %v1195_v51  ;;  %vm1212_vm12 = vcmp.gt.f32.partialorder %v3186_v18, %v1195_v51 }
 0x3af   : > { %v1145_v19 = vadd.f32 %v2169_v15, %v2168_v7  ;;  %vm1096_vm13 = vcmp.gt.f32.partialorder %v3222_v44, %v1087_v60  ;;  %vm1119_vm14 = vmand %vm1103_vm10, %vm1111_vm7  ;;  %vm1213_vm15 = vcmp.gt.f32.partialorder %v3222_v44, %v1195_v51  ;;  %v1429_v60 = vadd.s32 96, %v3302_v42 }
 0x3b0   : > { %vm1127_vm1 = vmor %vm1095_vm9, %vm1119_vm14  ;;  %v2175_v28 = vsel %vm1096_vm13, 1.0, %v2559_v5  ;;  %v2177_v30 = vsel %vm1213_vm15, 1.0, %v2559_v5  ;;  %vm1234_vm14 = vcmp.lt.s32.totalorder %v2944_v22, %v1191_v21 }
 0x3b1   : > { %1146 = vadd.xlane.f32.xlu1 %v1145_v19  ;;  %v1200_v23 = vpop.permute.xlu0 %1199  ;;  %v1205_v24 = vpop.permute.xlu1 %1204  ;;  %v2174_v16 = vsel %vm1127_vm1, 1.0, %v2559_v5  ;;  %vm1236_vm3 = vmand %vm1220_vm11, %vm1228_vm8 }
 0x3b2   : > { %vm1214_vm5 = vcmp.gt.f32.partialorder %v3186_v18, %v1200_v23  ;;  %vm1222_vm6 = vcmp.eq.f32.partialorder %v3186_v18, %v1200_v23  ;;  %vm1224_vm7 = vcmp.eq.f32.partialorder %v3186_v18, %v1205_v24  ;;  %vm1244_vm9 = vmor %vm1212_vm12, %vm1236_vm3  ;;  %vm1216_vm10 = vcmp.gt.f32.partialorder %v3186_v18, %v1205_v24 }
 0x3b3   : > { %v1154_v31 = vadd.f32 %v2175_v28, %v2174_v16  ;;  %v2176_v32 = vsel %vm1244_vm9, 1.0, %v2559_v5  ;;  %vm1215_vm8 = vcmp.gt.f32.partialorder %v3222_v44, %v1200_v23  ;;  %vm1238_vm11 = vmand %vm1222_vm6, %vm1230_vm2  ;;  %v1545_v28 = vadd.s32 128, %v2912_v50 }
 0x3b4   : > { %v1268_v38 = vadd.f32 %v2177_v30, %v2176_v32  ;;  %vm1246_vm13 = vmor %vm1214_vm5, %vm1238_vm11  ;;  %v2179_v14 = vsel %vm1215_vm8, 1.0, %v2559_v5  ;;  %vm1217_vm5 = vcmp.gt.f32.partialorder %v3222_v44, %v1205_v24  ;;  %v1548_v32 = vadd.s32 128, %v3302_v42 }
 0x3b5   : > { %1155 = vadd.xlane.f32.xlu0 %v1154_v31  ;;  %v1319_v39 = vpop.permute.xlu0 %1318  ;;  %v1210_v62 = vpop.permute.xlu1 %1209  ;;  %v2178_v40 = vsel %vm1246_vm13, 1.0, %v2559_v5  ;;  %vm1240_vm12 = vmand %vm1224_vm7, %vm1232_vm4  ;;  %vm1349_vm4 = vcmp.lt.s32.totalorder %v2944_v22, %v1308_v35  ;;  %vm1347_vm7 = vcmp.lt.s32.totalorder %v2944_v22, %v1307_v29  ;;  %v2181_v43 = vsel %vm1217_vm5, 1.0, %v2559_v5 }
 0x3b6   : > { %1269 = vadd.xlane.f32.xlu1 %v1268_v38  ;;  %vm1218_vm15 = vcmp.gt.f32.partialorder %v3186_v18, %v1210_v62  ;;  %vm1226_vm1 = vcmp.eq.f32.partialorder %v3186_v18, %v1210_v62  ;;  %vm1248_vm2 = vmor %vm1216_vm10, %vm1240_vm12  ;;  %vm1341_vm3 = vcmp.eq.f32.partialorder %v3186_v18, %v1319_v39  ;;  %v1271_v0 = vadd.f32 %v2179_v14, %v2178_v40  ;;  %v2340_v14 = vld [vmem:[#allocation2 + $0x28] sm:$0xff] }
 0x3b7   : > { %vm1242_vm6 = vmand %vm1226_vm1, %vm1234_vm14  ;;  %v2180_v37 = vsel %vm1248_vm2, 1.0, %v2559_v5  ;;  %vm1333_vm10 = vcmp.gt.f32.partialorder %v3186_v18, %v1319_v39  ;;  %vm1219_vm14 = vcmp.gt.f32.partialorder %v3222_v44, %v1210_v62  ;;  %vm1351_vm2 = vcmp.lt.s32.totalorder %v2944_v22, %v1309_v41 }
 0x3b8   : > { %vm1250_vm9 = vmor %vm1218_vm15, %vm1242_vm6  ;;  %v1274_v45 = vadd.f32 %v2181_v43, %v2180_v37  ;;  %v2183_v55 = vsel %vm1219_vm14, 1.0, %v2559_v5  ;;  %v1547_v40 = vadd.s32 128, %v3285_v20  ;;  %v1786_v35 = vadd.s32 192, %v3302_v42 }
 0x3b9   : > { %1272 = vadd.xlane.f32.xlu0 %v1271_v0  ;;  %v1314_v10 = vpop.permute.xlu1 %1313  ;;  %vm1357_vm13 = vmand %vm1341_vm3, %vm1349_vm4  ;;  %v2182_v6 = vsel %vm1250_vm9, 1.0, %v2559_v5  ;;  %vm1334_vm4 = vcmp.gt.f32.partialorder %v3222_v44, %v1319_v39  ;;  %v1438_v46 = vpop.permute.xlu0 %1437  ;;  %vm1353_vm9 = vcmp.lt.s32.totalorder %v2944_v22, %v1310_v58 }
 0x3ba   : > { %vm1331_vm8 = vcmp.gt.f32.partialorder %v3186_v18, %v1314_v10  ;;  %vm1339_vm11 = vcmp.eq.f32.partialorder %v3186_v18, %v1314_v10  ;;  %vm1332_vm12 = vcmp.gt.f32.partialorder %v3222_v44, %v1314_v10  ;;  %vm1365_vm3 = vmor %vm1333_vm10, %vm1357_vm13  ;;  %v1277_v59 = vadd.f32 %v2183_v55, %v2182_v6 }
 0x3bb   : > { %vm1355_vm1 = vmand %vm1339_vm11, %vm1347_vm7  ;;  %v2185_v54 = vsel %vm1332_vm12, 1.0, %v2559_v5  ;;  %v2186_v63 = vsel %vm1365_vm3, 1.0, %v2559_v5  ;;  %v2187_v53 = vsel %vm1334_vm4, 1.0, %v2559_v5  ;;  %vm1460_vm13 = vcmp.eq.f32.partialorder %v3186_v18, %v1438_v46 }
 0x3bc   : > { %vm1363_vm15 = vmor %vm1331_vm8, %vm1355_vm1  ;;  %v1390_v13 = vadd.f32 %v2187_v53, %v2186_v63  ;;  %vm1468_vm1 = vcmp.lt.s32.totalorder %v2944_v22, %v1427_v61 }
 0x3bd   : > { %1275 = vadd.xlane.f32.xlu0 %v1274_v45  ;;  %v1324_v36 = vpop.permute.xlu1 %1323  ;;  %v2184_v25 = vsel %vm1363_vm15, 1.0, %v2559_v5  ;;  %vm1466_vm15 = vcmp.lt.s32.totalorder %v2944_v22, %v1426_v57  ;;  %v1557_v12 = vpop.permute.xlu0 %1556  ;;  %v1665_v57 = vadd.s32 160, %v3280_v48 }
 0x3be   : > { %vm1335_vm5 = vcmp.gt.f32.partialorder %v3186_v18, %v1324_v36  ;;  %vm1343_vm6 = vcmp.eq.f32.partialorder %v3186_v18, %v1324_v36  ;;  %v1387_v11 = vadd.f32 %v2185_v54, %v2184_v25  ;;  %vm1336_vm14 = vcmp.gt.f32.partialorder %v3222_v44, %v1324_v36 }
 0x3bf   : > { %vm1359_vm7 = vmand %vm1343_vm6, %vm1351_vm2  ;;  %vm1452_vm2 = vcmp.gt.f32.partialorder %v3186_v18, %v1438_v46  ;;  %v2189_v34 = vsel %vm1336_vm14, 1.0, %v2559_v5  ;;  %v1664_v25 = vadd.s32 160, %v2912_v50 }
 0x3c0   : > { %1388 = vadd.xlane.f32.xlu1 %v1387_v11  ;;  %vm1367_vm10 = vmor %vm1335_vm5, %vm1359_vm7 }
 0x3c1   : > { %1278 = vadd.xlane.f32.xlu0 %v1277_v59  ;;  %v1329_v47 = vpop.permute.xlu1 %1328  ;;  %v2188_v49 = vsel %vm1367_vm10, 1.0, %v2559_v5  ;;  %vm3405_vm7 = vmand %vm1460_vm13, %vm1468_vm1  ;;  %vm1453_vm13 = vcmp.gt.f32.partialorder %v3222_v44, %v1438_v46  ;;  %v3446_v38 = vpop.permute.xlu0 %1566 }
 0x3c2   : > { %vm1337_vm8 = vcmp.gt.f32.partialorder %v3186_v18, %v1329_v47  ;;  %vm1345_vm11 = vcmp.eq.f32.partialorder %v3186_v18, %v1329_v47  ;;  %v1393_v9 = vadd.f32 %v2189_v34, %v2188_v49  ;;  %vm1484_vm14 = vmor %vm1452_vm2, %vm3405_vm7  ;;  %vm1472_vm2 = vcmp.lt.s32.totalorder %v2944_v22, %v1429_v60 }
 0x3c3   : > { %vm1361_vm12 = vmand %vm1345_vm11, %vm1353_vm9  ;;  %vm1338_vm9 = vcmp.gt.f32.partialorder %v3222_v44, %v1329_v47  ;;  %vm1470_vm11 = vcmp.lt.s32.totalorder %v2944_v22, %v1428_v8  ;;  %v2194_v23 = vsel %vm1484_vm14, 1.0, %v2559_v5  ;;  %v2195_v16 = vsel %vm1453_vm13, 1.0, %v2559_v5 }
 0x3c4   : > { %vm1369_vm3 = vmor %vm1337_vm8, %vm1361_vm12  ;;  %v2191_v15 = vsel %vm1338_vm9, 1.0, %v2559_v5  ;;  %v1509_v30 = vadd.f32 %v2195_v16, %v2194_v23  ;;  %vm1572_vm14 = vcmp.gt.f32.partialorder %v3222_v44, %v1557_v12  ;;  %v1667_v49 = vadd.s32 160, %v3302_v42 }
 0x3c5   : > { %1391 = vadd.xlane.f32.xlu0 %v1390_v13  ;;  %v1433_v33 = vpop.permute.xlu1 %1432  ;;  %v2190_v2 = vsel %vm1369_vm3, 1.0, %v2559_v5  ;;  %vm1580_vm3 = vcmp.eq.f32.partialorder %v3222_v44, %v1557_v12  ;;  %v1783_v13 = vadd.s32 192, %v2912_v50  ;;  %v1784_v60 = vadd.s32 192, %v3280_v48 }
 0x3c6   : > { %vm1450_vm5 = vcmp.gt.f32.partialorder %v3186_v18, %v1433_v33  ;;  %vm1458_vm6 = vcmp.eq.f32.partialorder %v3186_v18, %v1433_v33  ;;  %vm1451_vm4 = vcmp.gt.f32.partialorder %v3222_v44, %v1433_v33  ;;  %v1396_v21 = vadd.f32 %v2191_v15, %v2190_v2 }
 0x3c7   : > { %vm1474_vm10 = vmand %vm1458_vm6, %vm1466_vm15  ;;  %v2193_v3 = vsel %vm1451_vm4, 1.0, %v2559_v5  ;;  %vm1571_vm4 = vcmp.gt.f32.partialorder %v3186_v18, %v1557_v12  ;;  %v1666_v33 = vadd.s32 160, %v3285_v20  ;;  %v1785_v15 = vadd.s32 192, %v3285_v20 }
 0x3c8   : > { %vm1482_vm8 = vmor %vm1450_vm5, %vm1474_vm10  ;;  %vm1588_vm5 = vcmp.lt.s32.totalorder %v2947_v26, %v1546_v1 }
 0x3c9   : > { %1394 = vadd.xlane.f32.xlu0 %v1393_v9  ;;  %v1443_v51 = vpop.permute.xlu1 %1442  ;;  %v2192_v7 = vsel %vm1482_vm8, 1.0, %v2559_v5  ;;  %vm1579_vm8 = vcmp.eq.f32.partialorder %v3186_v18, %v1557_v12 }
 0x3ca   : > { %vm1454_vm12 = vcmp.gt.f32.partialorder %v3186_v18, %v1443_v51  ;;  %vm1462_vm1 = vcmp.eq.f32.partialorder %v3186_v18, %v1443_v51  ;;  %v1506_v19 = vadd.f32 %v2193_v3, %v2192_v7  ;;  %vm1455_vm10 = vcmp.gt.f32.partialorder %v3222_v44, %v1443_v51 }
 0x3cb   : > { %vm1478_vm15 = vmand %vm1462_vm1, %vm1470_vm11  ;;  %v2197_v39 = vsel %vm1455_vm10, 1.0, %v2559_v5  ;;  %vm1586_vm1 = vcmp.lt.s32.totalorder %v2947_v26, %v1545_v28  ;;  %v1902_v51 = vadd.s32 224, %v2912_v50 }
 0x3cc   : > { %1507 = vadd.xlane.f32.xlu1 %v1506_v19  ;;  %vm1486_vm6 = vmor %vm1454_vm12, %vm1478_vm15  ;;  %v2336_v19 = vld [vmem:[#allocation2 + $0x8] sm:$0xff] }
 0x3cd   : > { %1397 = vadd.xlane.f32.xlu0 %v1396_v21  ;;  %v1448_v24 = vpop.permute.xlu1 %1447  ;;  %vm3439_vm11 = vmand %vm1580_vm3, %vm1588_vm5  ;;  %v2196_v31 = vsel %vm1486_vm6, 1.0, %v2559_v5 }
 0x3ce   : > { %vm1456_vm7 = vcmp.gt.f32.partialorder %v3186_v18, %v1448_v24  ;;  %vm1464_vm9 = vcmp.eq.f32.partialorder %v3186_v18, %v1448_v24  ;;  %vm3452_vm15 = vmor %vm1571_vm4, %vm1579_vm8  ;;  %vm1457_vm3 = vcmp.gt.f32.partialorder %v3222_v44, %v1448_v24  ;;  %v1512_v0 = vadd.f32 %v2197_v39, %v2196_v31 }
 0x3cf   : > { %vm1480_vm13 = vmand %vm1464_vm9, %vm1472_vm2  ;;  %vm1584_vm8 = vcmp.eq.f32.partialorder %v3222_v44, %v3446_v38  ;;  %v2199_v43 = vsel %vm1457_vm3, 1.0, %v2559_v5  ;;  %v2202_v58 = vsel %vm3452_vm15, 1.0, %v2559_v5 }
 0x3d0   : > { %vm1488_vm12 = vmor %vm1456_vm7, %vm1480_vm13  ;;  %vm1592_vm13 = vcmp.lt.s32.totalorder %v2947_v26, %v1548_v32  ;;  %v1905_v32 = vadd.s32 224, %v3302_v42  ;;  %v1903_v42 = vadd.s32 224, %v3280_v48 }
 0x3d1   : > { %1510 = vadd.xlane.f32.xlu0 %v1509_v30  ;;  %v1552_v29 = vpop.permute.xlu1 %1551  ;;  %vm3465_vm7 = vmor %vm1572_vm14, %vm3439_vm11  ;;  %v2198_v37 = vsel %vm1488_vm12, 1.0, %v2559_v5  ;;  %vm1590_vm14 = vcmp.lt.s32.totalorder %v2947_v26, %v1547_v40 }
 0x3d2   : > { %vm1569_vm5 = vcmp.gt.f32.partialorder %v3186_v18, %v1552_v29  ;;  %vm1570_vm2 = vcmp.gt.f32.partialorder %v3222_v44, %v1552_v29  ;;  %vm1577_vm6 = vcmp.eq.f32.partialorder %v3186_v18, %v1552_v29  ;;  %vm1578_vm4 = vcmp.eq.f32.partialorder %v3222_v44, %v1552_v29  ;;  %vm3495_vm15 = vmand %vm1584_vm8, %vm1592_vm13 }
 0x3d3   : > { %vm1601_vm9 = vmor %vm1569_vm5, %vm1577_vm6  ;;  %v1515_v6 = vadd.f32 %v2199_v43, %v2198_v37  ;;  %v2203_v36 = vsel %vm3465_vm7, 1.0, %v2559_v5  ;;  %vm1575_vm6 = vcmp.gt.f32.partialorder %v3186_v18, %v3446_v38  ;;  %vm1583_vm7 = vcmp.eq.f32.partialorder %v3186_v18, %v3446_v38 }
 0x3d4   : > { %vm1594_vm10 = vmand %vm1578_vm4, %vm1586_vm1  ;;  %v2200_v45 = vsel %vm1601_vm9, 1.0, %v2559_v5  ;;  %v1628_v46 = vadd.f32 %v2203_v36, %v2202_v58 }
 0x3d5   : > { %1513 = vadd.xlane.f32.xlu0 %v1512_v0  ;;  %v3474_v41 = vpop.permute.xlu0 %1789  ;;  %v1562_v10 = vpop.permute.xlu1 %1561  ;;  %vm1602_vm11 = vmor %vm1570_vm2, %vm1594_vm10  ;;  %vm1705_vm10 = vcmp.lt.s32.totalorder %v2947_v26, %v1664_v25 }
 0x3d6   : > { %v2201_v54 = vsel %vm1602_vm11, 1.0, %v2559_v5  ;;  %vm1573_vm12 = vcmp.gt.f32.partialorder %v3186_v18, %v1562_v10  ;;  %vm1574_vm1 = vcmp.gt.f32.partialorder %v3222_v44, %v1562_v10  ;;  %vm1581_vm3 = vcmp.eq.f32.partialorder %v3186_v18, %v1562_v10 }
 0x3d7   : > { %v1625_v11 = vadd.f32 %v2201_v54, %v2200_v45  ;;  %vm1582_vm5 = vcmp.eq.f32.partialorder %v3222_v44, %v1562_v10  ;;  %vm1605_vm2 = vmor %vm1573_vm12, %vm1581_vm3  ;;  %vm1576_vm3 = vcmp.gt.f32.partialorder %v3222_v44, %v3446_v38 }
 0x3d8   : > { %vm1598_vm4 = vmand %vm1582_vm5, %vm1590_vm14  ;;  %v2204_v63 = vsel %vm1605_vm2, 1.0, %v2559_v5 }
 0x3d9   : > { %1516 = vadd.xlane.f32.xlu0 %v1515_v6  ;;  %v3504_v59 = vpop.permute.xlu0 %1685  ;;  %v1671_v61 = vpop.permute.xlu1 %1670  ;;  %1626 = vadd.xlane.f32.xlu1 %v1625_v11  ;;  %vm1606_vm9 = vmor %vm1574_vm1, %vm1598_vm4  ;;  %v1904_v6 = vadd.s32 224, %v3285_v20 }
 0x3da   : > { %v2205_v47 = vsel %vm1606_vm9, 1.0, %v2559_v5  ;;  %vm1688_vm8 = vcmp.gt.f32.partialorder %v3186_v18, %v1671_v61  ;;  %vm1689_vm13 = vcmp.gt.f32.partialorder %v3222_v44, %v1671_v61  ;;  %vm1696_vm11 = vcmp.eq.f32.partialorder %v3186_v18, %v1671_v61  ;;  %vm3521_vm14 = vmor %vm1575_vm6, %vm1583_vm7 }
 0x3db   : > { %vm1697_vm12 = vcmp.eq.f32.partialorder %v3222_v44, %v1671_v61  ;;  %vm1720_vm1 = vmor %vm1688_vm8, %vm1696_vm11  ;;  %v1631_v34 = vadd.f32 %v2205_v47, %v2204_v63  ;;  %vm1707_vm6 = vcmp.lt.s32.totalorder %v2947_v26, %v1665_v57  ;;  %vm1824_vm8 = vcmp.lt.s32.totalorder %v2947_v26, %v1783_v13 }
 0x3dc   : > { %vm1713_vm5 = vmand %vm1697_vm12, %vm1705_vm10  ;;  %v2208_v17 = vsel %vm1720_vm1, 1.0, %v2559_v5  ;;  %vm1711_vm1 = vcmp.lt.s32.totalorder %v2947_v26, %v1667_v49  ;;  %v2206_v21 = vsel %vm3521_vm14, 1.0, %v2559_v5  ;;  %vm1943_vm14 = vcmp.lt.s32.totalorder %v2947_v26, %v1902_v51 }
 0x3dd   : > { %1629 = vadd.xlane.f32.xlu0 %v1628_v46  ;;  %v1676_v8 = vpop.permute.xlu1 %1675  ;;  %vm1721_vm2 = vmor %vm1689_vm13, %vm1713_vm5  ;;  %v3535_v9 = vpop.permute.xlu0 %1908  ;;  %vm1816_vm13 = vcmp.eq.f32.partialorder %v3222_v44, %v3474_v41  ;;  %vm1709_vm5 = vcmp.lt.s32.totalorder %v2947_v26, %v1666_v33  ;;  %v3977_v61 = vmov 0  ;;  %v1061_v51 = vmul.f32 3.0, %v3245_v27 }
 0x3de   : > { %v2209_v1 = vsel %vm1721_vm2, 1.0, %v2559_v5  ;;  %vm1690_vm7 = vcmp.gt.f32.partialorder %v3186_v18, %v1676_v8  ;;  %vm1691_vm4 = vcmp.gt.f32.partialorder %v3222_v44, %v1676_v8  ;;  %vm1698_vm9 = vcmp.eq.f32.partialorder %v3186_v18, %v1676_v8  ;;  %vm3546_vm10 = vmor %vm1576_vm3, %vm3495_vm15 }
 0x3df   : > { %vm1699_vm11 = vcmp.eq.f32.partialorder %v3222_v44, %v1676_v8  ;;  %vm1722_vm12 = vmor %vm1690_vm7, %vm1698_vm9  ;;  %v1744_v7 = vadd.f32 %v2209_v1, %v2208_v17  ;;  %v2207_v23 = vsel %vm3546_vm10, 1.0, %v2559_v5 }
 0x3e0   : > { %vm1715_vm15 = vmand %vm1699_vm11, %vm1707_vm6  ;;  %v2210_v3 = vsel %vm1722_vm12, 1.0, %v2559_v5  ;;  %v1634_v31 = vadd.f32 %v2207_v23, %v2206_v21 }
 0x3e1   : > { %1632 = vadd.xlane.f32.xlu0 %v1631_v34  ;;  %v1681_v2 = vpop.permute.xlu1 %1680  ;;  %vm1723_vm3 = vmor %vm1691_vm4, %vm1715_vm15  ;;  %vm1703_vm4 = vcmp.eq.f32.partialorder %v3222_v44, %v3504_v59  ;;  %v3585_v24 = vpop.permute.xlu0 %1804  ;;  %vm1815_vm15 = vcmp.eq.f32.partialorder %v3186_v18, %v3474_v41 }
 0x3e2   : > { %vm3566_vm2 = vmand %vm1816_vm13, %vm1824_vm8  ;;  %vm1692_vm6 = vcmp.gt.f32.partialorder %v3186_v18, %v1681_v2  ;;  %vm1693_vm7 = vcmp.gt.f32.partialorder %v3222_v44, %v1681_v2  ;;  %vm1700_vm9 = vcmp.eq.f32.partialorder %v3186_v18, %v1681_v2  ;;  %vm1701_vm11 = vcmp.eq.f32.partialorder %v3222_v44, %v1681_v2 }
 0x3e3   : > { %vm1717_vm12 = vmand %vm1701_vm11, %vm1709_vm5  ;;  %v2211_v50 = vsel %vm1723_vm3, 1.0, %v2559_v5  ;;  %vm1826_vm8 = vcmp.lt.s32.totalorder %v2947_v26, %v1784_v60  ;;  %vm1807_vm5 = vcmp.gt.f32.partialorder %v3186_v18, %v3474_v41  ;;  %vm1808_vm3 = vcmp.gt.f32.partialorder %v3222_v44, %v3474_v41 }
 0x3e4   : > { %v1747_v16 = vadd.f32 %v2211_v50, %v2210_v3  ;;  %vm1724_vm13 = vmor %vm1692_vm6, %vm1700_vm9  ;;  %vm1935_vm9 = vcmp.eq.f32.partialorder %v3222_v44, %v3535_v9 }
 0x3e5   : > { %1745 = vadd.xlane.f32.xlu0 %v1744_v7  ;;  %v1795_v28 = vpop.permute.xlu1 %1794  ;;  %vm1725_vm10 = vmor %vm1693_vm7, %vm1717_vm12  ;;  %v2212_v29 = vsel %vm1724_vm13, 1.0, %v2559_v5  ;;  %v3652_v48 = vpop.permute.xlu0 %1923  ;;  %vm1934_vm13 = vcmp.eq.f32.partialorder %v3186_v18, %v3535_v9  ;;  %v3800_v7 = vrot.slane %v1061_v51, %v2915_v56 }
 0x3e6   : > { %vm3603_vm6 = vmand %vm1703_vm4, %vm1711_vm1  ;;  %1748 = vadd.xlane.f32.xlu1 %v1747_v16  ;;  %vm1818_vm11 = vcmp.eq.f32.partialorder %v3222_v44, %v1795_v28  ;;  %v2213_v39 = vsel %vm1725_vm10, 1.0, %v2559_v5  ;;  %vm1828_vm1 = vcmp.lt.s32.totalorder %v2947_v26, %v1785_v15  ;;  %vm1809_vm4 = vcmp.gt.f32.partialorder %v3186_v18, %v1795_v28 }
 0x3e7   : > { %vm3613_vm7 = vmand %vm1818_vm11, %vm1826_vm8  ;;  %vm1817_vm12 = vcmp.eq.f32.partialorder %v3186_v18, %v1795_v28  ;;  %v1750_v62 = vadd.f32 %v2213_v39, %v2212_v29  ;;  %vm1830_vm11 = vcmp.lt.s32.totalorder %v2947_v26, %v1786_v35  ;;  %vm1810_vm0 = vcmp.gt.f32.partialorder %v3222_v44, %v1795_v28 }
 0x3e8   : > { %vm1839_vm8 = vmor %vm1807_vm5, %vm1815_vm15 }
 0x3e9   : > { %1635 = vadd.xlane.f32.xlu0 %v1634_v31  ;;  %v1800_v40 = vpop.permute.xlu1 %1799  ;;  %vm3636_vm10 = vmand %vm1935_vm9, %vm1943_vm14  ;;  %vm1822_vm14 = vcmp.eq.f32.partialorder %v3222_v44, %v3585_v24  ;;  %v2216_v37 = vsel %vm1839_vm8, 1.0, %v2559_v5  ;;  %vm1945_vm8 = vcmp.lt.s32.totalorder %v2947_v26, %v1903_v42 }
 0x3ea   : > { %vm1820_vm5 = vcmp.eq.f32.partialorder %v3222_v44, %v1800_v40  ;;  %vm1840_vm15 = vmor %vm1808_vm3, %vm3566_vm2  ;;  %1751 = vadd.xlane.f32.xlu1 %v1750_v62  ;;  %vm1695_vm2 = vcmp.gt.f32.partialorder %v3222_v44, %v3504_v59 }
 0x3eb   : > { %vm3656_vm9 = vmand %vm1820_vm5, %vm1828_vm1  ;;  %v2217_v41 = vsel %vm1840_vm15, 1.0, %v2559_v5  ;;  %vm3972_vm15 = vcmp.gt.f32.partialorder %v3186_v18, %v3504_v59 }
 0x3ec   : > { %v1863_v10 = vadd.f32 %v2217_v41, %v2216_v37  ;;  %vm1841_vm3 = vmor %vm1809_vm4, %vm1817_vm12  ;;  %vm3971_vm12 = vcmp.eq.f32.partialorder %v3186_v18, %v3504_v59  ;;  %v2341_v37 = vld [vmem:[#allocation2 + $0x20] sm:$0xff] }
 0x3ed   : > { %vm1842_vm1 = vmor %vm1810_vm0, %vm3613_vm7  ;;  %v2218_v43 = vsel %vm1841_vm3, 1.0, %v2559_v5  ;;  %v1914_v45 = vpop.permute.xlu1 %1913  ;;  %vm1811_vm0 = vcmp.gt.f32.partialorder %v3186_v18, %v1800_v40  ;;  %vm1819_vm7 = vcmp.eq.f32.partialorder %v3186_v18, %v1800_v40 }
 0x3ee   : > { %vm3679_vm5 = vmand %vm1822_vm14, %vm1830_vm11  ;;  %1864 = vadd.xlane.f32.xlu0 %v1863_v10  ;;  %v2219_v36 = vsel %vm1842_vm1, 1.0, %v2559_v5  ;;  %vm1812_vm14 = vcmp.gt.f32.partialorder %v3222_v44, %v1800_v40  ;;  %vm1937_vm3 = vcmp.eq.f32.partialorder %v3222_v44, %v1914_v45  ;;  %vm1926_vm1 = vcmp.gt.f32.partialorder %v3186_v18, %v3535_v9 }
 0x3ef   : > { %vm1726_vm11 = vmor %vm3972_vm15, %vm3971_vm12  ;;  %v1866_v20 = vadd.f32 %v2219_v36, %v2218_v43 }
 0x3f0   : > { %vm1727_vm4 = vmor %vm1695_vm2, %vm3603_vm6  ;;  %v2214_v25 = vsel %vm1726_vm11, 1.0, %v2559_v5  ;;  %vm1947_vm2 = vcmp.lt.s32.totalorder %v2947_v26, %v1904_v6  ;;  %vm3976_vm11 = vcmp.eq.f32.partialorder %v3222_v44, %v3652_v48 }
 0x3f1   : > { %vm3708_vm12 = vmand %vm1937_vm3, %vm1945_vm8  ;;  %v2215_v55 = vsel %vm1727_vm4, 1.0, %v2559_v5  ;;  %1867 = vadd.xlane.f32.xlu1 %v1866_v20  ;;  %v1919_v59 = vpop.permute.xlu1 %1918  ;;  %vm3975_vm8 = vcmp.lt.s32.totalorder %v2947_v26, %v1905_v32  ;;  %v2339_v32 = vld [vmem:[#allocation2 + $0x18] sm:$0xff] }
 0x3f2   : > { %v1753_v11 = vadd.f32 %v2215_v55, %v2214_v25  ;;  %vm1843_vm6 = vmor %vm1811_vm0, %vm1819_vm7  ;;  %vm1928_vm0 = vcmp.gt.f32.partialorder %v3186_v18, %v1914_v45  ;;  %vm1936_vm7 = vcmp.eq.f32.partialorder %v3186_v18, %v1914_v45  ;;  %vm1939_vm15 = vcmp.eq.f32.partialorder %v3222_v44, %v1919_v59 }
 0x3f3   : > { %vm3725_vm3 = vmand %vm3976_vm11, %vm3975_vm8  ;;  %v2220_v46 = vsel %vm1843_vm6, 1.0, %v2559_v5  ;;  %vm1813_vm6 = vcmp.gt.f32.partialorder %v3186_v18, %v3585_v24  ;;  %vm1821_vm11 = vcmp.eq.f32.partialorder %v3186_v18, %v3585_v24 }
 0x3f4   : > { %v3978_v61 = vsel %vm3725_vm3, 4294967295, %v3977_v61  ;;  %vm1844_vm4 = vmor %vm1812_vm14, %vm3656_vm9  ;;  %1754 = vadd.xlane.f32.xlu0 %v1753_v11  ;;  %vm1929_vm9 = vcmp.gt.f32.partialorder %v3222_v44, %v1914_v45  ;;  %v2342_v45 = vld [vmem:[#allocation2 + $0x30] sm:$0xff]  ;;  %v2343_v11 = vld [vmem:[#allocation2 + $0x38] sm:$0xff] }
 0x3f5   : > { %v2221_v26 = vsel %vm1844_vm4, 1.0, %v2559_v5  ;;  %vm1958_vm8 = vmor %vm1926_vm1, %vm1934_vm13  ;;  %vm3981_vm13 = vcmp.gt.f32.partialorder %v3222_v44, %v3535_v9  ;;  %vm1930_vm4 = vcmp.gt.f32.partialorder %v3186_v18, %v1919_v59 }
 0x3f6   : > { %v1869_v63 = vadd.f32 %v2221_v26, %v2220_v46  ;;  %vm3745_vm14 = vmand %vm1939_vm15, %vm1947_vm2  ;;  %v2224_v47 = vsel %vm1958_vm8, 1.0, %v2559_v5  ;;  %vm1814_vm2 = vcmp.gt.f32.partialorder %v3222_v44, %v3585_v24  ;;  %vm1938_vm8 = vcmp.eq.f32.partialorder %v3186_v18, %v1919_v59  ;;  %v2338_v24 = vld [vmem:[#allocation2] sm:$0xff] }
 0x3f7   : > { %vm1959_vm1 = vmor %vm3981_vm13, %vm3636_vm10  ;;  %vm1931_vm10 = vcmp.gt.f32.partialorder %v3222_v44, %v1919_v59 }
 0x3f8   : > { %1870 = vadd.xlane.f32.xlu1 %v1869_v63  ;;  %v2225_v53 = vsel %vm1959_vm1, 1.0, %v2559_v5  ;;  %vm1960_vm15 = vmor %vm1928_vm0, %vm1936_vm7  ;;  %vm1932_vm1 = vcmp.gt.f32.partialorder %v3186_v18, %v3652_v48  ;;  %vm1940_vm0 = vcmp.eq.f32.partialorder %v3186_v18, %v3652_v48 }
 0x3f9   : > { %v1982_v13 = vadd.f32 %v2225_v53, %v2224_v47  ;;  %vm1961_vm3 = vmor %vm1929_vm9, %vm3708_vm12  ;;  %v2226_v49 = vsel %vm1960_vm15, 1.0, %v2559_v5  ;;  %v2344_v53 = vld [vmem:[#allocation2 + $0x48] sm:$0xff] }
 0x3fa   : > { %v2227_v8 = vsel %vm1961_vm3, 1.0, %v2559_v5  ;;  %vm1845_vm13 = vmor %vm1813_vm6, %vm1821_vm11  ;;  %vm1933_vm3 = vcmp.gt.f32.partialorder %v3222_v44, %v3652_v48  ;;  %vm3982_vm6 = vnez %v3978_v61 }
 0x3fb   : > { %1983 = vadd.xlane.f32.xlu0 %v1982_v13  ;;  %v1985_v33 = vadd.f32 %v2227_v8, %v2226_v49  ;;  %vm1846_vm12 = vmor %vm1814_vm2, %vm3679_vm5  ;;  %v2222_v34 = vsel %vm1845_vm13, 1.0, %v2559_v5 }
 0x3fc   : > { %v2223_v17 = vsel %vm1846_vm12, 1.0, %v2559_v5  ;;  %vm1962_vm7 = vmor %vm1930_vm4, %vm1938_vm8  ;;  %vm3983_vm4 = vcmask 7168  }
 0x3fd   : > { %1986 = vadd.xlane.f32.xlu1 %v1985_v33  ;;  %v1872_v9 = vadd.f32 %v2223_v17, %v2222_v34  ;;  %vm1963_vm9 = vmor %vm1931_vm10, %vm3745_vm14  ;;  %v2228_v1 = vsel %vm1962_vm7, 1.0, %v2559_v5  ;;  %v2345_v33 = vld [vmem:[#allocation2 + $0x40] sm:$0xff] }
 0x3fe   : > { %v2229_v12 = vsel %vm1963_vm9, 1.0, %v2559_v5  ;;  %vm1964_vm5 = vmor %vm1932_vm1, %vm1940_vm0 }
 0x3ff   : > { %1873 = vadd.xlane.f32.xlu0 %v1872_v9  ;;  %v1988_v2 = vadd.f32 %v2229_v12, %v2228_v1  ;;  %vm1965_vm11 = vmor %vm1933_vm3, %vm3982_vm6  ;;  %v2230_v44 = vsel %vm1964_vm5, 1.0, %v2559_v5  ;;  %v2346_v12 = vld [vmem:[#allocation2 + $0x50] sm:$0xff] }
 0x400   : > { %v2231_v18 = vsel %vm1965_vm11, 1.0, %v2559_v5  ;;  %v2337_v5 = vld [vmem:[#allocation2 + $0x10] sm:$0xff]  ;;  %vm3984_vm8 = vmmov %vm3983_vm4 }
 0x401   : > { %1989 = vadd.xlane.f32.xlu1 %v1988_v2  ;;  %v1991_v60 = vadd.f32 %v2231_v18, %v2230_v44  ;;  %vm3985_vm10 = vmmov %vm3983_vm4 }
 0x402   : > { %vm3986_vm1 = vmmov %vm3983_vm4 }
 0x403   : > { %1992 = vadd.xlane.f32.xlu0 %v1991_v60  ;;  %vm3987_vm3 = vmmov %vm3986_vm1 }
 0x404   : > { %vm3988_vm9 = vmmov %vm3986_vm1 }
 0x405   : > { %vm3989_vm5 = vmmov %vm3986_vm1 }
 0x406   : > { %vm3990_vm11 = vmmov %vm3986_vm1 }
 0x42a   : > { %v1150_v3 = vpop.xlane.xlu0 %1149 }
 0x42b   : > { %vm1162_vm14 = vcmp.lt.f32.partialorder %v1150_v3, %v3800_v7 }
 0x42c   : > { %v1166_v50 = vsel %vm1162_vm14, %v2336_v19, 0.0 }
 0x42d   : > { %v1170_v28 = vsel %vm3983_vm4, %v1166_v50, 0.0 }
 0x42e   : > { %v1153_v15 = vpop.xlane.xlu0 %1152 }
 0x42f   : > { %vm1163_vm2 = vcmp.lt.f32.partialorder %v1153_v15, %v3800_v7 }
 0x430   : > { %v1167_v23 = vsel %vm1163_vm2, %v2337_v5, 0.0 }
 0x431   : > { %v1172_v31 = vsel %vm3985_vm10, %v1167_v23, 0.0  ;;  %vm3993_vm10 = vmmov %vm3986_vm1 }
 0x43e   : > { %v1147_v21 = vpop.xlane.xlu1 %1146 }
 0x43f   : > { %vm1161_vm15 = vcmp.lt.f32.partialorder %v1147_v21, %v3800_v7  ;;  %v2347_v21 = vld [vmem:[#allocation2 + $0x58] sm:$0xff] }
 0x440   : > { %v1165_v16 = vsel %vm1161_vm15, %v2338_v24, 0.0  ;;  %vm3991_vm15 = vmmov %vm3986_vm1 }
 0x441   : > { %v1169_v56 = vsel %vm3984_vm8, %v1165_v16, 0.0  ;;  %vm3992_vm8 = vmmov %vm3986_vm1 }
 0x442   : > { %v1171_v35 = vadd.f32 %v1170_v28, %v1169_v56  ;;  %v1156_v30 = vpop.xlane.xlu0 %1155 }
 0x443   : > { %vm1164_vm13 = vcmp.lt.f32.partialorder %v1156_v30, %v3800_v7  ;;  %v1270_v39 = vpop.xlane.xlu1 %1269 }
 0x444   : > { %v1168_v38 = vsel %vm1164_vm13, %v2339_v32, 0.0  ;;  %v1173_v29 = vadd.f32 %v1172_v31, %v1171_v35  ;;  %vm1280_vm0 = vcmp.lt.f32.partialorder %v1270_v39, %v3800_v7  ;;  %v2348_v32 = vld [vmem:[#allocation2 + $0x68] sm:$0xff]  ;;  %v2349_v39 = vld [vmem:[#allocation2 + $0x60] sm:$0xff] }
 0x445   : > { %v1174_v62 = vsel %vm3986_vm1, %v1168_v38, 0.0  ;;  %v1284_v41 = vsel %vm1280_vm0, %v2341_v37, 0.0 }
 0x446   : > { %v1175_v40 = vadd.f32 %v1174_v62, %v1173_v29  ;;  %v1273_v42 = vpop.xlane.xlu0 %1272  ;;  %v1288_v58 = vsel %vm3988_vm9, %v1284_v41, 0.0  ;;  %vm3995_vm9 = vmmov %vm3986_vm1 }
 0x447   : > { %vm1281_vm12 = vcmp.lt.f32.partialorder %v1273_v42, %v3800_v7 }
 0x448   : > { %v1285_v48 = vsel %vm1281_vm12, %v2340_v14, 0.0  ;;  %v1176_v0 = vrot.slane %v1175_v40, 4 }
 0x449   : > { %v1289_v43 = vsel %vm3987_vm3, %v1285_v48, 0.0  ;;  %vm3994_vm3 = vmmov %vm3986_vm1  ;;  %v2350_v48 = vld [vmem:[#allocation2 + $0x70] sm:$0xff] }
 0x44a   : > { %v1276_v10 = vpop.xlane.xlu0 %1275  ;;  %v1177_v20 = vadd.f32 %v1176_v0, %v1175_v40  ;;  %v1290_v25 = vadd.f32 %v1289_v43, %v1288_v58 }
 0x44b   : > { %vm1282_vm7 = vcmp.lt.f32.partialorder %v1276_v10, %v3800_v7 }
 0x44c   : > { %v1286_v6 = vsel %vm1282_vm7, %v2342_v45, 0.0  ;;  %v1178_v26 = vrot.slane %v1177_v20, 2 }
 0x44d   : > { %v1291_v36 = vsel %vm3989_vm5, %v1286_v6, 0.0  ;;  %v1389_v61 = vpop.xlane.xlu1 %1388  ;;  %vm3996_vm5 = vmmov %vm3986_vm1 }
 0x44e   : > { %v1279_v54 = vpop.xlane.xlu0 %1278  ;;  %v1292_v55 = vadd.f32 %v1291_v36, %v1290_v25  ;;  %vm1399_vm14 = vcmp.lt.f32.partialorder %v1389_v61, %v3800_v7  ;;  %v1179_v49 = vadd.f32 %v1178_v26, %v1177_v20  ;;  %v2351_v36 = vld [vmem:[#allocation2 + $0x78] sm:$0xff] }
 0x44f   : > { %vm1283_vm6 = vcmp.lt.f32.partialorder %v1279_v54, %v3800_v7  ;;  %v1403_v34 = vsel %vm1399_vm14, %v2345_v33, 0.0  ;;  %v2354_v33 = vld [vmem:[#allocation2 + $0x90] sm:$0xff] }
 0x450   : > { %v1287_v59 = vsel %vm1283_vm6, %v2343_v11, 0.0  ;;  %v1407_v44 = vsel %vm3992_vm8, %v1403_v34, 0.0  ;;  %v1180_v60 = vrot.slane %v1179_v49, 1  ;;  %vm3999_vm8 = vmmov %vm3986_vm1 }
 0x451   : > { %v1293_v46 = vsel %vm3990_vm11, %v1287_v59, 0.0  ;;  %vm3997_vm11 = vmmov %vm3986_vm1 }
 0x452   : > { %v1294_v63 = vadd.f32 %v1293_v46, %v1292_v55  ;;  %v1392_v57 = vpop.xlane.xlu0 %1391  ;;  %v1181_v16 = vadd.f32 %v1180_v60, %v1179_v49  ;;  %v2353_v49 = vld [vmem:[#allocation2 + $0x80] sm:$0xff] }
 0x453   : > { %vm1400_vm2 = vcmp.lt.f32.partialorder %v1392_v57, %v3800_v7 }
 0x454   : > { %v1295_v47 = vrot.slane %v1294_v63, 4  ;;  %v1404_v13 = vsel %vm1400_vm2, %v2344_v53, 0.0 }
 0x455   : > { %v1408_v9 = vsel %vm3991_vm15, %v1404_v13, 0.0 }
 0x456   : > { %v1296_v8 = vadd.f32 %v1295_v47, %v1294_v63  ;;  %v1395_v17 = vpop.xlane.xlu0 %1394  ;;  %v1409_v3 = vadd.f32 %v1408_v9, %v1407_v44  ;;  %v2352_v47 = vld [vmem:[#allocation2 + $0x88] sm:$0xff] }
 0x457   : > { %vm1401_vm4 = vcmp.lt.f32.partialorder %v1395_v17, %v3800_v7 }
 0x458   : > { %v1297_v1 = vrot.slane %v1296_v8, 2  ;;  %v1405_v2 = vsel %vm1401_vm4, %v2346_v12, 0.0  ;;  %vm3998_vm4 = vmmov %vm3986_vm1 }
 0x459   : > { %v1410_v18 = vsel %vm3993_vm10, %v1405_v2, 0.0  ;;  %v1508_v23 = vpop.xlane.xlu1 %1507  ;;  %vm4000_vm10 = vmmov %vm3986_vm1 }
 0x45a   : > { %v1298_v51 = vadd.f32 %v1297_v1, %v1296_v8  ;;  %v1398_v15 = vpop.xlane.xlu0 %1397  ;;  %v1411_v50 = vadd.f32 %v1410_v18, %v1409_v3  ;;  %vm1518_vm0 = vcmp.lt.f32.partialorder %v1508_v23, %v3800_v7  ;;  %v2356_v23 = vld [vmem:[#allocation2 + $0xa0] sm:$0xff] }
 0x45b   : > { %vm1402_vm13 = vcmp.lt.f32.partialorder %v1398_v15, %v3800_v7  ;;  %v1522_v62 = vsel %vm1518_vm0, %v2349_v39, 0.0 }
 0x45c   : > { %v1299_v19 = vrot.slane %v1298_v51, 1  ;;  %v1406_v5 = vsel %vm1402_vm13, %v2347_v21, 0.0  ;;  %v1526_v37 = vsel %vm3995_vm9, %v1522_v62, 0.0  ;;  %vm4003_vm9 = vmmov %vm3998_vm4 }
 0x45d   : > { %v1412_v24 = vsel %vm3986_vm1, %v1406_v5, 0.0 }
 0x45e   : > { %v1300_v28 = vadd.f32 %v1299_v19, %v1298_v51  ;;  %v1413_v56 = vadd.f32 %v1412_v24, %v1411_v50  ;;  %v1511_v35 = vpop.xlane.xlu0 %1510  ;;  %v2355_v19 = vld [vmem:[#allocation2 + $0x98] sm:$0xff] }
 0x45f   : > { %vm1519_vm12 = vcmp.lt.f32.partialorder %v1511_v35, %v3800_v7 }
 0x460   : > { %v1301_v30 = vadd.f32 %v1300_v28, %v1181_v16  ;;  %v1414_v31 = vrot.slane %v1413_v56, 4  ;;  %v1523_v38 = vsel %vm1519_vm12, %v2348_v32, 0.0  ;;  %vm4001_vm12 = vmmov %vm3994_vm3  ;;  %v2357_v16 = vld [vmem:[#allocation2 + $0xa8] sm:$0xff] }
 0x461   : > { %v1527_v42 = vsel %vm3994_vm3, %v1523_v38, 0.0 }
 0x462   : > { %v1415_v29 = vadd.f32 %v1414_v31, %v1413_v56  ;;  %v1514_v40 = vpop.xlane.xlu0 %1513  ;;  %v1528_v43 = vadd.f32 %v1527_v42, %v1526_v37  ;;  %v2358_v31 = vld [vmem:[#allocation2 + $0xb0] sm:$0xff] }
 0x463   : > { %vm1520_vm7 = vcmp.lt.f32.partialorder %v1514_v40, %v3800_v7 }
 0x464   : > { %v1416_v14 = vrot.slane %v1415_v29, 2  ;;  %v1524_v0 = vsel %vm1520_vm7, %v2350_v48, 0.0  ;;  %vm4002_vm7 = vmmov %vm3998_vm4 }
 0x465   : > { %v1529_v41 = vsel %vm3996_vm5, %v1524_v0, 0.0  ;;  %vm4004_vm5 = vmmov %vm3998_vm4 }
 0x466   : > { %v1417_v10 = vadd.f32 %v1416_v14, %v1415_v29  ;;  %v1517_v45 = vpop.xlane.xlu0 %1516  ;;  %v1530_v58 = vadd.f32 %v1529_v41, %v1528_v43  ;;  %v1627_v46 = vpop.xlane.xlu1 %1626  ;;  %v2359_v41 = vld [vmem:[#allocation2 + $0xb8] sm:$0xff]  ;;  %v2360_v43 = vld [vmem:[#allocation2 + $0xc0] sm:$0xff] }
 0x467   : > { %vm1521_vm6 = vcmp.lt.f32.partialorder %v1517_v45, %v3800_v7  ;;  %vm1637_vm2 = vcmp.lt.f32.partialorder %v1627_v46, %v3800_v7 }
 0x468   : > { %v1418_v6 = vrot.slane %v1417_v10, 1  ;;  %v1525_v20 = vsel %vm1521_vm6, %v2351_v36, 0.0  ;;  %v1641_v8 = vsel %vm1637_vm2, %v2353_v49, 0.0  ;;  %vm4005_vm2 = vmmov %vm3998_vm4 }
 0x469   : > { %v1531_v25 = vsel %vm3997_vm11, %v1525_v20, 0.0  ;;  %v1645_v2 = vsel %vm3999_vm8, %v1641_v8, 0.0  ;;  %v2361_v20 = vld [vmem:[#allocation2 + $0xc8] sm:$0xff]  ;;  %vm4007_vm8 = vmmov %vm4005_vm2 }
 0x46a   : > { %v1419_v54 = vadd.f32 %v1418_v6, %v1417_v10  ;;  %v1532_v55 = vadd.f32 %v1531_v25, %v1530_v58  ;;  %v1630_v11 = vpop.xlane.xlu0 %1629 }
 0x46b   : > { %vm1638_vm14 = vcmp.lt.f32.partialorder %v1630_v11, %v3800_v7 }
 0x46c   : > { %v1420_v59 = vadd.f32 %v1419_v54, %v1301_v30  ;;  %v1533_v61 = vrot.slane %v1532_v55, 4  ;;  %v1642_v53 = vsel %vm1638_vm14, %v2352_v47, 0.0 }
 0x46d   : > { %v1646_v9 = vsel %vm3998_vm4, %v1642_v53, 0.0  ;;  %vm4006_vm4 = vmmov %vm4005_vm2  ;;  %v2363_v53 = vld [vmem:[#allocation2 + $0xe0] sm:$0xff] }
 0x46e   : > { %v1534_v26 = vadd.f32 %v1533_v61, %v1532_v55  ;;  %v1633_v63 = vpop.xlane.xlu0 %1632  ;;  %v1647_v60 = vadd.f32 %v1646_v9, %v1645_v2 }
 0x46f   : > { %vm1639_vm15 = vcmp.lt.f32.partialorder %v1633_v63, %v3800_v7 }
 0x470   : > { %v1535_v57 = vrot.slane %v1534_v26, 2  ;;  %v1643_v34 = vsel %vm1639_vm15, %v2354_v33, 0.0 }
 0x471   : > { %v1648_v44 = vsel %vm4000_vm10, %v1643_v34, 0.0 }
 0x472   : > { %v1536_v13 = vadd.f32 %v1535_v57, %v1534_v26  ;;  %v1746_v17 = vpop.xlane.xlu0 %1745  ;;  %v1649_v15 = vadd.f32 %v1648_v44, %v1647_v60  ;;  %v2365_v60 = vld [vmem:[#allocation2 + $0xd8] sm:$0xff] }
 0x473   : > { %v1749_v12 = vpop.xlane.xlu1 %1748  ;;  %vm1756_vm13 = vcmp.lt.f32.partialorder %v1746_v17, %v3800_v7  ;;  %v2364_v17 = vld [vmem:[#allocation2 + $0xe8] sm:$0xff] }
 0x474   : > { %v1537_v1 = vrot.slane %v1536_v13, 1  ;;  %vm1757_vm1 = vcmp.lt.f32.partialorder %v1749_v12, %v3800_v7  ;;  %v1760_v24 = vsel %vm1756_vm13, %v2356_v23, 0.0  ;;  %vm4008_vm13 = vmmov %vm4005_vm2 }
 0x475   : > { %v1761_v28 = vsel %vm1757_vm1, %v2357_v16, 0.0  ;;  %v1764_v38 = vsel %vm4002_vm7, %v1760_v24, 0.0 }
 0x476   : > { %v1538_v18 = vadd.f32 %v1537_v1, %v1536_v13  ;;  %v1636_v51 = vpop.xlane.xlu0 %1635  ;;  %v1765_v29 = vsel %vm4003_vm9, %v1761_v28, 0.0 }
 0x477   : > { %vm1640_vm0 = vcmp.lt.f32.partialorder %v1636_v51, %v3800_v7  ;;  %v1752_v21 = vpop.xlane.xlu1 %1751  ;;  %v1766_v42 = vadd.f32 %v1765_v29, %v1764_v38 }
 0x478   : > { %v1539_v3 = vadd.f32 %v1538_v18, %v1420_v59  ;;  %v1644_v50 = vsel %vm1640_vm0, %v2355_v19, 0.0  ;;  %vm1758_vm3 = vcmp.lt.f32.partialorder %v1752_v21, %v3800_v7  ;;  %v2362_v59 = vld [vmem:[#allocation2 + $0xd0] sm:$0xff]  ;;  %vm4009_vm0 = vmmov %vm4005_vm2 }
 0x479   : > { %v1650_v5 = vsel %vm4001_vm12, %v1644_v50, 0.0  ;;  %v1762_v32 = vsel %vm1758_vm3, %v2358_v31, 0.0  ;;  %vm4010_vm12 = vmmov %vm4009_vm0 }
 0x47a   : > { %v1651_v56 = vadd.f32 %v1650_v5, %v1649_v15  ;;  %v1767_v40 = vsel %vm4004_vm5, %v1762_v32, 0.0  ;;  %vm4011_vm7 = vmmov %vm4009_vm0  ;;  %v2366_v5 = vld [vmem:[#allocation2 + $0xf0] sm:$0xff] }
 0x47b   : > { %v1865_v35 = vpop.xlane.xlu0 %1864  ;;  %v1768_v37 = vadd.f32 %v1767_v40, %v1766_v42  ;;  %vm4012_vm5 = vmmov %vm4009_vm0 }
 0x47c   : > { %v1652_v30 = vrot.slane %v1651_v56, 4  ;;  %vm1875_vm6 = vcmp.lt.f32.partialorder %v1865_v35, %v3800_v7 }
 0x47d   : > { %v1879_v45 = vsel %vm1875_vm6, %v2360_v43, 0.0 }
 0x47e   : > { %v1653_v39 = vadd.f32 %v1652_v30, %v1651_v56  ;;  %v1868_v62 = vpop.xlane.xlu1 %1867  ;;  %v1883_v26 = vsel %vm4006_vm4, %v1879_v45, 0.0  ;;  %v2367_v30 = vld [vmem:[#allocation2 + $0xf8] sm:$0xff]  ;;  %vm2030_vm4 = vcmp.eq.s32.totalorder %v2944_v22, 3 }
 0x47f   : > { %vm1876_vm11 = vcmp.lt.f32.partialorder %v1868_v62, %v3800_v7 }
 0x480   : > { %v1654_v14 = vrot.slane %v1653_v39, 2  ;;  %v1880_v25 = vsel %vm1876_vm11, %v2361_v20, 0.0  ;;  %vm4013_vm11 = vmmov %vm4009_vm0 }
 0x481   : > { %v1755_v48 = vpop.xlane.xlu0 %1754  ;;  %v1884_v63 = vsel %vm4007_vm8, %v1880_v25, 0.0 }
 0x482   : > { %vm1759_vm14 = vcmp.lt.f32.partialorder %v1755_v48, %v3800_v7  ;;  %v1655_v0 = vadd.f32 %v1654_v14, %v1653_v39  ;;  %v1885_v33 = vadd.f32 %v1884_v63, %v1883_v26 }
 0x483   : > { %v1763_v10 = vsel %vm1759_vm14, %v2359_v41, 0.0  ;;  %vm2017_vm14 = vcmp.eq.s32.totalorder %v2944_v22, 0 }
 0x484   : > { %v1769_v6 = vsel %vm4005_vm2, %v1763_v10, 0.0  ;;  %v1656_v36 = vrot.slane %v1655_v0, 1  ;;  %vm2019_vm2 = vcmp.eq.s32.totalorder %v2944_v22, 1 }
 0x485   : > { %v1871_v58 = vpop.xlane.xlu1 %1870  ;;  %v1770_v54 = vadd.f32 %v1769_v6, %v1768_v37 }
 0x486   : > { %vm1877_vm15 = vcmp.lt.f32.partialorder %v1871_v58, %v3800_v7  ;;  %v1657_v55 = vadd.f32 %v1656_v36, %v1655_v0  ;;  %v2018_v58 = vsel %vm2017_vm14, %v3275_v4, 0.0 }
 0x487   : > { %v1771_v11 = vrot.slane %v1770_v54, 4  ;;  %v1881_v61 = vsel %vm1877_vm15, %v2362_v59, 0.0  ;;  %vm2027_vm15 = vcmp.eq.s32.totalorder %v2944_v22, 2 }
 0x488   : > { %v1984_v46 = vpop.xlane.xlu0 %1983  ;;  %v1658_v57 = vadd.f32 %v1657_v55, %v1539_v3  ;;  %v1886_v8 = vsel %vm4008_vm13, %v1881_v61, 0.0  ;;  %v2028_v25 = vsel %vm2027_vm15, %v3277_v52, 0.0  ;;  %v2031_v55 = vsel %vm2030_vm4, %v3245_v27, 0.0 }
 0x489   : > { %vm1994_vm10 = vcmp.lt.f32.partialorder %v1984_v46, %v3800_v7  ;;  %v1772_v47 = vadd.f32 %v1771_v11, %v1770_v54  ;;  %v1887_v18 = vadd.f32 %v1886_v8, %v1885_v33 }
 0x48a   : > { %v1998_v13 = vsel %vm1994_vm10, %v2363_v53, 0.0  ;;  %v1987_v49 = vpop.xlane.xlu1 %1986 }
 0x48b   : > { %vm1995_vm1 = vcmp.lt.f32.partialorder %v1987_v49, %v3800_v7  ;;  %v1773_v34 = vrot.slane %v1772_v47, 2  ;;  %v2002_v12 = vsel %vm4009_vm0, %v1998_v13, 0.0 }
 0x48c   : > { %v1999_v9 = vsel %vm1995_vm1, %v2364_v17, 0.0  ;;  %v1874_v1 = vpop.xlane.xlu0 %1873 }
 0x48d   : > { %v2003_v2 = vsel %vm4010_vm12, %v1999_v9, 0.0  ;;  %vm1878_vm3 = vcmp.lt.f32.partialorder %v1874_v1, %v3800_v7  ;;  %v1774_v44 = vadd.f32 %v1773_v34, %v1772_v47 }
 0x48e   : > { %v1882_v51 = vsel %vm1878_vm3, %v2365_v60, 0.0  ;;  %v1990_v3 = vpop.xlane.xlu1 %1989  ;;  %v2004_v50 = vadd.f32 %v2003_v2, %v2002_v12 }
 0x48f   : > { %v1888_v15 = vsel %vm4011_vm7, %v1882_v51, 0.0  ;;  %vm1996_vm9 = vcmp.lt.f32.partialorder %v1990_v3, %v3800_v7  ;;  %v1775_v19 = vrot.slane %v1774_v44, 1 }
 0x490   : > { %v1889_v21 = vadd.f32 %v1888_v15, %v1887_v18  ;;  %v2000_v23 = vsel %vm1996_vm9, %v2366_v5, 0.0  ;;  %v1993_v24 = vpop.xlane.xlu0 %1992 }
 0x491   : > { %v2005_v16 = vsel %vm4012_vm5, %v2000_v23, 0.0  ;;  %vm1997_vm6 = vcmp.lt.f32.partialorder %v1993_v24, %v3800_v7  ;;  %v1776_v28 = vadd.f32 %v1775_v19, %v1774_v44 }
 0x492   : > { %v1890_v56 = vrot.slane %v1889_v21, 4  ;;  %v2006_v35 = vadd.f32 %v2005_v16, %v2004_v50  ;;  %v2001_v31 = vsel %vm1997_vm6, %v2367_v30, 0.0 }
 0x493   : > { %v2007_v32 = vsel %vm4013_vm11, %v2001_v31, 0.0  ;;  %v1777_v39 = vadd.f32 %v1776_v28, %v1658_v57 }
 0x494   : > { %v1891_v38 = vadd.f32 %v1890_v56, %v1889_v21  ;;  %v2008_v29 = vadd.f32 %v2007_v32, %v2006_v35 }
 0x496   : > { %v1892_v62 = vrot.slane %v1891_v38, 2  ;;  %v2009_v40 = vrot.slane %v2008_v29, 4 }
 0x498   : > { %v1893_v42 = vadd.f32 %v1892_v62, %v1891_v38  ;;  %v2010_v14 = vadd.f32 %v2009_v40, %v2008_v29 }
 0x49a   : > { %v1894_v48 = vrot.slane %v1893_v42, 1  ;;  %v2011_v0 = vrot.slane %v2010_v14, 2 }
 0x49c   : > { %v1895_v37 = vadd.f32 %v1894_v48, %v1893_v42  ;;  %v2012_v41 = vadd.f32 %v2011_v0, %v2010_v14 }
 0x49e   : > { %v2013_v7 = vrot.slane %v2012_v41, 1  ;;  %v1896_v10 = vadd.f32 %v1895_v37, %v1777_v39 }
 0x4a0   : > { %v2014_v43 = vadd.f32 %v2013_v7, %v2012_v41 }
 0x4a2   : > { %v2015_v45 = vadd.f32 %v2014_v43, %v1896_v10 }
 0x4a4   : > { %2022 = vperm.xlu1 %2305, %v2015_v45  }
 0x523   : > { %v2023_v6 = vpop.permute.xlu1 %2022 }
 0x524   : > { %v2025_v36 = vsel %vm2019_vm2, %v2023_v6, 0.0 }
 0x525   : > { %v2026_v20 = vadd.f32 %v2025_v36, %v2018_v58 }
 0x527   : > { %v2029_v54 = vadd.f32 %v2028_v25, %v2026_v20 }
 0x529   : > { %v2032_v11 = vadd.f32 %v2031_v55, %v2029_v54 }
 0x52b   : > { %2033 = vst [vmem:[%s243_s29] sm:$0x1] %v2032_v11 }
 0x52c   : > { %2491 = shalt.err (!%p2488_p9)
}
 0x52d   : > { %s2492_s27 = scalar_lea.hbm %s3878_s20, 16  ;;  %s2496_s17 = scalar_lea.hbm %s3926_s5, 32 }
 0x52e   : > { %p2493_p5 = scmp.ne.s32.totalorder %s3878_s20, %s2492_s27  ;;  %p2497_p1 = scmp.lt.u32.totalorder %s3878_s20, %s3926_s5 }
 0x52f   : > { %p2498_p13 = scmp.lt.u32.totalorder %s2496_s17, %s2492_s27  ;;  %p2500_p3 = scmp.lt.u32.totalorder %s2492_s27, %s3878_s20 }
 0x530   : > { %p2494_p12 = pnand %p2493_p5, %p4014_p6 }
 0x531   : > { %p2499_p4 = por %p2498_p13, %p2497_p1 }
 0x532   : > { %p2495_p2 = pneg %p2494_p12 }
 0x533   : > { %p2501_p7 = por %p2500_p3, %p2499_p4 }
 0x535   : > { %p2502_p0 = pnand %p2501_p7, %p2495_p2 }
 0x537   : > { %2505 = shalt.err (!%p2502_p0)
}
 0x538   : > { %2245 = dma.vmem_to_hbm [thread:$0]  (%p4014_p6), %s3880_s6, 16, %s3878_s20, %s2035_s24  }
 0x539 PF: > { %s2059_s26 = sand.u32 1, %s2538_s0   ;;  %p4015_p10 = scmp.ne.s32.totalorder %s3937_s19, 0 }
 0x53a   : > { %p4016_p8 = scmp.ge.s32.totalorder %s2550_s9, 2  ;;  %s2060_s23 = scalar_lea.sflag [#allocation8], %s2059_s26 }
 0x53c   : > { %p2259_p11 = pnand %p4016_p8, %p4015_p10 }
 0x53e   : > { %2533 = dma.done.wait (!%p2259_p11), %s2060_s23, 16  }
 0x53f   : > { %2535 = vsyncadd (!%p2259_p11), %s2060_s23, 4294967280  ;;  %p27_p9 = scmp.ge.s32.totalorder %s2627_s10, 4   ;;  %s4017_s0 = smov %s2542_s1 }
 0x540   : > { %s4018_s1 = smov %s2546_s8  ;;  %s4019_s8 = smov %s2638_s13 }
 0x541   : > { %s4020_s9 = smov %s2627_s10  ;;  %29 = sbr.rel (!%p27_p9) target bundleno = 28 (0x1c), region = 107 }
 0x548   :  { %2064 = vsyncpa [#allocation7], 1 }
 0x549   :  { %2066 = vsyncpa [#allocation7 + $0x1], 1 }
 0x54a   :  { %2067 = vsyncpa [#allocation10], 1 }
 0x54b   :  { %2069 = vsyncpa [#allocation10 + $0x1], 1 }
 0x54c   :  { %2070 = vsyncpa [#allocation8], 1 }
 0x54d   :  { %2072 = vsyncpa [#allocation8 + $0x1], 1 }

</bundles_post_ra>
